<compile_context>
chip_gen: v7x
topology: tpu7x:2x2x1
jax: 0.10.0
libtpu: 0.0.40
codegen_flags: <defaults>
</compile_context>

<pallas_src>
import jax
import jax.numpy as jnp
import numpy as np
from jax.experimental import pallas as pl
from jax.experimental.pallas import tpu as pltpu

_BN_EPS = 1e-5
# Tap order matches HWIO (kh, kw) raster order: tap index = (dh+1)*3 + (dw+1).
_TAPS = tuple((dh, dw) for dh in (-1, 0, 1) for dw in (-1, 0, 1))


def _make_encoder_kernel(H, W, M, taps):
    """Fused 3-layer conv3x3 + BatchNorm(batch stats) + ReLU kernel, channel-major layout."""

    def kernel(x_ref, m_ref, w1_ref, w2_ref, w3_ref,
               g1_ref, b1_ref, g2_ref, b2_ref, g3_ref, b3_ref, o_ref):
        # x_ref : (Cin_pad, M) f32          activations, channel-major (M on lanes)
        # m_ref : (9, 1, M)   f32 0/1       per-tap spatial-edge validity masks
        # w*_ref: (9, Cout, Cin) f32        per-tap transposed conv weights
        # g*/b*_ref: (Cout, 1) f32          BN gamma / beta
        # o_ref : (Cout3, M)  f32           lane-dense output

        def conv_bn_relu(a, w_ref, g_ref, b_ref):
            cout = w_ref.shape[1]
            acc = jnp.zeros((cout, M), jnp.float32)
            for t, (dh, dw) in enumerate(taps):
                off = dh * W + dw
                if off == 0:
                    piece = a                                   # center tap: no shift, no mask
                else:
                    # piece[c, m] = a[c, (m + off) mod M], zeroed where (h+dh, w+dw) is padding
                    # (the mask also kills the wrap-around across row/batch boundaries).
                    piece = pltpu.roll(a, shift=(M - off) % M, axis=1) * m_ref[t]
                acc = acc + jnp.dot(w_ref[t], piece, preferred_element_type=jnp.float32)
            # training-mode BatchNorm over the M = N*H*W axis, single pass, folded affine
            inv_m = jnp.float32(1.0 / M)
            mean = jnp.sum(acc, axis=1, keepdims=True) * inv_m            # (Cout, 1)
            ex2 = jnp.sum(acc * acc, axis=1, keepdims=True) * inv_m
            var = jnp.maximum(ex2 - mean * mean, 0.0)
            scale = g_ref[...] * jax.lax.rsqrt(var + _BN_EPS)
            shift = b_ref[...] - mean * scale
            return jnp.maximum(acc * scale + shift, 0.0)                   # fused FMA + ReLU

        a1 = conv_bn_relu(x_ref[...], w1_ref, g1_ref, b1_ref)
        a2 = conv_bn_relu(a1, w2_ref, g2_ref, b2_ref)
        a3 = conv_bn_relu(a2, w3_ref, g3_ref, b3_ref)
        o_ref[...] = a3

    return kernel


def _make_masks(N, H, W, taps):
    """Host-side 0/1 validity masks for each 3x3 tap over the flat m = (n*H + h)*W + w axis."""
    m = np.arange(N * H * W)
    hh = (m // W) % H
    ww = m % W
    out = np.zeros((len(taps), 1, N * H * W), np.float32)
    for t, (dh, dw) in enumerate(taps):
        valid = (hh + dh >= 0) & (hh + dh < H) & (ww + dw >= 0) & (ww + dw < W)
        out[t, 0, :] = valid.astype(np.float32)
    return jnp.asarray(out)


def _prep_layer(w_hwio, gamma, beta, cin_pad):
    """(3,3,Cin,Cout) -> per-tap (9, Cout, Cin_pad) f32; gamma/beta -> (Cout, 1) f32."""
    _, _, cin, cout = w_hwio.shape
    if cin_pad > cin:
        w_hwio = jnp.pad(w_hwio, ((0, 0), (0, 0), (0, cin_pad - cin), (0, 0)))
    w_t = jnp.transpose(w_hwio, (0, 1, 3, 2)).reshape(9, cout, cin_pad).astype(jnp.float32)
    return (w_t,
            gamma.reshape(cout, 1).astype(jnp.float32),
            beta.reshape(cout, 1).astype(jnp.float32))


def encoder_forward(x_nchw, params):
    """Equivalent of Encoder.forward (training-mode BN).  (N, C, H, W) -> (N, 32, H, W)."""
    N, C, H, W = x_nchw.shape
    M = N * H * W

    # channel-major, lane-dense activation (Cin_pad, M); pad Cin 4 -> 8 for fuller vregs
    cin_pad = -(-C // 8) * 8
    x_cm = jnp.transpose(x_nchw, (1, 0, 2, 3)).reshape(C, M).astype(jnp.float32)
    if cin_pad > C:
        x_cm = jnp.pad(x_cm, ((0, cin_pad - C), (0, 0)))

    (w1, _b1, g1, be1), (w2, _b2, g2, be2), (w3, _b3, g3, be3) = params
    # conv biases _b* are intentionally unused: BN subtracts the batch mean, cancelling them exactly.
    w1t, g1v, be1v = _prep_layer(w1, g1, be1, cin_pad)
    w2t, g2v, be2v = _prep_layer(w2, g2, be2, w2.shape[2])
    w3t, g3v, be3v = _prep_layer(w3, g3, be3, w3.shape[2])
    masks = _make_masks(N, H, W, _TAPS)
    cout_f = w3.shape[-1]

    vmem = pl.BlockSpec(memory_space=pltpu.MemorySpace.VMEM)
    kernel = _make_encoder_kernel(H, W, M, _TAPS)
    out2d = pl.pallas_call(
        kernel,
        out_shape=jax.ShapeDtypeStruct((cout_f, M), jnp.float32),
        in_specs=[vmem] * 11,
        out_specs=vmem,
    )(x_cm, masks, w1t, w2t, w3t, g1v, be1v, g2v, be2v, g3v, be3v)

    return out2d.reshape(cout_f, N, H, W).transpose(1, 0, 2, 3)   # (Cout, M) -> NCHW


def init_conv_params(key, cin, cout):
    """Deterministic init mimicking PyTorch Conv2d defaults (kaiming-uniform, a=sqrt(5))."""
    kw_key, kb_key = jax.random.split(key)
    fan_in = cin * 9
    bound = 1.0 / np.sqrt(fan_in)
    w = jax.random.uniform(kw_key, (3, 3, cin, cout), jnp.float32, -bound, bound)
    b = jax.random.uniform(kb_key, (cout,), jnp.float32, -bound, bound)
    gamma = jnp.ones((cout,), jnp.float32)   # BatchNorm2d default weight
    beta = jnp.zeros((cout,), jnp.float32)   # BatchNorm2d default bias
    return w, b, gamma, beta


# ---------------------- pure-JAX f32 reference for validation ----------------------
def _ref_layer(x_nhwc, w_hwio, b, gamma, beta):
    y = jax.lax.conv_general_dilated(
        x_nhwc, w_hwio, window_strides=(1, 1), padding="SAME",
        dimension_numbers=("NHWC", "HWIO", "NHWC")) + b
    mean = y.mean(axis=(0, 1, 2))
    var = ((y - mean) ** 2).mean(axis=(0, 1, 2))
    y = (y - mean) * jax.lax.rsqrt(var + _BN_EPS) * gamma + beta
    return jnp.maximum(y, 0.0)


def _ref_forward(x_nchw, params):
    x = jnp.transpose(x_nchw, (0, 2, 3, 1))
    for (w, b, g, be) in params:
        x = _ref_layer(x, w, b, g, be)
    return jnp.transpose(x, (0, 3, 1, 2))


if __name__ == "__main__":
    key = jax.random.PRNGKey(0)
    kx, k1, k2, k3 = jax.random.split(key, 4)

    N, C, H, W = 2, 4, 16, 16
    x = jax.random.normal(kx, (N, C, H, W), jnp.float32)

    params = [
        init_conv_params(k1, C, 24),   # conv1 / bn1
        init_conv_params(k2, 24, 24),  # conv2 / bn2
        init_conv_params(k3, 24, 32),  # conv3 / bn3
    ]

    fwd = jax.jit(encoder_forward)
    out = jax.block_until_ready(fwd(x, params))
    ref = jax.block_until_ready(_ref_forward(x, params))

    assert out.shape == (N, 32, H, W), out.shape
    assert bool(jnp.all(jnp.isfinite(out)))
    # f32 MXU accumulation: differences vs the reference come only from summation order /
    # single-pass BN stats, so this tolerance has ample headroom.
    np.testing.assert_allclose(np.asarray(out), np.asarray(ref), rtol=2e-2, atol=2e-2)

    print("KERNEL_OK")
</pallas_src>

<mosaic_0001>
module attributes {stable_mosaic.version = 11 : i64} {
  func.func @kernel(%arg0: memref<8x512xf32, #tpu.memory_space<vmem>>, %arg1: memref<9x1x512xf32, #tpu.memory_space<vmem>>, %arg2: memref<9x24x8xf32, #tpu.memory_space<vmem>>, %arg3: memref<9x24x24xf32, #tpu.memory_space<vmem>>, %arg4: memref<9x32x24xf32, #tpu.memory_space<vmem>>, %arg5: memref<24x1xf32, #tpu.memory_space<vmem>>, %arg6: memref<24x1xf32, #tpu.memory_space<vmem>>, %arg7: memref<24x1xf32, #tpu.memory_space<vmem>>, %arg8: memref<24x1xf32, #tpu.memory_space<vmem>>, %arg9: memref<32x1xf32, #tpu.memory_space<vmem>>, %arg10: memref<32x1xf32, #tpu.memory_space<vmem>>, %arg11: memref<32x512xf32, #tpu.memory_space<vmem>>) attributes {dimension_semantics = [], scalar_prefetch = 0 : i64, scratch_operands = 0 : i64, tpu.core_type = #tpu.core_type<tc>} {
    %c0 = arith.constant 0 : index
    %c0_0 = arith.constant 0 : index
    %0 = vector.load %arg0[%c0, %c0_0] : memref<8x512xf32, #tpu.memory_space<vmem>>, vector<8x512xf32>
    %cst = arith.constant 0.000000e+00 : f32
    %1 = vector.broadcast %cst : f32 to vector<24x512xf32>
    %c17_i32 = arith.constant 17 : i32
    %2 = tpu.dynamic_rotate %0 by %c17_i32 dim 1 : vector<8x512xf32>, i32 -> vector<8x512xf32>
    %c0_1 = arith.constant 0 : index
    %c0_2 = arith.constant 0 : index
    %c0_3 = arith.constant 0 : index
    %3 = vector.load %arg1[%c0_1, %c0_2, %c0_3] : memref<9x1x512xf32, #tpu.memory_space<vmem>>, vector<1x1x512xf32>
    %4 = vector.shape_cast %3 : vector<1x1x512xf32> to vector<1x512xf32>
    %5 = vector.broadcast %4 : vector<1x512xf32> to vector<8x512xf32>
    %6 = arith.mulf %2, %5 : vector<8x512xf32>
    %c0_4 = arith.constant 0 : index
    %c0_5 = arith.constant 0 : index
    %c0_6 = arith.constant 0 : index
    %7 = vector.load %arg2[%c0_4, %c0_5, %c0_6] : memref<9x24x8xf32, #tpu.memory_space<vmem>>, vector<1x24x8xf32>
    %8 = vector.shape_cast %7 : vector<1x24x8xf32> to vector<24x8xf32>
    %cst_7 = arith.constant dense<0.000000e+00> : vector<24x512xf32>
    %9 = tpu.matmul %8, %6, %cst_7 {dimension_numbers = #tpu.dot_dimension_numbers<[1], [0], [0], [1], [0, 0, 1, 1], [], []>} : vector<24x8xf32>, vector<8x512xf32>, vector<24x512xf32> -> vector<24x512xf32>
    %10 = arith.addf %1, %9 : vector<24x512xf32>
    %c16_i32 = arith.constant 16 : i32
    %11 = tpu.dynamic_rotate %0 by %c16_i32 dim 1 : vector<8x512xf32>, i32 -> vector<8x512xf32>
    %c1 = arith.constant 1 : index
    %c0_8 = arith.constant 0 : index
    %c0_9 = arith.constant 0 : index
    %12 = vector.load %arg1[%c1, %c0_8, %c0_9] : memref<9x1x512xf32, #tpu.memory_space<vmem>>, vector<1x1x512xf32>
    %13 = vector.shape_cast %12 : vector<1x1x512xf32> to vector<1x512xf32>
    %14 = vector.broadcast %13 : vector<1x512xf32> to vector<8x512xf32>
    %15 = arith.mulf %11, %14 : vector<8x512xf32>
    %c1_10 = arith.constant 1 : index
    %c0_11 = arith.constant 0 : index
    %c0_12 = arith.constant 0 : index
    %16 = vector.load %arg2[%c1_10, %c0_11, %c0_12] : memref<9x24x8xf32, #tpu.memory_space<vmem>>, vector<1x24x8xf32>
    %17 = vector.shape_cast %16 : vector<1x24x8xf32> to vector<24x8xf32>
    %cst_13 = arith.constant dense<0.000000e+00> : vector<24x512xf32>
    %18 = tpu.matmul %17, %15, %cst_13 {dimension_numbers = #tpu.dot_dimension_numbers<[1], [0], [0], [1], [0, 0, 1, 1], [], []>} : vector<24x8xf32>, vector<8x512xf32>, vector<24x512xf32> -> vector<24x512xf32>
    %19 = arith.addf %10, %18 : vector<24x512xf32>
    %c15_i32 = arith.constant 15 : i32
    %20 = tpu.dynamic_rotate %0 by %c15_i32 dim 1 : vector<8x512xf32>, i32 -> vector<8x512xf32>
    %c2 = arith.constant 2 : index
    %c0_14 = arith.constant 0 : index
    %c0_15 = arith.constant 0 : index
    %21 = vector.load %arg1[%c2, %c0_14, %c0_15] : memref<9x1x512xf32, #tpu.memory_space<vmem>>, vector<1x1x512xf32>
    %22 = vector.shape_cast %21 : vector<1x1x512xf32> to vector<1x512xf32>
    %23 = vector.broadcast %22 : vector<1x512xf32> to vector<8x512xf32>
    %24 = arith.mulf %20, %23 : vector<8x512xf32>
    %c2_16 = arith.constant 2 : index
    %c0_17 = arith.constant 0 : index
    %c0_18 = arith.constant 0 : index
    %25 = vector.load %arg2[%c2_16, %c0_17, %c0_18] : memref<9x24x8xf32, #tpu.memory_space<vmem>>, vector<1x24x8xf32>
    %26 = vector.shape_cast %25 : vector<1x24x8xf32> to vector<24x8xf32>
    %cst_19 = arith.constant dense<0.000000e+00> : vector<24x512xf32>
    %27 = tpu.matmul %26, %24, %cst_19 {dimension_numbers = #tpu.dot_dimension_numbers<[1], [0], [0], [1], [0, 0, 1, 1], [], []>} : vector<24x8xf32>, vector<8x512xf32>, vector<24x512xf32> -> vector<24x512xf32>
    %28 = arith.addf %19, %27 : vector<24x512xf32>
    %c1_i32 = arith.constant 1 : i32
    %29 = tpu.dynamic_rotate %0 by %c1_i32 dim 1 : vector<8x512xf32>, i32 -> vector<8x512xf32>
    %c3 = arith.constant 3 : index
    %c0_20 = arith.constant 0 : index
    %c0_21 = arith.constant 0 : index
    %30 = vector.load %arg1[%c3, %c0_20, %c0_21] : memref<9x1x512xf32, #tpu.memory_space<vmem>>, vector<1x1x512xf32>
    %31 = vector.shape_cast %30 : vector<1x1x512xf32> to vector<1x512xf32>
    %32 = vector.broadcast %31 : vector<1x512xf32> to vector<8x512xf32>
    %33 = arith.mulf %29, %32 : vector<8x512xf32>
    %c3_22 = arith.constant 3 : index
    %c0_23 = arith.constant 0 : index
    %c0_24 = arith.constant 0 : index
    %34 = vector.load %arg2[%c3_22, %c0_23, %c0_24] : memref<9x24x8xf32, #tpu.memory_space<vmem>>, vector<1x24x8xf32>
    %35 = vector.shape_cast %34 : vector<1x24x8xf32> to vector<24x8xf32>
    %cst_25 = arith.constant dense<0.000000e+00> : vector<24x512xf32>
    %36 = tpu.matmul %35, %33, %cst_25 {dimension_numbers = #tpu.dot_dimension_numbers<[1], [0], [0], [1], [0, 0, 1, 1], [], []>} : vector<24x8xf32>, vector<8x512xf32>, vector<24x512xf32> -> vector<24x512xf32>
    %37 = arith.addf %28, %36 : vector<24x512xf32>
    %c4 = arith.constant 4 : index
    %c0_26 = arith.constant 0 : index
    %c0_27 = arith.constant 0 : index
    %38 = vector.load %arg2[%c4, %c0_26, %c0_27] : memref<9x24x8xf32, #tpu.memory_space<vmem>>, vector<1x24x8xf32>
    %39 = vector.shape_cast %38 : vector<1x24x8xf32> to vector<24x8xf32>
    %cst_28 = arith.constant dense<0.000000e+00> : vector<24x512xf32>
    %40 = tpu.matmul %39, %0, %cst_28 {dimension_numbers = #tpu.dot_dimension_numbers<[1], [0], [0], [1], [0, 0, 1, 1], [], []>} : vector<24x8xf32>, vector<8x512xf32>, vector<24x512xf32> -> vector<24x512xf32>
    %41 = arith.addf %37, %40 : vector<24x512xf32>
    %c511_i32 = arith.constant 511 : i32
    %42 = tpu.dynamic_rotate %0 by %c511_i32 dim 1 : vector<8x512xf32>, i32 -> vector<8x512xf32>
    %c5 = arith.constant 5 : index
    %c0_29 = arith.constant 0 : index
    %c0_30 = arith.constant 0 : index
    %43 = vector.load %arg1[%c5, %c0_29, %c0_30] : memref<9x1x512xf32, #tpu.memory_space<vmem>>, vector<1x1x512xf32>
    %44 = vector.shape_cast %43 : vector<1x1x512xf32> to vector<1x512xf32>
    %45 = vector.broadcast %44 : vector<1x512xf32> to vector<8x512xf32>
    %46 = arith.mulf %42, %45 : vector<8x512xf32>
    %c5_31 = arith.constant 5 : index
    %c0_32 = arith.constant 0 : index
    %c0_33 = arith.constant 0 : index
    %47 = vector.load %arg2[%c5_31, %c0_32, %c0_33] : memref<9x24x8xf32, #tpu.memory_space<vmem>>, vector<1x24x8xf32>
    %48 = vector.shape_cast %47 : vector<1x24x8xf32> to vector<24x8xf32>
    %cst_34 = arith.constant dense<0.000000e+00> : vector<24x512xf32>
    %49 = tpu.matmul %48, %46, %cst_34 {dimension_numbers = #tpu.dot_dimension_numbers<[1], [0], [0], [1], [0, 0, 1, 1], [], []>} : vector<24x8xf32>, vector<8x512xf32>, vector<24x512xf32> -> vector<24x512xf32>
    %50 = arith.addf %41, %49 : vector<24x512xf32>
    %c497_i32 = arith.constant 497 : i32
    %51 = tpu.dynamic_rotate %0 by %c497_i32 dim 1 : vector<8x512xf32>, i32 -> vector<8x512xf32>
    %c6 = arith.constant 6 : index
    %c0_35 = arith.constant 0 : index
    %c0_36 = arith.constant 0 : index
    %52 = vector.load %arg1[%c6, %c0_35, %c0_36] : memref<9x1x512xf32, #tpu.memory_space<vmem>>, vector<1x1x512xf32>
    %53 = vector.shape_cast %52 : vector<1x1x512xf32> to vector<1x512xf32>
    %54 = vector.broadcast %53 : vector<1x512xf32> to vector<8x512xf32>
    %55 = arith.mulf %51, %54 : vector<8x512xf32>
    %c6_37 = arith.constant 6 : index
    %c0_38 = arith.constant 0 : index
    %c0_39 = arith.constant 0 : index
    %56 = vector.load %arg2[%c6_37, %c0_38, %c0_39] : memref<9x24x8xf32, #tpu.memory_space<vmem>>, vector<1x24x8xf32>
    %57 = vector.shape_cast %56 : vector<1x24x8xf32> to vector<24x8xf32>
    %cst_40 = arith.constant dense<0.000000e+00> : vector<24x512xf32>
    %58 = tpu.matmul %57, %55, %cst_40 {dimension_numbers = #tpu.dot_dimension_numbers<[1], [0], [0], [1], [0, 0, 1, 1], [], []>} : vector<24x8xf32>, vector<8x512xf32>, vector<24x512xf32> -> vector<24x512xf32>
    %59 = arith.addf %50, %58 : vector<24x512xf32>
    %c496_i32 = arith.constant 496 : i32
    %60 = tpu.dynamic_rotate %0 by %c496_i32 dim 1 : vector<8x512xf32>, i32 -> vector<8x512xf32>
    %c7 = arith.constant 7 : index
    %c0_41 = arith.constant 0 : index
    %c0_42 = arith.constant 0 : index
    %61 = vector.load %arg1[%c7, %c0_41, %c0_42] : memref<9x1x512xf32, #tpu.memory_space<vmem>>, vector<1x1x512xf32>
    %62 = vector.shape_cast %61 : vector<1x1x512xf32> to vector<1x512xf32>
    %63 = vector.broadcast %62 : vector<1x512xf32> to vector<8x512xf32>
    %64 = arith.mulf %60, %63 : vector<8x512xf32>
    %c7_43 = arith.constant 7 : index
    %c0_44 = arith.constant 0 : index
    %c0_45 = arith.constant 0 : index
    %65 = vector.load %arg2[%c7_43, %c0_44, %c0_45] : memref<9x24x8xf32, #tpu.memory_space<vmem>>, vector<1x24x8xf32>
    %66 = vector.shape_cast %65 : vector<1x24x8xf32> to vector<24x8xf32>
    %cst_46 = arith.constant dense<0.000000e+00> : vector<24x512xf32>
    %67 = tpu.matmul %66, %64, %cst_46 {dimension_numbers = #tpu.dot_dimension_numbers<[1], [0], [0], [1], [0, 0, 1, 1], [], []>} : vector<24x8xf32>, vector<8x512xf32>, vector<24x512xf32> -> vector<24x512xf32>
    %68 = arith.addf %59, %67 : vector<24x512xf32>
    %c495_i32 = arith.constant 495 : i32
    %69 = tpu.dynamic_rotate %0 by %c495_i32 dim 1 : vector<8x512xf32>, i32 -> vector<8x512xf32>
    %c8 = arith.constant 8 : index
    %c0_47 = arith.constant 0 : index
    %c0_48 = arith.constant 0 : index
    %70 = vector.load %arg1[%c8, %c0_47, %c0_48] : memref<9x1x512xf32, #tpu.memory_space<vmem>>, vector<1x1x512xf32>
    %71 = vector.shape_cast %70 : vector<1x1x512xf32> to vector<1x512xf32>
    %72 = vector.broadcast %71 : vector<1x512xf32> to vector<8x512xf32>
    %73 = arith.mulf %69, %72 : vector<8x512xf32>
    %c8_49 = arith.constant 8 : index
    %c0_50 = arith.constant 0 : index
    %c0_51 = arith.constant 0 : index
    %74 = vector.load %arg2[%c8_49, %c0_50, %c0_51] : memref<9x24x8xf32, #tpu.memory_space<vmem>>, vector<1x24x8xf32>
    %75 = vector.shape_cast %74 : vector<1x24x8xf32> to vector<24x8xf32>
    %cst_52 = arith.constant dense<0.000000e+00> : vector<24x512xf32>
    %76 = tpu.matmul %75, %73, %cst_52 {dimension_numbers = #tpu.dot_dimension_numbers<[1], [0], [0], [1], [0, 0, 1, 1], [], []>} : vector<24x8xf32>, vector<8x512xf32>, vector<24x512xf32> -> vector<24x512xf32>
    %77 = arith.addf %68, %76 : vector<24x512xf32>
    %cst_53 = arith.constant dense<0.000000e+00> : vector<24xf32>
    %78 = vector.multi_reduction <add>, %77, %cst_53 [1] : vector<24x512xf32> to vector<24xf32>
    %79 = vector.shape_cast %78 : vector<24xf32> to vector<24x1xf32>
    %cst_54 = arith.constant 0.001953125 : f32
    %80 = vector.broadcast %cst_54 : f32 to vector<24x1xf32>
    %81 = arith.mulf %79, %80 : vector<24x1xf32>
    %82 = arith.mulf %77, %77 : vector<24x512xf32>
    %cst_55 = arith.constant dense<0.000000e+00> : vector<24xf32>
    %83 = vector.multi_reduction <add>, %82, %cst_55 [1] : vector<24x512xf32> to vector<24xf32>
    %84 = vector.shape_cast %83 : vector<24xf32> to vector<24x1xf32>
    %cst_56 = arith.constant 0.001953125 : f32
    %85 = vector.broadcast %cst_56 : f32 to vector<24x1xf32>
    %86 = arith.mulf %84, %85 : vector<24x1xf32>
    %87 = arith.mulf %81, %81 : vector<24x1xf32>
    %88 = arith.subf %86, %87 : vector<24x1xf32>
    %cst_57 = arith.constant 0.000000e+00 : f32
    %89 = vector.broadcast %cst_57 : f32 to vector<24x1xf32>
    %90 = arith.maximumf %88, %89 : vector<24x1xf32>
    %c0_58 = arith.constant 0 : index
    %c0_59 = arith.constant 0 : index
    %91 = vector.load %arg5[%c0_58, %c0_59] : memref<24x1xf32, #tpu.memory_space<vmem>>, vector<24x1xf32>
    %cst_60 = arith.constant 9.99999974E-6 : f32
    %92 = vector.broadcast %cst_60 : f32 to vector<24x1xf32>
    %93 = arith.addf %90, %92 : vector<24x1xf32>
    %94 = math.rsqrt %93 : vector<24x1xf32>
    %95 = arith.mulf %91, %94 : vector<24x1xf32>
    %c0_61 = arith.constant 0 : index
    %c0_62 = arith.constant 0 : index
    %96 = vector.load %arg6[%c0_61, %c0_62] : memref<24x1xf32, #tpu.memory_space<vmem>>, vector<24x1xf32>
    %97 = arith.mulf %81, %95 : vector<24x1xf32>
    %98 = arith.subf %96, %97 : vector<24x1xf32>
    %99 = vector.broadcast %95 : vector<24x1xf32> to vector<24x512xf32>
    %100 = arith.mulf %77, %99 : vector<24x512xf32>
    %101 = vector.broadcast %98 : vector<24x1xf32> to vector<24x512xf32>
    %102 = arith.addf %100, %101 : vector<24x512xf32>
    %cst_63 = arith.constant 0.000000e+00 : f32
    %103 = vector.broadcast %cst_63 : f32 to vector<24x512xf32>
    %104 = arith.maximumf %102, %103 : vector<24x512xf32>
    %cst_64 = arith.constant 0.000000e+00 : f32
    %105 = vector.broadcast %cst_64 : f32 to vector<24x512xf32>
    %c17_i32_65 = arith.constant 17 : i32
    %106 = tpu.dynamic_rotate %104 by %c17_i32_65 dim 1 : vector<24x512xf32>, i32 -> vector<24x512xf32>
    %c0_66 = arith.constant 0 : index
    %c0_67 = arith.constant 0 : index
    %c0_68 = arith.constant 0 : index
    %107 = vector.load %arg1[%c0_66, %c0_67, %c0_68] : memref<9x1x512xf32, #tpu.memory_space<vmem>>, vector<1x1x512xf32>
    %108 = vector.shape_cast %107 : vector<1x1x512xf32> to vector<1x512xf32>
    %109 = vector.broadcast %108 : vector<1x512xf32> to vector<24x512xf32>
    %110 = arith.mulf %106, %109 : vector<24x512xf32>
    %c0_69 = arith.constant 0 : index
    %c0_70 = arith.constant 0 : index
    %c0_71 = arith.constant 0 : index
    %111 = vector.load %arg3[%c0_69, %c0_70, %c0_71] : memref<9x24x24xf32, #tpu.memory_space<vmem>>, vector<1x24x24xf32>
    %112 = vector.shape_cast %111 : vector<1x24x24xf32> to vector<24x24xf32>
    %cst_72 = arith.constant dense<0.000000e+00> : vector<24x512xf32>
    %113 = tpu.matmul %112, %110, %cst_72 {dimension_numbers = #tpu.dot_dimension_numbers<[1], [0], [0], [1], [0, 0, 1, 1], [], []>} : vector<24x24xf32>, vector<24x512xf32>, vector<24x512xf32> -> vector<24x512xf32>
    %114 = arith.addf %105, %113 : vector<24x512xf32>
    %c16_i32_73 = arith.constant 16 : i32
    %115 = tpu.dynamic_rotate %104 by %c16_i32_73 dim 1 : vector<24x512xf32>, i32 -> vector<24x512xf32>
    %c1_74 = arith.constant 1 : index
    %c0_75 = arith.constant 0 : index
    %c0_76 = arith.constant 0 : index
    %116 = vector.load %arg1[%c1_74, %c0_75, %c0_76] : memref<9x1x512xf32, #tpu.memory_space<vmem>>, vector<1x1x512xf32>
    %117 = vector.shape_cast %116 : vector<1x1x512xf32> to vector<1x512xf32>
    %118 = vector.broadcast %117 : vector<1x512xf32> to vector<24x512xf32>
    %119 = arith.mulf %115, %118 : vector<24x512xf32>
    %c1_77 = arith.constant 1 : index
    %c0_78 = arith.constant 0 : index
    %c0_79 = arith.constant 0 : index
    %120 = vector.load %arg3[%c1_77, %c0_78, %c0_79] : memref<9x24x24xf32, #tpu.memory_space<vmem>>, vector<1x24x24xf32>
    %121 = vector.shape_cast %120 : vector<1x24x24xf32> to vector<24x24xf32>
    %cst_80 = arith.constant dense<0.000000e+00> : vector<24x512xf32>
    %122 = tpu.matmul %121, %119, %cst_80 {dimension_numbers = #tpu.dot_dimension_numbers<[1], [0], [0], [1], [0, 0, 1, 1], [], []>} : vector<24x24xf32>, vector<24x512xf32>, vector<24x512xf32> -> vector<24x512xf32>
    %123 = arith.addf %114, %122 : vector<24x512xf32>
    %c15_i32_81 = arith.constant 15 : i32
    %124 = tpu.dynamic_rotate %104 by %c15_i32_81 dim 1 : vector<24x512xf32>, i32 -> vector<24x512xf32>
    %c2_82 = arith.constant 2 : index
    %c0_83 = arith.constant 0 : index
    %c0_84 = arith.constant 0 : index
    %125 = vector.load %arg1[%c2_82, %c0_83, %c0_84] : memref<9x1x512xf32, #tpu.memory_space<vmem>>, vector<1x1x512xf32>
    %126 = vector.shape_cast %125 : vector<1x1x512xf32> to vector<1x512xf32>
    %127 = vector.broadcast %126 : vector<1x512xf32> to vector<24x512xf32>
    %128 = arith.mulf %124, %127 : vector<24x512xf32>
    %c2_85 = arith.constant 2 : index
    %c0_86 = arith.constant 0 : index
    %c0_87 = arith.constant 0 : index
    %129 = vector.load %arg3[%c2_85, %c0_86, %c0_87] : memref<9x24x24xf32, #tpu.memory_space<vmem>>, vector<1x24x24xf32>
    %130 = vector.shape_cast %129 : vector<1x24x24xf32> to vector<24x24xf32>
    %cst_88 = arith.constant dense<0.000000e+00> : vector<24x512xf32>
    %131 = tpu.matmul %130, %128, %cst_88 {dimension_numbers = #tpu.dot_dimension_numbers<[1], [0], [0], [1], [0, 0, 1, 1], [], []>} : vector<24x24xf32>, vector<24x512xf32>, vector<24x512xf32> -> vector<24x512xf32>
    %132 = arith.addf %123, %131 : vector<24x512xf32>
    %c1_i32_89 = arith.constant 1 : i32
    %133 = tpu.dynamic_rotate %104 by %c1_i32_89 dim 1 : vector<24x512xf32>, i32 -> vector<24x512xf32>
    %c3_90 = arith.constant 3 : index
    %c0_91 = arith.constant 0 : index
    %c0_92 = arith.constant 0 : index
    %134 = vector.load %arg1[%c3_90, %c0_91, %c0_92] : memref<9x1x512xf32, #tpu.memory_space<vmem>>, vector<1x1x512xf32>
    %135 = vector.shape_cast %134 : vector<1x1x512xf32> to vector<1x512xf32>
    %136 = vector.broadcast %135 : vector<1x512xf32> to vector<24x512xf32>
    %137 = arith.mulf %133, %136 : vector<24x512xf32>
    %c3_93 = arith.constant 3 : index
    %c0_94 = arith.constant 0 : index
    %c0_95 = arith.constant 0 : index
    %138 = vector.load %arg3[%c3_93, %c0_94, %c0_95] : memref<9x24x24xf32, #tpu.memory_space<vmem>>, vector<1x24x24xf32>
    %139 = vector.shape_cast %138 : vector<1x24x24xf32> to vector<24x24xf32>
    %cst_96 = arith.constant dense<0.000000e+00> : vector<24x512xf32>
    %140 = tpu.matmul %139, %137, %cst_96 {dimension_numbers = #tpu.dot_dimension_numbers<[1], [0], [0], [1], [0, 0, 1, 1], [], []>} : vector<24x24xf32>, vector<24x512xf32>, vector<24x512xf32> -> vector<24x512xf32>
    %141 = arith.addf %132, %140 : vector<24x512xf32>
    %c4_97 = arith.constant 4 : index
    %c0_98 = arith.constant 0 : index
    %c0_99 = arith.constant 0 : index
    %142 = vector.load %arg3[%c4_97, %c0_98, %c0_99] : memref<9x24x24xf32, #tpu.memory_space<vmem>>, vector<1x24x24xf32>
    %143 = vector.shape_cast %142 : vector<1x24x24xf32> to vector<24x24xf32>
    %cst_100 = arith.constant dense<0.000000e+00> : vector<24x512xf32>
    %144 = tpu.matmul %143, %104, %cst_100 {dimension_numbers = #tpu.dot_dimension_numbers<[1], [0], [0], [1], [0, 0, 1, 1], [], []>} : vector<24x24xf32>, vector<24x512xf32>, vector<24x512xf32> -> vector<24x512xf32>
    %145 = arith.addf %141, %144 : vector<24x512xf32>
    %c511_i32_101 = arith.constant 511 : i32
    %146 = tpu.dynamic_rotate %104 by %c511_i32_101 dim 1 : vector<24x512xf32>, i32 -> vector<24x512xf32>
    %c5_102 = arith.constant 5 : index
    %c0_103 = arith.constant 0 : index
    %c0_104 = arith.constant 0 : index
    %147 = vector.load %arg1[%c5_102, %c0_103, %c0_104] : memref<9x1x512xf32, #tpu.memory_space<vmem>>, vector<1x1x512xf32>
    %148 = vector.shape_cast %147 : vector<1x1x512xf32> to vector<1x512xf32>
    %149 = vector.broadcast %148 : vector<1x512xf32> to vector<24x512xf32>
    %150 = arith.mulf %146, %149 : vector<24x512xf32>
    %c5_105 = arith.constant 5 : index
    %c0_106 = arith.constant 0 : index
    %c0_107 = arith.constant 0 : index
    %151 = vector.load %arg3[%c5_105, %c0_106, %c0_107] : memref<9x24x24xf32, #tpu.memory_space<vmem>>, vector<1x24x24xf32>
    %152 = vector.shape_cast %151 : vector<1x24x24xf32> to vector<24x24xf32>
    %cst_108 = arith.constant dense<0.000000e+00> : vector<24x512xf32>
    %153 = tpu.matmul %152, %150, %cst_108 {dimension_numbers = #tpu.dot_dimension_numbers<[1], [0], [0], [1], [0, 0, 1, 1], [], []>} : vector<24x24xf32>, vector<24x512xf32>, vector<24x512xf32> -> vector<24x512xf32>
    %154 = arith.addf %145, %153 : vector<24x512xf32>
    %c497_i32_109 = arith.constant 497 : i32
    %155 = tpu.dynamic_rotate %104 by %c497_i32_109 dim 1 : vector<24x512xf32>, i32 -> vector<24x512xf32>
    %c6_110 = arith.constant 6 : index
    %c0_111 = arith.constant 0 : index
    %c0_112 = arith.constant 0 : index
    %156 = vector.load %arg1[%c6_110, %c0_111, %c0_112] : memref<9x1x512xf32, #tpu.memory_space<vmem>>, vector<1x1x512xf32>
    %157 = vector.shape_cast %156 : vector<1x1x512xf32> to vector<1x512xf32>
    %158 = vector.broadcast %157 : vector<1x512xf32> to vector<24x512xf32>
    %159 = arith.mulf %155, %158 : vector<24x512xf32>
    %c6_113 = arith.constant 6 : index
    %c0_114 = arith.constant 0 : index
    %c0_115 = arith.constant 0 : index
    %160 = vector.load %arg3[%c6_113, %c0_114, %c0_115] : memref<9x24x24xf32, #tpu.memory_space<vmem>>, vector<1x24x24xf32>
    %161 = vector.shape_cast %160 : vector<1x24x24xf32> to vector<24x24xf32>
    %cst_116 = arith.constant dense<0.000000e+00> : vector<24x512xf32>
    %162 = tpu.matmul %161, %159, %cst_116 {dimension_numbers = #tpu.dot_dimension_numbers<[1], [0], [0], [1], [0, 0, 1, 1], [], []>} : vector<24x24xf32>, vector<24x512xf32>, vector<24x512xf32> -> vector<24x512xf32>
    %163 = arith.addf %154, %162 : vector<24x512xf32>
    %c496_i32_117 = arith.constant 496 : i32
    %164 = tpu.dynamic_rotate %104 by %c496_i32_117 dim 1 : vector<24x512xf32>, i32 -> vector<24x512xf32>
    %c7_118 = arith.constant 7 : index
    %c0_119 = arith.constant 0 : index
    %c0_120 = arith.constant 0 : index
    %165 = vector.load %arg1[%c7_118, %c0_119, %c0_120] : memref<9x1x512xf32, #tpu.memory_space<vmem>>, vector<1x1x512xf32>
    %166 = vector.shape_cast %165 : vector<1x1x512xf32> to vector<1x512xf32>
    %167 = vector.broadcast %166 : vector<1x512xf32> to vector<24x512xf32>
    %168 = arith.mulf %164, %167 : vector<24x512xf32>
    %c7_121 = arith.constant 7 : index
    %c0_122 = arith.constant 0 : index
    %c0_123 = arith.constant 0 : index
    %169 = vector.load %arg3[%c7_121, %c0_122, %c0_123] : memref<9x24x24xf32, #tpu.memory_space<vmem>>, vector<1x24x24xf32>
    %170 = vector.shape_cast %169 : vector<1x24x24xf32> to vector<24x24xf32>
    %cst_124 = arith.constant dense<0.000000e+00> : vector<24x512xf32>
    %171 = tpu.matmul %170, %168, %cst_124 {dimension_numbers = #tpu.dot_dimension_numbers<[1], [0], [0], [1], [0, 0, 1, 1], [], []>} : vector<24x24xf32>, vector<24x512xf32>, vector<24x512xf32> -> vector<24x512xf32>
    %172 = arith.addf %163, %171 : vector<24x512xf32>
    %c495_i32_125 = arith.constant 495 : i32
    %173 = tpu.dynamic_rotate %104 by %c495_i32_125 dim 1 : vector<24x512xf32>, i32 -> vector<24x512xf32>
    %c8_126 = arith.constant 8 : index
    %c0_127 = arith.constant 0 : index
    %c0_128 = arith.constant 0 : index
    %174 = vector.load %arg1[%c8_126, %c0_127, %c0_128] : memref<9x1x512xf32, #tpu.memory_space<vmem>>, vector<1x1x512xf32>
    %175 = vector.shape_cast %174 : vector<1x1x512xf32> to vector<1x512xf32>
    %176 = vector.broadcast %175 : vector<1x512xf32> to vector<24x512xf32>
    %177 = arith.mulf %173, %176 : vector<24x512xf32>
    %c8_129 = arith.constant 8 : index
    %c0_130 = arith.constant 0 : index
    %c0_131 = arith.constant 0 : index
    %178 = vector.load %arg3[%c8_129, %c0_130, %c0_131] : memref<9x24x24xf32, #tpu.memory_space<vmem>>, vector<1x24x24xf32>
    %179 = vector.shape_cast %178 : vector<1x24x24xf32> to vector<24x24xf32>
    %cst_132 = arith.constant dense<0.000000e+00> : vector<24x512xf32>
    %180 = tpu.matmul %179, %177, %cst_132 {dimension_numbers = #tpu.dot_dimension_numbers<[1], [0], [0], [1], [0, 0, 1, 1], [], []>} : vector<24x24xf32>, vector<24x512xf32>, vector<24x512xf32> -> vector<24x512xf32>
    %181 = arith.addf %172, %180 : vector<24x512xf32>
    %cst_133 = arith.constant dense<0.000000e+00> : vector<24xf32>
    %182 = vector.multi_reduction <add>, %181, %cst_133 [1] : vector<24x512xf32> to vector<24xf32>
    %183 = vector.shape_cast %182 : vector<24xf32> to vector<24x1xf32>
    %cst_134 = arith.constant 0.001953125 : f32
    %184 = vector.broadcast %cst_134 : f32 to vector<24x1xf32>
    %185 = arith.mulf %183, %184 : vector<24x1xf32>
    %186 = arith.mulf %181, %181 : vector<24x512xf32>
    %cst_135 = arith.constant dense<0.000000e+00> : vector<24xf32>
    %187 = vector.multi_reduction <add>, %186, %cst_135 [1] : vector<24x512xf32> to vector<24xf32>
    %188 = vector.shape_cast %187 : vector<24xf32> to vector<24x1xf32>
    %cst_136 = arith.constant 0.001953125 : f32
    %189 = vector.broadcast %cst_136 : f32 to vector<24x1xf32>
    %190 = arith.mulf %188, %189 : vector<24x1xf32>
    %191 = arith.mulf %185, %185 : vector<24x1xf32>
    %192 = arith.subf %190, %191 : vector<24x1xf32>
    %cst_137 = arith.constant 0.000000e+00 : f32
    %193 = vector.broadcast %cst_137 : f32 to vector<24x1xf32>
    %194 = arith.maximumf %192, %193 : vector<24x1xf32>
    %c0_138 = arith.constant 0 : index
    %c0_139 = arith.constant 0 : index
    %195 = vector.load %arg7[%c0_138, %c0_139] : memref<24x1xf32, #tpu.memory_space<vmem>>, vector<24x1xf32>
    %cst_140 = arith.constant 9.99999974E-6 : f32
    %196 = vector.broadcast %cst_140 : f32 to vector<24x1xf32>
    %197 = arith.addf %194, %196 : vector<24x1xf32>
    %198 = math.rsqrt %197 : vector<24x1xf32>
    %199 = arith.mulf %195, %198 : vector<24x1xf32>
    %c0_141 = arith.constant 0 : index
    %c0_142 = arith.constant 0 : index
    %200 = vector.load %arg8[%c0_141, %c0_142] : memref<24x1xf32, #tpu.memory_space<vmem>>, vector<24x1xf32>
    %201 = arith.mulf %185, %199 : vector<24x1xf32>
    %202 = arith.subf %200, %201 : vector<24x1xf32>
    %203 = vector.broadcast %199 : vector<24x1xf32> to vector<24x512xf32>
    %204 = arith.mulf %181, %203 : vector<24x512xf32>
    %205 = vector.broadcast %202 : vector<24x1xf32> to vector<24x512xf32>
    %206 = arith.addf %204, %205 : vector<24x512xf32>
    %cst_143 = arith.constant 0.000000e+00 : f32
    %207 = vector.broadcast %cst_143 : f32 to vector<24x512xf32>
    %208 = arith.maximumf %206, %207 : vector<24x512xf32>
    %cst_144 = arith.constant 0.000000e+00 : f32
    %209 = vector.broadcast %cst_144 : f32 to vector<32x512xf32>
    %c17_i32_145 = arith.constant 17 : i32
    %210 = tpu.dynamic_rotate %208 by %c17_i32_145 dim 1 : vector<24x512xf32>, i32 -> vector<24x512xf32>
    %c0_146 = arith.constant 0 : index
    %c0_147 = arith.constant 0 : index
    %c0_148 = arith.constant 0 : index
    %211 = vector.load %arg1[%c0_146, %c0_147, %c0_148] : memref<9x1x512xf32, #tpu.memory_space<vmem>>, vector<1x1x512xf32>
    %212 = vector.shape_cast %211 : vector<1x1x512xf32> to vector<1x512xf32>
    %213 = vector.broadcast %212 : vector<1x512xf32> to vector<24x512xf32>
    %214 = arith.mulf %210, %213 : vector<24x512xf32>
    %c0_149 = arith.constant 0 : index
    %c0_150 = arith.constant 0 : index
    %c0_151 = arith.constant 0 : index
    %215 = vector.load %arg4[%c0_149, %c0_150, %c0_151] : memref<9x32x24xf32, #tpu.memory_space<vmem>>, vector<1x32x24xf32>
    %216 = vector.shape_cast %215 : vector<1x32x24xf32> to vector<32x24xf32>
    %cst_152 = arith.constant dense<0.000000e+00> : vector<32x512xf32>
    %217 = tpu.matmul %216, %214, %cst_152 {dimension_numbers = #tpu.dot_dimension_numbers<[1], [0], [0], [1], [0, 0, 1, 1], [], []>} : vector<32x24xf32>, vector<24x512xf32>, vector<32x512xf32> -> vector<32x512xf32>
    %218 = arith.addf %209, %217 : vector<32x512xf32>
    %c16_i32_153 = arith.constant 16 : i32
    %219 = tpu.dynamic_rotate %208 by %c16_i32_153 dim 1 : vector<24x512xf32>, i32 -> vector<24x512xf32>
    %c1_154 = arith.constant 1 : index
    %c0_155 = arith.constant 0 : index
    %c0_156 = arith.constant 0 : index
    %220 = vector.load %arg1[%c1_154, %c0_155, %c0_156] : memref<9x1x512xf32, #tpu.memory_space<vmem>>, vector<1x1x512xf32>
    %221 = vector.shape_cast %220 : vector<1x1x512xf32> to vector<1x512xf32>
    %222 = vector.broadcast %221 : vector<1x512xf32> to vector<24x512xf32>
    %223 = arith.mulf %219, %222 : vector<24x512xf32>
    %c1_157 = arith.constant 1 : index
    %c0_158 = arith.constant 0 : index
    %c0_159 = arith.constant 0 : index
    %224 = vector.load %arg4[%c1_157, %c0_158, %c0_159] : memref<9x32x24xf32, #tpu.memory_space<vmem>>, vector<1x32x24xf32>
    %225 = vector.shape_cast %224 : vector<1x32x24xf32> to vector<32x24xf32>
    %cst_160 = arith.constant dense<0.000000e+00> : vector<32x512xf32>
    %226 = tpu.matmul %225, %223, %cst_160 {dimension_numbers = #tpu.dot_dimension_numbers<[1], [0], [0], [1], [0, 0, 1, 1], [], []>} : vector<32x24xf32>, vector<24x512xf32>, vector<32x512xf32> -> vector<32x512xf32>
    %227 = arith.addf %218, %226 : vector<32x512xf32>
    %c15_i32_161 = arith.constant 15 : i32
    %228 = tpu.dynamic_rotate %208 by %c15_i32_161 dim 1 : vector<24x512xf32>, i32 -> vector<24x512xf32>
    %c2_162 = arith.constant 2 : index
    %c0_163 = arith.constant 0 : index
    %c0_164 = arith.constant 0 : index
    %229 = vector.load %arg1[%c2_162, %c0_163, %c0_164] : memref<9x1x512xf32, #tpu.memory_space<vmem>>, vector<1x1x512xf32>
    %230 = vector.shape_cast %229 : vector<1x1x512xf32> to vector<1x512xf32>
    %231 = vector.broadcast %230 : vector<1x512xf32> to vector<24x512xf32>
    %232 = arith.mulf %228, %231 : vector<24x512xf32>
    %c2_165 = arith.constant 2 : index
    %c0_166 = arith.constant 0 : index
    %c0_167 = arith.constant 0 : index
    %233 = vector.load %arg4[%c2_165, %c0_166, %c0_167] : memref<9x32x24xf32, #tpu.memory_space<vmem>>, vector<1x32x24xf32>
    %234 = vector.shape_cast %233 : vector<1x32x24xf32> to vector<32x24xf32>
    %cst_168 = arith.constant dense<0.000000e+00> : vector<32x512xf32>
    %235 = tpu.matmul %234, %232, %cst_168 {dimension_numbers = #tpu.dot_dimension_numbers<[1], [0], [0], [1], [0, 0, 1, 1], [], []>} : vector<32x24xf32>, vector<24x512xf32>, vector<32x512xf32> -> vector<32x512xf32>
    %236 = arith.addf %227, %235 : vector<32x512xf32>
    %c1_i32_169 = arith.constant 1 : i32
    %237 = tpu.dynamic_rotate %208 by %c1_i32_169 dim 1 : vector<24x512xf32>, i32 -> vector<24x512xf32>
    %c3_170 = arith.constant 3 : index
    %c0_171 = arith.constant 0 : index
    %c0_172 = arith.constant 0 : index
    %238 = vector.load %arg1[%c3_170, %c0_171, %c0_172] : memref<9x1x512xf32, #tpu.memory_space<vmem>>, vector<1x1x512xf32>
    %239 = vector.shape_cast %238 : vector<1x1x512xf32> to vector<1x512xf32>
    %240 = vector.broadcast %239 : vector<1x512xf32> to vector<24x512xf32>
    %241 = arith.mulf %237, %240 : vector<24x512xf32>
    %c3_173 = arith.constant 3 : index
    %c0_174 = arith.constant 0 : index
    %c0_175 = arith.constant 0 : index
    %242 = vector.load %arg4[%c3_173, %c0_174, %c0_175] : memref<9x32x24xf32, #tpu.memory_space<vmem>>, vector<1x32x24xf32>
    %243 = vector.shape_cast %242 : vector<1x32x24xf32> to vector<32x24xf32>
    %cst_176 = arith.constant dense<0.000000e+00> : vector<32x512xf32>
    %244 = tpu.matmul %243, %241, %cst_176 {dimension_numbers = #tpu.dot_dimension_numbers<[1], [0], [0], [1], [0, 0, 1, 1], [], []>} : vector<32x24xf32>, vector<24x512xf32>, vector<32x512xf32> -> vector<32x512xf32>
    %245 = arith.addf %236, %244 : vector<32x512xf32>
    %c4_177 = arith.constant 4 : index
    %c0_178 = arith.constant 0 : index
    %c0_179 = arith.constant 0 : index
    %246 = vector.load %arg4[%c4_177, %c0_178, %c0_179] : memref<9x32x24xf32, #tpu.memory_space<vmem>>, vector<1x32x24xf32>
    %247 = vector.shape_cast %246 : vector<1x32x24xf32> to vector<32x24xf32>
    %cst_180 = arith.constant dense<0.000000e+00> : vector<32x512xf32>
    %248 = tpu.matmul %247, %208, %cst_180 {dimension_numbers = #tpu.dot_dimension_numbers<[1], [0], [0], [1], [0, 0, 1, 1], [], []>} : vector<32x24xf32>, vector<24x512xf32>, vector<32x512xf32> -> vector<32x512xf32>
    %249 = arith.addf %245, %248 : vector<32x512xf32>
    %c511_i32_181 = arith.constant 511 : i32
    %250 = tpu.dynamic_rotate %208 by %c511_i32_181 dim 1 : vector<24x512xf32>, i32 -> vector<24x512xf32>
    %c5_182 = arith.constant 5 : index
    %c0_183 = arith.constant 0 : index
    %c0_184 = arith.constant 0 : index
    %251 = vector.load %arg1[%c5_182, %c0_183, %c0_184] : memref<9x1x512xf32, #tpu.memory_space<vmem>>, vector<1x1x512xf32>
    %252 = vector.shape_cast %251 : vector<1x1x512xf32> to vector<1x512xf32>
    %253 = vector.broadcast %252 : vector<1x512xf32> to vector<24x512xf32>
    %254 = arith.mulf %250, %253 : vector<24x512xf32>
    %c5_185 = arith.constant 5 : index
    %c0_186 = arith.constant 0 : index
    %c0_187 = arith.constant 0 : index
    %255 = vector.load %arg4[%c5_185, %c0_186, %c0_187] : memref<9x32x24xf32, #tpu.memory_space<vmem>>, vector<1x32x24xf32>
    %256 = vector.shape_cast %255 : vector<1x32x24xf32> to vector<32x24xf32>
    %cst_188 = arith.constant dense<0.000000e+00> : vector<32x512xf32>
    %257 = tpu.matmul %256, %254, %cst_188 {dimension_numbers = #tpu.dot_dimension_numbers<[1], [0], [0], [1], [0, 0, 1, 1], [], []>} : vector<32x24xf32>, vector<24x512xf32>, vector<32x512xf32> -> vector<32x512xf32>
    %258 = arith.addf %249, %257 : vector<32x512xf32>
    %c497_i32_189 = arith.constant 497 : i32
    %259 = tpu.dynamic_rotate %208 by %c497_i32_189 dim 1 : vector<24x512xf32>, i32 -> vector<24x512xf32>
    %c6_190 = arith.constant 6 : index
    %c0_191 = arith.constant 0 : index
    %c0_192 = arith.constant 0 : index
    %260 = vector.load %arg1[%c6_190, %c0_191, %c0_192] : memref<9x1x512xf32, #tpu.memory_space<vmem>>, vector<1x1x512xf32>
    %261 = vector.shape_cast %260 : vector<1x1x512xf32> to vector<1x512xf32>
    %262 = vector.broadcast %261 : vector<1x512xf32> to vector<24x512xf32>
    %263 = arith.mulf %259, %262 : vector<24x512xf32>
    %c6_193 = arith.constant 6 : index
    %c0_194 = arith.constant 0 : index
    %c0_195 = arith.constant 0 : index
    %264 = vector.load %arg4[%c6_193, %c0_194, %c0_195] : memref<9x32x24xf32, #tpu.memory_space<vmem>>, vector<1x32x24xf32>
    %265 = vector.shape_cast %264 : vector<1x32x24xf32> to vector<32x24xf32>
    %cst_196 = arith.constant dense<0.000000e+00> : vector<32x512xf32>
    %266 = tpu.matmul %265, %263, %cst_196 {dimension_numbers = #tpu.dot_dimension_numbers<[1], [0], [0], [1], [0, 0, 1, 1], [], []>} : vector<32x24xf32>, vector<24x512xf32>, vector<32x512xf32> -> vector<32x512xf32>
    %267 = arith.addf %258, %266 : vector<32x512xf32>
    %c496_i32_197 = arith.constant 496 : i32
    %268 = tpu.dynamic_rotate %208 by %c496_i32_197 dim 1 : vector<24x512xf32>, i32 -> vector<24x512xf32>
    %c7_198 = arith.constant 7 : index
    %c0_199 = arith.constant 0 : index
    %c0_200 = arith.constant 0 : index
    %269 = vector.load %arg1[%c7_198, %c0_199, %c0_200] : memref<9x1x512xf32, #tpu.memory_space<vmem>>, vector<1x1x512xf32>
    %270 = vector.shape_cast %269 : vector<1x1x512xf32> to vector<1x512xf32>
    %271 = vector.broadcast %270 : vector<1x512xf32> to vector<24x512xf32>
    %272 = arith.mulf %268, %271 : vector<24x512xf32>
    %c7_201 = arith.constant 7 : index
    %c0_202 = arith.constant 0 : index
    %c0_203 = arith.constant 0 : index
    %273 = vector.load %arg4[%c7_201, %c0_202, %c0_203] : memref<9x32x24xf32, #tpu.memory_space<vmem>>, vector<1x32x24xf32>
    %274 = vector.shape_cast %273 : vector<1x32x24xf32> to vector<32x24xf32>
    %cst_204 = arith.constant dense<0.000000e+00> : vector<32x512xf32>
    %275 = tpu.matmul %274, %272, %cst_204 {dimension_numbers = #tpu.dot_dimension_numbers<[1], [0], [0], [1], [0, 0, 1, 1], [], []>} : vector<32x24xf32>, vector<24x512xf32>, vector<32x512xf32> -> vector<32x512xf32>
    %276 = arith.addf %267, %275 : vector<32x512xf32>
    %c495_i32_205 = arith.constant 495 : i32
    %277 = tpu.dynamic_rotate %208 by %c495_i32_205 dim 1 : vector<24x512xf32>, i32 -> vector<24x512xf32>
    %c8_206 = arith.constant 8 : index
    %c0_207 = arith.constant 0 : index
    %c0_208 = arith.constant 0 : index
    %278 = vector.load %arg1[%c8_206, %c0_207, %c0_208] : memref<9x1x512xf32, #tpu.memory_space<vmem>>, vector<1x1x512xf32>
    %279 = vector.shape_cast %278 : vector<1x1x512xf32> to vector<1x512xf32>
    %280 = vector.broadcast %279 : vector<1x512xf32> to vector<24x512xf32>
    %281 = arith.mulf %277, %280 : vector<24x512xf32>
    %c8_209 = arith.constant 8 : index
    %c0_210 = arith.constant 0 : index
    %c0_211 = arith.constant 0 : index
    %282 = vector.load %arg4[%c8_209, %c0_210, %c0_211] : memref<9x32x24xf32, #tpu.memory_space<vmem>>, vector<1x32x24xf32>
    %283 = vector.shape_cast %282 : vector<1x32x24xf32> to vector<32x24xf32>
    %cst_212 = arith.constant dense<0.000000e+00> : vector<32x512xf32>
    %284 = tpu.matmul %283, %281, %cst_212 {dimension_numbers = #tpu.dot_dimension_numbers<[1], [0], [0], [1], [0, 0, 1, 1], [], []>} : vector<32x24xf32>, vector<24x512xf32>, vector<32x512xf32> -> vector<32x512xf32>
    %285 = arith.addf %276, %284 : vector<32x512xf32>
    %cst_213 = arith.constant dense<0.000000e+00> : vector<32xf32>
    %286 = vector.multi_reduction <add>, %285, %cst_213 [1] : vector<32x512xf32> to vector<32xf32>
    %287 = vector.shape_cast %286 : vector<32xf32> to vector<32x1xf32>
    %cst_214 = arith.constant 0.001953125 : f32
    %288 = vector.broadcast %cst_214 : f32 to vector<32x1xf32>
    %289 = arith.mulf %287, %288 : vector<32x1xf32>
    %290 = arith.mulf %285, %285 : vector<32x512xf32>
    %cst_215 = arith.constant dense<0.000000e+00> : vector<32xf32>
    %291 = vector.multi_reduction <add>, %290, %cst_215 [1] : vector<32x512xf32> to vector<32xf32>
    %292 = vector.shape_cast %291 : vector<32xf32> to vector<32x1xf32>
    %cst_216 = arith.constant 0.001953125 : f32
    %293 = vector.broadcast %cst_216 : f32 to vector<32x1xf32>
    %294 = arith.mulf %292, %293 : vector<32x1xf32>
    %295 = arith.mulf %289, %289 : vector<32x1xf32>
    %296 = arith.subf %294, %295 : vector<32x1xf32>
    %cst_217 = arith.constant 0.000000e+00 : f32
    %297 = vector.broadcast %cst_217 : f32 to vector<32x1xf32>
    %298 = arith.maximumf %296, %297 : vector<32x1xf32>
    %c0_218 = arith.constant 0 : index
    %c0_219 = arith.constant 0 : index
    %299 = vector.load %arg9[%c0_218, %c0_219] : memref<32x1xf32, #tpu.memory_space<vmem>>, vector<32x1xf32>
    %cst_220 = arith.constant 9.99999974E-6 : f32
    %300 = vector.broadcast %cst_220 : f32 to vector<32x1xf32>
    %301 = arith.addf %298, %300 : vector<32x1xf32>
    %302 = math.rsqrt %301 : vector<32x1xf32>
    %303 = arith.mulf %299, %302 : vector<32x1xf32>
    %c0_221 = arith.constant 0 : index
    %c0_222 = arith.constant 0 : index
    %304 = vector.load %arg10[%c0_221, %c0_222] : memref<32x1xf32, #tpu.memory_space<vmem>>, vector<32x1xf32>
    %305 = arith.mulf %289, %303 : vector<32x1xf32>
    %306 = arith.subf %304, %305 : vector<32x1xf32>
    %307 = vector.broadcast %303 : vector<32x1xf32> to vector<32x512xf32>
    %308 = arith.mulf %285, %307 : vector<32x512xf32>
    %309 = vector.broadcast %306 : vector<32x1xf32> to vector<32x512xf32>
    %310 = arith.addf %308, %309 : vector<32x512xf32>
    %cst_223 = arith.constant 0.000000e+00 : f32
    %311 = vector.broadcast %cst_223 : f32 to vector<32x512xf32>
    %312 = arith.maximumf %310, %311 : vector<32x512xf32>
    %c0_224 = arith.constant 0 : index
    %c0_225 = arith.constant 0 : index
    %313 = vector.load %arg11[%c0_224, %c0_225] : memref<32x512xf32, #tpu.memory_space<vmem>>, vector<32x512xf32>
    tpu.vector_store %arg11[%c0_224, %c0_225], %312 {strides = array<i32>} : memref<32x512xf32, #tpu.memory_space<vmem>>, vector<32x512xf32>,
    return
  }
}

</mosaic_0001>

<bundles_post_ra>
// kernel: encoder_forward.1
= control target key start
LH: loop header
LB: loop body
LE: loop exit
PB: predicated region body
PF: predicated region fallthrough
CT: control target
= control target key end

     0   :  { %v10472_v2 = vmov 0.0   ;;  %s7651_s21 = smov 16   ;;  %s7652_s26 = smov 17   ;;  %v50_v5 = vlaneseq  ;;  %vm130_vm2 = vcmask 64512   ;;  %vm2305_vm9 = vcmask 195584   ;;  %s10460_s0 = inlined_call_operand.vmem [shape: f32[8,512], index: 0, kind: input, shape index: {}]   ;;  %s10461_s1 = inlined_call_operand.vmem [shape: f32[9,1,512], index: 1, kind: input, shape index: {}]   ;;  %s10462_s2 = inlined_call_operand.vmem [shape: f32[9,24,8], index: 2, kind: input, shape index: {}]   ;;  %s10463_s5 = inlined_call_operand.vmem [shape: f32[24,1], index: 5, kind: input, shape index: {}]   ;;  %s10464_s6 = inlined_call_operand.vmem [shape: f32[24,1], index: 6, kind: input, shape index: {}]   ;;  %s10465_s3 = inlined_call_operand.vmem [shape: f32[9,24,24], index: 3, kind: input, shape index: {}]   ;;  %s10466_s7 = inlined_call_operand.vmem [shape: f32[24,1], index: 7, kind: input, shape index: {}]   ;;  %s10467_s8 = inlined_call_operand.vmem [shape: f32[24,1], index: 8, kind: input, shape index: {}]   ;;  %s10468_s4 = inlined_call_operand.vmem [shape: f32[9,32,24], index: 4, kind: input, shape index: {}]   ;;  %s10469_s9 = inlined_call_operand.vmem [shape: f32[32,1], index: 9, kind: input, shape index: {}]   ;;  %s10470_s10 = inlined_call_operand.vmem [shape: f32[32,1], index: 10, kind: input, shape index: {}]   ;;  %s10471_s11 = inlined_call_operand.vmem [shape: f32[32,512], index: 11, kind: output, shape index: {}]  }
   0x1   :  { %v7723_v0 = vld [vmem:[%s10460_s0 + $0x18] sm:$0xff]  ;;  %v7728_v1 = vld [vmem:[%s10460_s0] sm:$0xff]  ;;  %204 = vmatprep.mubr.f32.mxu0 %v10472_v2  ;;  %287 = vmatprep.mubr.f32.mxu1 %v10472_v2  ;;  %v7739_v3 = vld [vmem:[%s10460_s0 + $0x10] sm:$0xff]  ;;  %s7654_s27 = smov 1   ;;  %s7655_s28 = smov 127  }
   0x2   :  { %92 = vrot.lane.b32.xlu1 %v7723_v0, %s7651_s21  ;;  %86 = vrot.lane.b32.xlu0 %v7728_v1, %s7651_s21  ;;  %v7744_v4 = vld [vmem:[%s10460_s0 + $0x8] sm:$0xff]  ;;  %s7653_s0 = smov 15   ;;  %s7656_s29 = smov 113   ;;  %v60_v6 = vshrl.u32 %v50_v5, 7  ;;  %v7806_v7 = vand.u32 127, %v50_v5  ;;  %v6888_v31 = vld [vmem:[%s10462_s2 + $0x18] sm:$0xff] }
   0x3   :  { %s7657_s30 = smov 112   ;;  %s7658_s12 = smov 111   ;;  %v6887_v14 = vld [vmem:[%s10461_s1 + $0x4] sm:$0xf]  ;;  %v57_v19 = vld [vmem:[%s10461_s1] sm:$0xf] }
   0x4   :  { %v7808_v8 = vsub.s32 3, %v60_v6  ;;  %v7810_v9 = vsub.s32 1, %v60_v6  ;;  %v7812_v10 = vsub.s32 2, %v60_v6  ;;  %v7814_v11 = vsub.s32 0, %v60_v6  ;;  %v6903_v39 = vld [vmem:[%s10461_s1 + $0x8] sm:$0xf] }
   0x5   :  { %vm94_vm0 = vcmp.lt.s32.totalorder %v7806_v7, 16  ;;  %vm52_vm1 = vcmp.lt.s32.totalorder %v7806_v7, 17  ;;  %v6889_v40 = vld [vmem:[%s10462_s2 + $0x20] sm:$0xff]  ;;  %vm489_vm3 = vcmp.lt.s32.totalorder %v7806_v7, 15  ;;  %v6890_v50 = vld [vmem:[%s10462_s2 + $0x28] sm:$0xff]  ;;  %vm720_vm4 = vcmp.lt.s32.totalorder %v7806_v7, 1 }
   0x6   :  { %90 = vrot.lane.b32.xlu1 %v7739_v3, %s7651_s21  ;;  %88 = vrot.lane.b32.xlu0 %v7744_v4, %s7651_s21  ;;  %v7821_v15 = vrot.slane %v6887_v14, %v7808_v8  ;;  %v7824_v16 = vrot.slane %v6887_v14, %v7810_v9  ;;  %v7827_v17 = vrot.slane %v6887_v14, %v7812_v10  ;;  %v6913_v58 = vld [vmem:[%s10461_s1 + $0xc] sm:$0xf]  ;;  %v83_v59 = vld [vmem:[%s10462_s2] sm:$0xff]  ;;  %vm1142_vm5 = vcmp.lt.s32.totalorder %v7806_v7, 127 }
   0x7   :  { %v7830_v18 = vrot.slane %v6887_v14, %v7814_v11  ;;  %v7848_v29 = vrot.slane %v57_v19, %v7810_v9  ;;  %v7857_v35 = vrot.slane %v57_v19, %v7808_v8  ;;  %v7862_v36 = vrot.slane %v57_v19, %v7812_v10 }
   0x8   :  { %10543 = vst [vmem:[#allocation2_spill] sm:$0xff] %v7824_v16  ;;  %v7865_v37 = vrot.slane %v57_v19, %v7814_v11  ;;  %v7883_v46 = vrot.slane %v6903_v39, %v7810_v9  ;;  %v7899_v54 = vrot.slane %v6903_v39, %v7814_v11  ;;  %v7904_v55 = vrot.slane %v6903_v39, %v7812_v10  ;;  %v84_v19 = vld [vmem:[%s10462_s2 + $0x8] sm:$0xff] }
   0x9   :  { %10544 = vst [vmem:[#allocation3_spill] sm:$0xff] %v7830_v18  ;;  %v7908_v57 = vrot.slane %v6903_v39, %v7808_v8  ;;  %v7925_v6 = vrot.slane %v6913_v58, %v7810_v9  ;;  %vm1373_vm6 = vcmp.lt.s32.totalorder %v7806_v7, 113  ;;  %vm1604_vm7 = vcmp.lt.s32.totalorder %v7806_v7, 112 }
   0xa   :  { %44 = vrot.lane.b32.xlu1 %v7744_v4, %s7652_s26  ;;  %42 = vrot.lane.b32.xlu0 %v7728_v1, %s7652_s26  ;;  %vm1835_vm8 = vcmp.lt.s32.totalorder %v7806_v7, 111  ;;  %v7144_v7 = vld [vmem:[%s10468_s4 + $0x110] sm:$0xff] }
   0xe   :  { %46 = vrot.lane.b32.xlu1 %v7739_v3, %s7652_s26  ;;  %48 = vrot.lane.b32.xlu0 %v7723_v0, %s7652_s26 }
  0x12   :  { %481 = vrot.lane.b32.xlu0 %v7728_v1, %s7653_s0  ;;  %483 = vrot.lane.b32.xlu1 %v7744_v4, %s7653_s0 }
  0x16   :  { %487 = vrot.lane.b32.xlu0 %v7723_v0, %s7653_s0  ;;  %485 = vrot.lane.b32.xlu1 %v7739_v3, %s7653_s0 }
  0x1a   :  { %712 = vrot.lane.b32.xlu0 %v7728_v1, %s7654_s27  ;;  %714 = vrot.lane.b32.xlu1 %v7744_v4, %s7654_s27 }
  0x1e   :  { %718 = vrot.lane.b32.xlu0 %v7723_v0, %s7654_s27  ;;  %716 = vrot.lane.b32.xlu1 %v7739_v3, %s7654_s27 }
  0x22   :  { %1136 = vrot.lane.b32.xlu0 %v7744_v4, %s7655_s28  ;;  %1138 = vrot.lane.b32.xlu1 %v7739_v3, %s7655_s28 }
  0x26   :  { %1134 = vrot.lane.b32.xlu0 %v7728_v1, %s7655_s28  ;;  %1140 = vrot.lane.b32.xlu1 %v7723_v0, %s7655_s28 }
  0x2a   :  { %1367 = vrot.lane.b32.xlu0 %v7744_v4, %s7656_s29  ;;  %1369 = vrot.lane.b32.xlu1 %v7739_v3, %s7656_s29 }
  0x2e   :  { %1365 = vrot.lane.b32.xlu0 %v7728_v1, %s7656_s29  ;;  %1371 = vrot.lane.b32.xlu1 %v7723_v0, %s7656_s29 }
  0x32   :  { %1598 = vrot.lane.b32.xlu0 %v7744_v4, %s7657_s30  ;;  %1600 = vrot.lane.b32.xlu1 %v7739_v3, %s7657_s30 }
  0x36   :  { %1596 = vrot.lane.b32.xlu0 %v7728_v1, %s7657_s30  ;;  %1602 = vrot.lane.b32.xlu1 %v7723_v0, %s7657_s30 }
  0x3a   :  { %1829 = vrot.lane.b32.xlu0 %v7744_v4, %s7658_s12  ;;  %1831 = vrot.lane.b32.xlu1 %v7739_v3, %s7658_s12 }
  0x3e   :  { %1827 = vrot.lane.b32.xlu0 %v7728_v1, %s7658_s12  ;;  %1833 = vrot.lane.b32.xlu1 %v7723_v0, %s7658_s12 }
  0x74   :  { %v93_v12 = vpop.permute.xlu1 %92  ;;  %v87_v13 = vpop.permute.xlu0 %86 }
  0x75   :  { %v98_v22 = vsel %vm94_vm0, %v93_v12, %v87_v13 }
  0x76   :  { %v122_v30 = vmul.f32 %v7830_v18, %v98_v22 }
  0x78   :  { %v91_v20 = vpop.permute.xlu1 %90  ;;  %v89_v21 = vpop.permute.xlu0 %88 }
  0x79   :  { %v95_v23 = vsel %vm94_vm0, %v91_v20, %v93_v12  ;;  %v97_v24 = vsel %vm94_vm0, %v87_v13, %v89_v21  ;;  %v96_v25 = vsel %vm94_vm0, %v89_v21, %v91_v20 }
  0x7a   :  { %v125_v26 = vmul.f32 %v7821_v15, %v95_v23  ;;  %v123_v27 = vmul.f32 %v7824_v16, %v97_v24  ;;  %v124_v28 = vmul.f32 %v7827_v17, %v96_v25  ;;  %v7944_v24 = vrot.slane %v6913_v58, %v7808_v8  ;;  %v85_v25 = vld [vmem:[%s10462_s2 + $0x10] sm:$0xff] }
  0x7c   :  { %223 = vmatprep.subr.mxu1 %v125_v26  ;;  %v45_v32 = vpop.permute.xlu1 %44  ;;  %140 = vmatprep.subr.mxu0 %v123_v27  ;;  %v43_v33 = vpop.permute.xlu0 %42  ;;  %v7952_v26 = vrot.slane %v6913_v58, %v7814_v11 }
  0x7d   :  { %v55_v34 = vsel %vm52_vm1, %v43_v33, %v45_v32  ;;  %141 = vmatpush1.msra.mxu0 %v122_v30  ;;  %224 = vmatpush1.msra.mxu1 %v124_v28  ;;  %v7955_v28 = vrot.slane %v6913_v58, %v7812_v10 }
  0x7e   :  { %6891 = vmatmul.mubr.msk.f32.vlgmr.msra.gmra.mrb[0].mxu0 %vm130_vm2, %v6888_v31  ;;  %6894 = vmatmul.mubr.msk.f32.vlgmr.msra.gmra.mrb[0].mxu1 %vm130_vm2, %v6888_v31  ;;  %v80_v38 = vmul.f32 %v7848_v29, %v55_v34 }
  0x7f   :  { %210 = vmatprep.mubr.f32.mxu0 %v10472_v2  ;;  %293 = vmatprep.mubr.f32.mxu1 %v10472_v2 }
  0x80   :  { %v47_v41 = vpop.permute.xlu1 %46  ;;  %v49_v42 = vpop.permute.xlu0 %48  ;;  %315 = vmatprep.subr.mxu0 %v80_v38  ;;  %v6904_v38 = vld [vmem:[%s10462_s2 + $0x30] sm:$0xff] }
  0x81   :  { %v54_v43 = vsel %vm52_vm1, %v45_v32, %v47_v41  ;;  %v53_v44 = vsel %vm52_vm1, %v47_v41, %v49_v42  ;;  %v56_v45 = vsel %vm52_vm1, %v49_v42, %v43_v33 }
  0x82   :  { %v81_v47 = vmul.f32 %v7862_v36, %v54_v43  ;;  %v79_v48 = vmul.f32 %v7865_v37, %v56_v45  ;;  %6892 = vmatmul.mubr.msk.f32.gmra.mrb[2].mxu0 %vm130_vm2, %v6889_v40  ;;  %6895 = vmatmul.mubr.msk.f32.gmra.mrb[2].mxu1 %vm130_vm2, %v6889_v40  ;;  %v82_v49 = vmul.f32 %v7857_v35, %v53_v44  ;;  %v6905_v43 = vld [vmem:[%s10462_s2 + $0x38] sm:$0xff]  ;;  %v6932_v44 = vld [vmem:[%s10461_s1 + $0x14] sm:$0xf] }
  0x83   :  { %216 = vmatprep.mubr.f32.mxu0 %v10472_v2  ;;  %299 = vmatprep.mubr.f32.mxu1 %v10472_v2 }
  0x84   :  { %316 = vmatpush1.msra.mxu0 %v79_v48  ;;  %398 = vmatprep.subr.mxu1 %v82_v49  ;;  %v482_v51 = vpop.permute.xlu0 %481  ;;  %v484_v52 = vpop.permute.xlu1 %483  ;;  %v7997_v48 = vrot.slane %v6932_v44, %v7808_v8 }
  0x85   :  { %399 = vmatpush1.msra.mxu1 %v81_v47  ;;  %v492_v53 = vsel %vm489_vm3, %v482_v51, %v484_v52  ;;  %v7994_v47 = vrot.slane %v6932_v44, %v7810_v9 }
  0x86   :  { %6893 = vmatmul.mubr.msk.f32.gmra.mrb[4].mxu0 %vm130_vm2, %v6890_v50  ;;  %6896 = vmatmul.mubr.msk.f32.gmra.mrb[4].mxu1 %vm130_vm2, %v6890_v50  ;;  %v518_v56 = vmul.f32 %v7883_v46, %v492_v53  ;;  %10546 = vst [vmem:[#allocation5_spill] sm:$0xff] %v7997_v48 }
  0x87   :  { %379 = vmatprep.mubr.f32.mxu0 %v10472_v2  ;;  %462 = vmatprep.mubr.f32.mxu1 %v10472_v2  ;;  %10545 = vst [vmem:[#allocation4_spill] sm:$0xff] %v7994_v47 }
  0x88   :  { %v488_v60 = vpop.permute.xlu0 %487  ;;  %v486_v61 = vpop.permute.xlu1 %485  ;;  %534 = vmatprep.subr.mxu0 %v518_v56 }
  0x89   :  { %v493_v62 = vsel %vm489_vm3, %v488_v60, %v482_v51  ;;  %v490_v63 = vsel %vm489_vm3, %v486_v61, %v488_v60  ;;  %v491_v5 = vsel %vm489_vm3, %v484_v52, %v486_v61  ;;  %v6914_v51 = vld [vmem:[%s10462_s2 + $0x48] sm:$0xff]  ;;  %v6942_v60 = vld [vmem:[%s10461_s1 + $0x18] sm:$0xf] }
  0x8a   :  { %6897 = vmatmul.mubr.msk.f32.vlgmr.msra.gmra.mrb[0].mxu0 %vm130_vm2, %v83_v59  ;;  %6900 = vmatmul.mubr.msk.f32.vlgmr.msra.gmra.mrb[0].mxu1 %vm130_vm2, %v83_v59  ;;  %v517_v12 = vmul.f32 %v7899_v54, %v493_v62  ;;  %v519_v13 = vmul.f32 %v7904_v55, %v491_v5  ;;  %v520_v14 = vmul.f32 %v7908_v57, %v490_v63  ;;  %v6915_v59 = vld [vmem:[%s10462_s2 + $0x50] sm:$0xff] }
  0x8b   :  { %385 = vmatprep.mubr.f32.mxu0 %v10472_v2  ;;  %468 = vmatprep.mubr.f32.mxu1 %v10472_v2  ;;  %v8033_v62 = vrot.slane %v6932_v44, %v7814_v11  ;;  %v8036_v63 = vrot.slane %v6932_v44, %v7812_v10 }
  0x8c   :  { %535 = vmatpush1.msra.mxu0 %v517_v12  ;;  %617 = vmatprep.subr.mxu1 %v520_v14  ;;  %v713_v20 = vpop.permute.xlu0 %712  ;;  %v715_v21 = vpop.permute.xlu1 %714  ;;  %v8046_v14 = vrot.slane %v6942_v60, %v7808_v8 }
  0x8d   :  { %618 = vmatpush1.msra.mxu1 %v519_v13  ;;  %v723_v22 = vsel %vm720_vm4, %v713_v20, %v715_v21  ;;  %10547 = vst [vmem:[#allocation6_spill] sm:$0xff] %v8033_v62  ;;  %10548 = vst [vmem:[#allocation7_spill] sm:$0xff] %v8036_v63  ;;  %v8043_v13 = vrot.slane %v6942_v60, %v7810_v9 }
  0x8e   :  { %6898 = vmatmul.mubr.msk.f32.gmra.mrb[2].mxu0 %vm130_vm2, %v84_v19  ;;  %6901 = vmatmul.mubr.msk.f32.gmra.mrb[2].mxu1 %vm130_vm2, %v84_v19  ;;  %v749_v23 = vmul.f32 %v7925_v6, %v723_v22  ;;  %10550 = vst [vmem:[#allocation9_spill] sm:$0xff] %v8046_v14 }
  0x8f   :  { %391 = vmatprep.mubr.f32.mxu0 %v10472_v2  ;;  %474 = vmatprep.mubr.f32.mxu1 %v10472_v2  ;;  %10549 = vst [vmem:[#allocation8_spill] sm:$0xff] %v8043_v13 }
  0x90   :  { %v719_v27 = vpop.permute.xlu0 %718  ;;  %v717_v30 = vpop.permute.xlu1 %716  ;;  %765 = vmatprep.subr.mxu0 %v749_v23 }
  0x91   :  { %v724_v31 = vsel %vm720_vm4, %v719_v27, %v713_v20  ;;  %v721_v32 = vsel %vm720_vm4, %v717_v30, %v719_v27  ;;  %v722_v33 = vsel %vm720_vm4, %v715_v21, %v717_v30  ;;  %v6923_v21 = vld [vmem:[%s10462_s2 + $0x60] sm:$0xff] }
  0x92   :  { %6899 = vmatmul.mubr.msk.f32.gmra.mrb[4].mxu0 %vm130_vm2, %v85_v25  ;;  %6902 = vmatmul.mubr.msk.f32.gmra.mrb[4].mxu1 %vm130_vm2, %v85_v25  ;;  %v751_v34 = vmul.f32 %v7944_v24, %v721_v32  ;;  %v748_v39 = vmul.f32 %v7952_v26, %v724_v31  ;;  %v750_v40 = vmul.f32 %v7955_v28, %v722_v33  ;;  %v6924_v32 = vld [vmem:[%s10462_s2 + $0x68] sm:$0xff]  ;;  %v6952_v33 = vld [vmem:[%s10461_s1 + $0x1c] sm:$0xf] }
  0x93   :  { %598 = vmatprep.mubr.f32.mxu0 %v10472_v2  ;;  %681 = vmatprep.mubr.f32.mxu1 %v10472_v2  ;;  %v8092_v44 = vrot.slane %v6952_v33, %v7810_v9 }
  0x94   :  { %848 = vmatprep.subr.mxu1 %v751_v34  ;;  %v1137_v41 = vpop.permute.xlu0 %1136  ;;  %v1139_v42 = vpop.permute.xlu1 %1138  ;;  %v6925_v34 = vld [vmem:[%s10462_s2 + $0x70] sm:$0xff] }
  0x95   :  { %v1144_v49 = vsel %vm1142_vm5, %v1137_v41, %v1139_v42  ;;  %10553 = vst [vmem:[#allocation12_spill] sm:$0xff] %v8092_v44 }
  0x96   :  { %6907 = vmatmul.mubr.msk.f32.vlgmr.msra.gmra.mrb[0].mxu0 %vm130_vm2, %v6904_v38  ;;  %6910 = vmatmul.mubr.msk.f32.vlgmr.msra.gmra.mrb[0].mxu1 %vm130_vm2, %v6904_v38  ;;  %v1171_v52 = vmul.f32 %v7994_v47, %v1144_v49  ;;  %v6933_v49 = vld [vmem:[%s10462_s2 + $0x78] sm:$0xff] }
  0x97   :  { %604 = vmatprep.mubr.f32.mxu0 %v10472_v2  ;;  %687 = vmatprep.mubr.f32.mxu1 %v10472_v2 }
  0x98   :  { %766 = vmatpush1.msra.mxu0 %v748_v39  ;;  %849 = vmatpush1.msra.mxu1 %v750_v40  ;;  %v1135_v45 = vpop.permute.xlu0 %1134  ;;  %v8082_v40 = vrot.slane %v6942_v60, %v7814_v11 }
  0x99   :  { %956 = vmatprep.subr.mxu0 %v7744_v4  ;;  %1039 = vmatprep.subr.mxu1 %v7723_v0  ;;  %v6906_v4 = vld [vmem:[%s10462_s2 + $0x40] sm:$0xff]  ;;  %v1141_v0 = vpop.permute.xlu1 %1140  ;;  %v1145_v5 = vsel %vm1142_vm5, %v1135_v45, %v1137_v41  ;;  %v8085_v41 = vrot.slane %v6942_v60, %v7812_v10 }
  0x9a   :  { %6908 = vmatmul.mubr.msk.f32.gmra.mrb[2].mxu0 %vm130_vm2, %v6905_v43  ;;  %6911 = vmatmul.mubr.msk.f32.gmra.mrb[2].mxu1 %vm130_vm2, %v6905_v43  ;;  %v1146_v50 = vsel %vm1142_vm5, %v1141_v0, %v1135_v45  ;;  %v1143_v12 = vsel %vm1142_vm5, %v1139_v42, %v1141_v0  ;;  %v1170_v22 = vmul.f32 %v8033_v62, %v1145_v5  ;;  %v6962_v60 = vld [vmem:[%s10461_s1 + $0x20] sm:$0xf] }
  0x9b   :  { %610 = vmatprep.mubr.f32.mxu0 %v10472_v2  ;;  %693 = vmatprep.mubr.f32.mxu1 %v10472_v2  ;;  %v1173_v53 = vmul.f32 %v7997_v48, %v1146_v50  ;;  %v1172_v23 = vmul.f32 %v8036_v63, %v1143_v12  ;;  %10551 = vst [vmem:[#allocation10_spill] sm:$0xff] %v8082_v40  ;;  %10552 = vst [vmem:[#allocation11_spill] sm:$0xff] %v8085_v41 }
  0x9c   :  { %v1368_v56 = vpop.permute.xlu0 %1367  ;;  %v8131_v5 = vrot.slane %v6952_v33, %v7814_v11  ;;  %v8134_v12 = vrot.slane %v6952_v33, %v7812_v10 }
  0x9d   :  { %v1370_v58 = vpop.permute.xlu1 %1369 }
  0x9e   :  { %6909 = vmatmul.mubr.msk.f32.gmra.mrb[4].mxu0 %vm130_vm2, %v6906_v4  ;;  %6912 = vmatmul.mubr.msk.f32.gmra.mrb[4].mxu1 %vm130_vm2, %v6906_v4  ;;  %v1375_v19 = vsel %vm1373_vm6, %v1368_v56, %v1370_v58  ;;  %v8095_v4 = vrot.slane %v6952_v33, %v7808_v8  ;;  %10555 = vst [vmem:[#allocation14_spill] sm:$0xff] %v8131_v5  ;;  %10556 = vst [vmem:[#allocation15_spill] sm:$0xff] %v8134_v12  ;;  %v6945_v33 = vld [vmem:[%s10462_s2 + $0xa0] sm:$0xff] }
  0x9f   :  { %829 = vmatprep.mubr.f32.mxu0 %v10472_v2  ;;  %912 = vmatprep.mubr.f32.mxu1 %v10472_v2  ;;  %v1402_v25 = vmul.f32 %v8043_v13, %v1375_v19 }
  0xa0   :  { %10554 = vst [vmem:[#allocation13_spill] sm:$0xff] %v8095_v4 }
  0xa1   :  { %v1372_v61 = vpop.permute.xlu1 %1371 }
  0xa2   :  { %6917 = vmatmul.mubr.msk.f32.vlgmr.msra.gmra.mrb[0].mxu0 %vm130_vm2, %v6914_v51  ;;  %6920 = vmatmul.mubr.msk.f32.vlgmr.msra.gmra.mrb[0].mxu1 %vm130_vm2, %v6914_v51  ;;  %v1374_v43 = vsel %vm1373_vm6, %v1370_v58, %v1372_v61 }
  0xa3   :  { %835 = vmatprep.mubr.f32.mxu0 %v10472_v2  ;;  %918 = vmatprep.mubr.f32.mxu1 %v10472_v2  ;;  %v1403_v51 = vmul.f32 %v8085_v41, %v1374_v43 }
  0xa4   :  { %957 = vmatpush1.msra.mxu0 %v7728_v1  ;;  %1040 = vmatpush1.msra.mxu1 %v7739_v3  ;;  %v6916_v1 = vld [vmem:[%s10462_s2 + $0x58] sm:$0xff]  ;;  %v1366_v3 = vpop.permute.xlu0 %1365 }
  0xa5   :  { %1187 = vmatprep.subr.mxu0 %v1171_v52  ;;  %1270 = vmatprep.subr.mxu1 %v1173_v53  ;;  %v1377_v20 = vsel %vm1373_vm6, %v1372_v61, %v1366_v3  ;;  %v1601_v31 = vpop.permute.xlu1 %1600  ;;  %v1376_v42 = vsel %vm1373_vm6, %v1366_v3, %v1368_v56 }
  0xa6   :  { %6918 = vmatmul.mubr.msk.f32.gmra.mrb[2].mxu0 %vm130_vm2, %v6915_v59  ;;  %6921 = vmatmul.mubr.msk.f32.gmra.mrb[2].mxu1 %vm130_vm2, %v6915_v59  ;;  %v1404_v27 = vmul.f32 %v8046_v14, %v1377_v20  ;;  %v1401_v50 = vmul.f32 %v8082_v40, %v1376_v42  ;;  %v6934_v59 = vld [vmem:[%s10462_s2 + $0x80] sm:$0xff] }
  0xa7   :  { %841 = vmatprep.mubr.f32.mxu0 %v10472_v2  ;;  %924 = vmatprep.mubr.f32.mxu1 %v10472_v2 }
  0xa8   :  { %v1599_v30 = vpop.permute.xlu0 %1598 }
  0xa9   :  { %v1603_v39 = vpop.permute.xlu1 %1602  ;;  %v1606_v45 = vsel %vm1604_vm7, %v1599_v30, %v1601_v31 }
  0xaa   :  { %6919 = vmatmul.mubr.msk.f32.gmra.mrb[4].mxu0 %vm130_vm2, %v6916_v1  ;;  %6922 = vmatmul.mubr.msk.f32.gmra.mrb[4].mxu1 %vm130_vm2, %v6916_v1  ;;  %v1633_v52 = vmul.f32 %v8092_v44, %v1606_v45  ;;  %v6935_v1 = vld [vmem:[%s10462_s2 + $0x88] sm:$0xff]  ;;  %v1605_v20 = vsel %vm1604_vm7, %v1601_v31, %v1603_v39  ;;  %v6954_v45 = vld [vmem:[%s10462_s2 + $0xb0] sm:$0xff] }
  0xab   :  { %1020 = vmatprep.mubr.f32.mxu0 %v10472_v2  ;;  %1103 = vmatprep.mubr.f32.mxu1 %v10472_v2 }
  0xac   :  { %v1597_v38 = vpop.permute.xlu0 %1596 }
  0xad   :  { %v1608_v0 = vsel %vm1604_vm7, %v1603_v39, %v1597_v38  ;;  %v1832_v58 = vpop.permute.xlu1 %1831  ;;  %v1607_v19 = vsel %vm1604_vm7, %v1597_v38, %v1599_v30  ;;  %v8179_v38 = vrot.slane %v6962_v60, %v7812_v10 }
  0xae   :  { %6926 = vmatmul.mubr.msk.f32.vlgmr.msra.gmra.mrb[0].mxu0 %vm130_vm2, %v6923_v21  ;;  %6929 = vmatmul.mubr.msk.f32.vlgmr.msra.gmra.mrb[0].mxu1 %vm130_vm2, %v6923_v21  ;;  %v1635_v53 = vmul.f32 %v8095_v4, %v1608_v0  ;;  %v8141_v21 = vrot.slane %v6962_v60, %v7810_v9  ;;  %v6943_v9 = vld [vmem:[%s10462_s2 + $0x90] sm:$0xff]  ;;  %v6955_v0 = vld [vmem:[%s10462_s2 + $0xb8] sm:$0xff] }
  0xaf   :  { %1026 = vmatprep.mubr.f32.mxu0 %v10472_v2  ;;  %1109 = vmatprep.mubr.f32.mxu1 %v10472_v2  ;;  %10560 = vst [vmem:[#allocation19_spill] sm:$0xff] %v8179_v38 }
  0xb0   :  { %1188 = vmatpush1.msra.mxu0 %v1170_v22  ;;  %1271 = vmatpush1.msra.mxu1 %v1172_v23  ;;  %v1830_v56 = vpop.permute.xlu0 %1829  ;;  %10557 = vst [vmem:[#allocation16_spill] sm:$0xff] %v8141_v21  ;;  %v8144_v22 = vrot.slane %v6962_v60, %v7808_v8  ;;  %v1632_v8 = vmul.f32 %v8131_v5, %v1607_v19 }
  0xb1   :  { %1418 = vmatprep.subr.mxu0 %v1402_v25  ;;  %1501 = vmatprep.subr.mxu1 %v1404_v27  ;;  %v1834_v61 = vpop.permute.xlu1 %1833  ;;  %v1837_v23 = vsel %vm1835_vm8, %v1830_v56, %v1832_v58  ;;  %v1634_v27 = vmul.f32 %v8134_v12, %v1605_v20 }
  0xb2   :  { %6927 = vmatmul.mubr.msk.f32.gmra.mrb[2].mxu0 %vm130_vm2, %v6924_v32  ;;  %6930 = vmatmul.mubr.msk.f32.gmra.mrb[2].mxu1 %vm130_vm2, %v6924_v32  ;;  %10558 = vst [vmem:[#allocation17_spill] sm:$0xff] %v8144_v22  ;;  %v1864_v30 = vmul.f32 %v8141_v21, %v1837_v23  ;;  %v6944_v32 = vld [vmem:[%s10462_s2 + $0x98] sm:$0xff]  ;;  %v1836_v42 = vsel %vm1835_vm8, %v1832_v58, %v1834_v61 }
  0xb3   :  { %1032 = vmatprep.mubr.f32.mxu0 %v10472_v2  ;;  %1115 = vmatprep.mubr.f32.mxu1 %v10472_v2  ;;  %v1865_v43 = vmul.f32 %v8179_v38, %v1836_v42 }
  0xb4   :  { %v1828_v3 = vpop.permute.xlu0 %1827 }
  0xb5   :  { %v1839_v25 = vsel %vm1835_vm8, %v1834_v61, %v1828_v3  ;;  %v1838_v39 = vsel %vm1835_vm8, %v1828_v3, %v1830_v56 }
  0xb6   :  { %6928 = vmatmul.mubr.msk.f32.gmra.mrb[4].mxu0 %vm130_vm2, %v6925_v34  ;;  %6931 = vmatmul.mubr.msk.f32.gmra.mrb[4].mxu1 %vm130_vm2, %v6925_v34  ;;  %v1866_v31 = vmul.f32 %v8144_v22, %v1839_v25  ;;  %v8176_v34 = vrot.slane %v6962_v60, %v7814_v11  ;;  %v6953_v11 = vld [vmem:[%s10462_s2 + $0xa8] sm:$0xff] }
  0xb7   :  { %1251 = vmatprep.mubr.f32.mxu0 %v10472_v2  ;;  %1334 = vmatprep.mubr.f32.mxu1 %v10472_v2 }
  0xb8   :  { %10559 = vst [vmem:[#allocation18_spill] sm:$0xff] %v8176_v34  ;;  %v1863_v10 = vmul.f32 %v8176_v34, %v1838_v39 }
  0xba   :  { %6936 = vmatmul.mubr.msk.f32.vlgmr.msra.gmra.mrb[0].mxu0 %vm130_vm2, %v6933_v49  ;;  %6939 = vmatmul.mubr.msk.f32.vlgmr.msra.gmra.mrb[0].mxu1 %vm130_vm2, %v6933_v49  ;;  %v6963_v49 = vld [vmem:[%s10462_s2 + $0xc0] sm:$0xff] }
  0xbb   :  { %1257 = vmatprep.mubr.f32.mxu0 %v10472_v2  ;;  %1340 = vmatprep.mubr.f32.mxu1 %v10472_v2 }
  0xbc   :  { %1419 = vmatpush1.msra.mxu0 %v1401_v50  ;;  %1502 = vmatpush1.msra.mxu1 %v1403_v51  ;;  %v6964_v50 = vld [vmem:[%s10462_s2 + $0xc8] sm:$0xff]  ;;  %v6965_v51 = vld [vmem:[%s10462_s2 + $0xd0] sm:$0xff] }
  0xbd   :  { %1649 = vmatprep.subr.mxu0 %v1633_v52  ;;  %1732 = vmatprep.subr.mxu1 %v1635_v53 }
  0xbe   :  { %6937 = vmatmul.mubr.msk.f32.gmra.mrb[2].mxu0 %vm130_vm2, %v6934_v59  ;;  %6940 = vmatmul.mubr.msk.f32.gmra.mrb[2].mxu1 %vm130_vm2, %v6934_v59 }
  0xbf   :  { %1263 = vmatprep.mubr.f32.mxu0 %v10472_v2  ;;  %1346 = vmatprep.mubr.f32.mxu1 %v10472_v2 }
  0xc2   :  { %6938 = vmatmul.mubr.msk.f32.gmra.mrb[4].mxu0 %vm130_vm2, %v6935_v1  ;;  %6941 = vmatmul.mubr.msk.f32.gmra.mrb[4].mxu1 %vm130_vm2, %v6935_v1 }
  0xc3   :  { %1482 = vmatprep.mubr.f32.mxu0 %v10472_v2  ;;  %1565 = vmatprep.mubr.f32.mxu1 %v10472_v2 }
  0xc6   :  { %6946 = vmatmul.mubr.msk.f32.vlgmr.msra.gmra.mrb[0].mxu0 %vm130_vm2, %v6943_v9  ;;  %6949 = vmatmul.mubr.msk.f32.vlgmr.msra.gmra.mrb[0].mxu1 %vm130_vm2, %v6943_v9 }
  0xc7   :  { %1488 = vmatprep.mubr.f32.mxu0 %v10472_v2  ;;  %1571 = vmatprep.mubr.f32.mxu1 %v10472_v2 }
  0xc8   :  { %1650 = vmatpush1.msra.mxu0 %v1632_v8  ;;  %1733 = vmatpush1.msra.mxu1 %v1634_v27 }
  0xc9   :  { %1880 = vmatprep.subr.mxu0 %v1864_v30  ;;  %1963 = vmatprep.subr.mxu1 %v1866_v31 }
  0xca   :  { %6947 = vmatmul.mubr.msk.f32.gmra.mrb[2].mxu0 %vm130_vm2, %v6944_v32  ;;  %6950 = vmatmul.mubr.msk.f32.gmra.mrb[2].mxu1 %vm130_vm2, %v6944_v32 }
  0xcb   :  { %1494 = vmatprep.mubr.f32.mxu0 %v10472_v2  ;;  %1577 = vmatprep.mubr.f32.mxu1 %v10472_v2 }
  0xce   :  { %6948 = vmatmul.mubr.msk.f32.gmra.mrb[4].mxu0 %vm130_vm2, %v6945_v33  ;;  %6951 = vmatmul.mubr.msk.f32.gmra.mrb[4].mxu1 %vm130_vm2, %v6945_v33 }
  0xcf   :  { %1713 = vmatprep.mubr.f32.mxu0 %v10472_v2  ;;  %1796 = vmatprep.mubr.f32.mxu1 %v10472_v2 }
  0xd2   :  { %6956 = vmatmul.mubr.msk.f32.vlgmr.msra.gmra.mrb[0].mxu0 %vm130_vm2, %v6953_v11  ;;  %6959 = vmatmul.mubr.msk.f32.vlgmr.msra.gmra.mrb[0].mxu1 %vm130_vm2, %v6953_v11 }
  0xd3   :  { %1719 = vmatprep.mubr.f32.mxu0 %v10472_v2  ;;  %1802 = vmatprep.mubr.f32.mxu1 %v10472_v2 }
  0xd4   :  { %1881 = vmatpush1.msra.mxu0 %v1863_v10  ;;  %1964 = vmatpush1.msra.mxu1 %v1865_v43 }
  0xd6   :  { %6957 = vmatmul.mubr.msk.f32.gmra.mrb[2].mxu0 %vm130_vm2, %v6954_v45  ;;  %6960 = vmatmul.mubr.msk.f32.gmra.mrb[2].mxu1 %vm130_vm2, %v6954_v45 }
  0xd7   :  { %1725 = vmatprep.mubr.f32.mxu0 %v10472_v2  ;;  %1808 = vmatprep.mubr.f32.mxu1 %v10472_v2 }
  0xda   :  { %6958 = vmatmul.mubr.msk.f32.gmra.mrb[4].mxu0 %vm130_vm2, %v6955_v0  ;;  %6961 = vmatmul.mubr.msk.f32.gmra.mrb[4].mxu1 %vm130_vm2, %v6955_v0 }
  0xdb   :  { %1944 = vmatprep.mubr.f32.mxu0 %v10472_v2  ;;  %2027 = vmatprep.mubr.f32.mxu1 %v10472_v2 }
  0xde   :  { %6966 = vmatmul.mubr.msk.f32.vlgmr.msra.gmra.mrb[0].mxu0 %vm130_vm2, %v6963_v49  ;;  %6969 = vmatmul.mubr.msk.f32.vlgmr.msra.gmra.mrb[0].mxu1 %vm130_vm2, %v6963_v49 }
  0xdf   :  { %1950 = vmatprep.mubr.f32.mxu0 %v10472_v2  ;;  %2033 = vmatprep.mubr.f32.mxu1 %v10472_v2 }
  0xe2   :  { %6967 = vmatmul.mubr.msk.f32.gmra.mrb[2].mxu0 %vm130_vm2, %v6964_v50  ;;  %6970 = vmatmul.mubr.msk.f32.gmra.mrb[2].mxu1 %vm130_vm2, %v6964_v50 }
  0xe3   :  { %1956 = vmatprep.mubr.f32.mxu0 %v10472_v2  ;;  %2039 = vmatprep.mubr.f32.mxu1 %v10472_v2 }
  0xe6   :  { %6968 = vmatmul.mubr.msk.f32.gmra.mrb[4].mxu0 %vm130_vm2, %v6965_v51  ;;  %6971 = vmatmul.mubr.msk.f32.gmra.mrb[4].mxu1 %vm130_vm2, %v6965_v51 }
  0xe7   :  { %2379 = vmatprep.mubr.f32.mxu0 %v10472_v2  ;;  %2462 = vmatprep.mubr.f32.mxu1 %v10472_v2 }
 0x1b1   :  { %v8233_v52 = vpop.f32.mrb[0].mxu0  ;;  %v8235_v53 = vpop.f32.mrb[0].mxu1 }
 0x1b2   :  { %v2076_v56 = vmul.f32 %v8233_v52, %v8233_v52  ;;  %v8239_v58 = vpop.f32.mrb[1].mxu0  ;;  %v8241_v59 = vpop.f32.mrb[1].mxu1  ;;  %v2078_v3 = vmul.f32 %v8235_v53, %v8235_v53 }
 0x1b3   :  { %v2058_v60 = vadd.f32 %v8239_v58, %v8233_v52  ;;  %v2077_v1 = vmul.f32 %v8239_v58, %v8239_v58  ;;  %v2079_v27 = vmul.f32 %v8241_v59, %v8241_v59 }
 0x1b5   :  { %v8249_v61 = vpop.f32.mrb[2].mxu0  ;;  %v8251_v19 = vpop.f32.mrb[2].mxu1  ;;  %v2059_v20 = vadd.f32 %v2058_v60, %v8235_v53  ;;  %v2088_v23 = vadd.f32 %v2077_v1, %v2076_v56 }
 0x1b6   :  { %v2080_v25 = vmul.f32 %v8249_v61, %v8249_v61  ;;  %v8256_v9 = vpop.f32.mrb[3].mxu0  ;;  %v8258_v8 = vpop.f32.mrb[3].mxu1  ;;  %v2082_v39 = vmul.f32 %v8251_v19, %v8251_v19 }
 0x1b7   :  { %v2063_v30 = vadd.f32 %v8256_v9, %v8249_v61  ;;  %v2081_v31 = vmul.f32 %v8256_v9, %v8256_v9  ;;  %v2060_v32 = vadd.f32 %v2059_v20, %v8241_v59  ;;  %v2089_v33 = vadd.f32 %v2088_v23, %v2078_v3 }
 0x1b8   :  { %v2083_v51 = vmul.f32 %v8258_v8, %v8258_v8 }
 0x1b9   :  { %v8269_v42 = vpop.f32.mrb[4].mxu1  ;;  %2061 = vadd.xlane.f32.xlu0 %v2060_v32  ;;  %v8271_v11 = vpop.f32.mrb[4].mxu0  ;;  %v2090_v10 = vadd.f32 %v2089_v33, %v2079_v27  ;;  %v2064_v43 = vadd.f32 %v2063_v30, %v8251_v19  ;;  %v2093_v45 = vadd.f32 %v2081_v31, %v2080_v25 }
 0x1ba   :  { %v2084_v0 = vmul.f32 %v8271_v11, %v8271_v11  ;;  %v8276_v49 = vpop.f32.mrb[5].mxu0  ;;  %v8278_v50 = vpop.f32.mrb[5].mxu1  ;;  %v2086_v20 = vmul.f32 %v8269_v42, %v8269_v42 }
 0x1bb   :  { %v2068_v56 = vadd.f32 %v8276_v49, %v8271_v11  ;;  %v2085_v60 = vmul.f32 %v8276_v49, %v8276_v49  ;;  %v2065_v1 = vadd.f32 %v2064_v43, %v8258_v8  ;;  %v2094_v3 = vadd.f32 %v2093_v45, %v2082_v39 }
 0x1bc   :  { %v2087_v31 = vmul.f32 %v8278_v50, %v8278_v50  ;;  %v7659_v39 = vmov 0  }
 0x1bd   :  { %2091 = vadd.xlane.f32.xlu0 %v2090_v10  ;;  %2066 = vadd.xlane.f32.xlu1 %v2065_v1  ;;  %v2095_v23 = vadd.f32 %v2094_v3, %v2083_v51  ;;  %v2069_v25 = vadd.f32 %v2068_v56, %v8269_v42  ;;  %v2098_v27 = vadd.f32 %v2085_v60, %v2084_v0 }
 0x1be   :  { %7628 = vset.pattern.permute.xlu1 %v7659_v39  ;;  %7629 = vset.pattern.permute.xlu0 %v7659_v39 }
 0x1bf   :  { %v2070_v30 = vadd.f32 %v2069_v25, %v8278_v50  ;;  %v2099_v32 = vadd.f32 %v2098_v27, %v2086_v20 }
 0x1c1   :  { %2096 = vadd.xlane.f32.xlu0 %v2095_v23  ;;  %2071 = vadd.xlane.f32.xlu1 %v2070_v30  ;;  %v2100_v33 = vadd.f32 %v2099_v32, %v2087_v31 }
 0x1c5   :  { %2101 = vadd.xlane.f32.xlu0 %v2100_v33 }
 0x246   :  { %v2062_v43 = vpop.xlane.xlu0 %2061 }
 0x247   :  { %v2073_v10 = vmul.f32 0.001953125, %v2062_v43 }
 0x249   :  { %v2106_v1 = vmul.f32 %v2073_v10, %v2073_v10 }
 0x24a   :  { %v2092_v45 = vpop.xlane.xlu0 %2091  ;;  %v2067_v51 = vpop.xlane.xlu1 %2066 }
 0x24b   :  { %v2103_v56 = vmul.f32 0.001953125, %v2092_v45  ;;  %v2074_v0 = vmul.f32 0.001953125, %v2067_v51  ;;  %v2115_v51 = vld [vmem:[%s10463_s5] sm:$0xff] }
 0x24d   :  { %v2109_v60 = vsub.f32 %v2103_v56, %v2106_v1  ;;  %v2107_v22 = vmul.f32 %v2074_v0, %v2074_v0 }
 0x24e   :  { %v2097_v3 = vpop.xlane.xlu0 %2096  ;;  %v2072_v25 = vpop.xlane.xlu1 %2071 }
 0x24f   :  { %v2112_v2 = vmax.f32 %v2109_v60, 0.0  ;;  %v2104_v20 = vmul.f32 0.001953125, %v2097_v3  ;;  %v2075_v23 = vmul.f32 0.001953125, %v2072_v25  ;;  %v2128_v25 = vld [vmem:[%s10464_s6 + $0x8] sm:$0xff] }
 0x251   :  { %v2118_v27 = vadd.f32 1e-05, %v2112_v2  ;;  %v2110_v30 = vsub.f32 %v2104_v20, %v2107_v22  ;;  %v2108_v33 = vmul.f32 %v2075_v23, %v2075_v23  ;;  %v2116_v2 = vld [vmem:[%s10463_s5 + $0x8] sm:$0xff]  ;;  %v2127_v22 = vld [vmem:[%s10464_s6] sm:$0xff]  ;;  %v2117_v20 = vld [vmem:[%s10463_s5 + $0x10] sm:$0xff] }
 0x252   :  { %v2102_v31 = vpop.xlane.xlu0 %2101 }
 0x253   :  { %7630 = vrsqrt.f32 %v2118_v27  ;;  %v2113_v32 = vmax.f32 %v2110_v30, 0.0  ;;  %v2105_v39 = vmul.f32 0.001953125, %v2102_v31 }
 0x255   :  { %v2119_v43 = vadd.f32 1e-05, %v2113_v32  ;;  %v2111_v38 = vsub.f32 %v2105_v39, %v2108_v33 }
 0x257   :  { %7632 = vrsqrt.f32 %v2119_v43  ;;  %v2114_v34 = vmax.f32 %v2111_v38, 0.0 }
 0x259   :  { %v2120_v45 = vadd.f32 1e-05, %v2114_v34 }
 0x25b   :  { %7634 = vrsqrt.f32 %v2120_v45 }
 0x25d   :  { %v7631_v1 = vpop.eup %7630 }
 0x25e   :  { %v2124_v56 = vmul.f32 %v7631_v1, %v2115_v51 }
 0x260   :  { %2138 = vperm.xlu1 %7628, %v2124_v56   ;;  %v2130_v60 = vmul.f32 %v2124_v56, %v2073_v10  ;;  %v2129_v10 = vld [vmem:[%s10464_s6 + $0x10] sm:$0xff] }
 0x261   :  { %v7633_v3 = vpop.eup %7632 }
 0x262   :  { %v2125_v38 = vmul.f32 %v7633_v3, %v2116_v2  ;;  %v2133_v34 = vsub.f32 %v2127_v22, %v2130_v60 }
 0x264   :  { %2143 = vperm.xlu0 %7629, %v2125_v38   ;;  %2165 = vperm.xlu1 %7628, %v2133_v34   ;;  %v2131_v27 = vmul.f32 %v2125_v38, %v2074_v0 }
 0x265   :  { %v7635_v30 = vpop.eup %7634 }
 0x266   :  { %v2134_v31 = vsub.f32 %v2128_v25, %v2131_v27  ;;  %v2126_v32 = vmul.f32 %v7635_v30, %v2117_v20 }
 0x268   :  { %2170 = vperm.xlu1 %7628, %v2134_v31   ;;  %v2132_v33 = vmul.f32 %v2126_v32, %v2075_v23 }
 0x26a   :  { %v2135_v39 = vsub.f32 %v2129_v10, %v2132_v33 }
 0x26c   :  { %2148 = vperm.xlu1 %7628, %v2126_v32  }
 0x270   :  { %2175 = vperm.xlu1 %7628, %v2135_v39  }
 0x2df   :  { %v2139_v43 = vpop.permute.xlu1 %2138 }
 0x2e0   :  { %v2151_v45 = vmul.f32 %v2139_v43, %v8233_v52  ;;  %v2154_v51 = vmul.f32 %v2139_v43, %v8241_v59  ;;  %v2152_v0 = vmul.f32 %v2139_v43, %v8239_v58  ;;  %v2153_v56 = vmul.f32 %v2139_v43, %v8235_v53 }
 0x2e3   :  { %v2166_v1 = vpop.permute.xlu1 %2165  ;;  %v2144_v23 = vpop.permute.xlu0 %2143 }
 0x2e4   :  { %v2178_v2 = vadd.f32 %v2166_v1, %v2151_v45  ;;  %v2181_v22 = vadd.f32 %v2166_v1, %v2154_v51  ;;  %v2179_v60 = vadd.f32 %v2166_v1, %v2152_v0  ;;  %v2180_v3 = vadd.f32 %v2166_v1, %v2153_v56 }
 0x2e5   :  { %v2155_v20 = vmul.f32 %v2144_v23, %v8249_v61  ;;  %v2156_v59 = vmul.f32 %v2144_v23, %v8256_v9  ;;  %v2158_v30 = vmul.f32 %v2144_v23, %v8258_v8  ;;  %v2157_v9 = vmul.f32 %v2144_v23, %v8251_v19 }
 0x2e6   :  { %v8315_v38 = vmax.f32 %v2178_v2, 0.0  ;;  %v8317_v34 = vmax.f32 %v2181_v22, 0.0  ;;  %v8324_v52 = vmax.f32 %v2179_v60, 0.0  ;;  %v8326_v53 = vmax.f32 %v2180_v3, 0.0 }
 0x2e7   :  { %v2171_v25 = vpop.permute.xlu1 %2170 }
 0x2e8   :  { %10561 = vst [vmem:[#allocation20_spill] sm:$0xff] %v8317_v34  ;;  %2271 = vrot.lane.b32.xlu0 %v8317_v34, %s7651_s21  ;;  %2253 = vrot.lane.b32.xlu1 %v8315_v38, %s7651_s21  ;;  %10562 = vst [vmem:[#allocation21_spill] sm:$0xff] %v8326_v53  ;;  %v2182_v58 = vadd.f32 %v2171_v25, %v2155_v20  ;;  %v2183_v61 = vadd.f32 %v2171_v25, %v2156_v59 }
 0x2e9   :  { %v2185_v31 = vadd.f32 %v2171_v25, %v2158_v30  ;;  %v2184_v33 = vadd.f32 %v2171_v25, %v2157_v9 }
 0x2ea   :  { %v8333_v27 = vmax.f32 %v2182_v58, 0.0  ;;  %v8340_v32 = vmax.f32 %v2183_v61, 0.0 }
 0x2eb   :  { %v8347_v10 = vmax.f32 %v2185_v31, 0.0  ;;  %v8353_v8 = vmax.f32 %v2184_v33, 0.0  ;;  %v2149_v19 = vpop.permute.xlu1 %2148 }
 0x2ec   :  { %2265 = vrot.lane.b32.xlu0 %v8326_v53, %s7651_s21  ;;  %2259 = vrot.lane.b32.xlu1 %v8324_v52, %s7651_s21  ;;  %v2159_v43 = vmul.f32 %v2149_v19, %v8271_v11  ;;  %v2162_v51 = vmul.f32 %v2149_v19, %v8278_v50  ;;  %v2160_v50 = vmul.f32 %v2149_v19, %v8276_v49 }
 0x2ed   :  { %10563 = vst [vmem:[#allocation22_spill] sm:$0xff] %v8347_v10  ;;  %10564 = vst [vmem:[#allocation23_spill] sm:$0xff] %v8353_v8  ;;  %v2161_v2 = vmul.f32 %v2149_v19, %v8269_v42 }
 0x2ef   :  { %v2176_v39 = vpop.permute.xlu1 %2175 }
 0x2f0   :  { %2202 = vrot.lane.b32.xlu0 %v8315_v38, %s7652_s26  ;;  %2255 = vrot.lane.b32.xlu1 %v8333_v27, %s7651_s21  ;;  %v2186_v45 = vadd.f32 %v2176_v39, %v2159_v43  ;;  %v2189_v1 = vadd.f32 %v2176_v39, %v2162_v51  ;;  %v2187_v56 = vadd.f32 %v2176_v39, %v2160_v50 }
 0x2f1   :  { %v2188_v22 = vadd.f32 %v2176_v39, %v2161_v2 }
 0x2f2   :  { %v8417_v0 = vmax.f32 %v2186_v45, 0.0  ;;  %v8423_v11 = vmax.f32 %v2189_v1, 0.0  ;;  %v8439_v23 = vmax.f32 %v2187_v56, 0.0 }
 0x2f3   :  { %v8445_v49 = vmax.f32 %v2188_v22, 0.0 }
 0x2f4   :  { %2208 = vrot.lane.b32.xlu0 %v8324_v52, %s7652_s26  ;;  %2261 = vrot.lane.b32.xlu1 %v8340_v32, %s7651_s21  ;;  %10565 = vst [vmem:[#allocation24_spill] sm:$0xff] %v8417_v0  ;;  %10566 = vst [vmem:[#allocation25_spill] sm:$0xff] %v8423_v11 }
 0x2f5   :  { %10567 = vst [vmem:[#allocation26_spill] sm:$0xff] %v8439_v23  ;;  %10568 = vst [vmem:[#allocation27_spill] sm:$0xff] %v8445_v49 }
 0x2f8   :  { %2220 = vrot.lane.b32.xlu0 %v8317_v34, %s7652_s26  ;;  %2273 = vrot.lane.b32.xlu1 %v8347_v10, %s7651_s21 }
 0x2fc   :  { %2214 = vrot.lane.b32.xlu0 %v8326_v53, %s7652_s26  ;;  %2267 = vrot.lane.b32.xlu1 %v8353_v8, %s7651_s21 }
 0x300   :  { %2656 = vrot.lane.b32.xlu0 %v8315_v38, %s7653_s0  ;;  %2204 = vrot.lane.b32.xlu1 %v8333_v27, %s7652_s26 }
 0x304   :  { %2662 = vrot.lane.b32.xlu0 %v8324_v52, %s7653_s0  ;;  %2210 = vrot.lane.b32.xlu1 %v8340_v32, %s7652_s26 }
 0x308   :  { %2674 = vrot.lane.b32.xlu0 %v8317_v34, %s7653_s0  ;;  %2222 = vrot.lane.b32.xlu1 %v8347_v10, %s7652_s26 }
 0x30c   :  { %2668 = vrot.lane.b32.xlu0 %v8326_v53, %s7653_s0  ;;  %2216 = vrot.lane.b32.xlu1 %v8353_v8, %s7652_s26 }
 0x310   :  { %2895 = vrot.lane.b32.xlu0 %v8315_v38, %s7654_s27  ;;  %2658 = vrot.lane.b32.xlu1 %v8333_v27, %s7653_s0 }
 0x314   :  { %2901 = vrot.lane.b32.xlu0 %v8324_v52, %s7654_s27  ;;  %2664 = vrot.lane.b32.xlu1 %v8340_v32, %s7653_s0 }
 0x318   :  { %2913 = vrot.lane.b32.xlu0 %v8317_v34, %s7654_s27  ;;  %2676 = vrot.lane.b32.xlu1 %v8347_v10, %s7653_s0 }
 0x31c   :  { %2907 = vrot.lane.b32.xlu0 %v8326_v53, %s7654_s27  ;;  %2670 = vrot.lane.b32.xlu1 %v8353_v8, %s7653_s0 }
 0x320   :  { %3331 = vrot.lane.b32.xlu0 %v8324_v52, %s7655_s28  ;;  %2897 = vrot.lane.b32.xlu1 %v8333_v27, %s7654_s27 }
 0x324   :  { %3337 = vrot.lane.b32.xlu0 %v8326_v53, %s7655_s28  ;;  %2903 = vrot.lane.b32.xlu1 %v8340_v32, %s7654_s27 }
 0x328   :  { %3325 = vrot.lane.b32.xlu0 %v8315_v38, %s7655_s28  ;;  %2915 = vrot.lane.b32.xlu1 %v8347_v10, %s7654_s27 }
 0x32c   :  { %3343 = vrot.lane.b32.xlu0 %v8317_v34, %s7655_s28  ;;  %2909 = vrot.lane.b32.xlu1 %v8353_v8, %s7654_s27 }
 0x330   :  { %3570 = vrot.lane.b32.xlu0 %v8324_v52, %s7656_s29  ;;  %3333 = vrot.lane.b32.xlu1 %v8340_v32, %s7655_s28 }
 0x334   :  { %3576 = vrot.lane.b32.xlu0 %v8326_v53, %s7656_s29  ;;  %3339 = vrot.lane.b32.xlu1 %v8353_v8, %s7655_s28 }
 0x338   :  { %3327 = vrot.lane.b32.xlu1 %v8333_v27, %s7655_s28  ;;  %2257 = vrot.lane.b32.xlu0 %v8417_v0, %s7651_s21 }
 0x33c   :  { %3345 = vrot.lane.b32.xlu1 %v8347_v10, %s7655_s28  ;;  %2275 = vrot.lane.b32.xlu0 %v8423_v11, %s7651_s21 }
 0x340   :  { %3572 = vrot.lane.b32.xlu1 %v8340_v32, %s7656_s29  ;;  %3564 = vrot.lane.b32.xlu0 %v8315_v38, %s7656_s29 }
 0x344   :  { %3578 = vrot.lane.b32.xlu1 %v8353_v8, %s7656_s29  ;;  %2206 = vrot.lane.b32.xlu0 %v8417_v0, %s7652_s26 }
 0x348   :  { %2263 = vrot.lane.b32.xlu1 %v8439_v23, %s7651_s21  ;;  %2224 = vrot.lane.b32.xlu0 %v8423_v11, %s7652_s26 }
 0x34c   :  { %2269 = vrot.lane.b32.xlu1 %v8445_v49, %s7651_s21  ;;  %3582 = vrot.lane.b32.xlu0 %v8317_v34, %s7656_s29 }
 0x350   :  { %3566 = vrot.lane.b32.xlu1 %v8333_v27, %s7656_s29  ;;  %2660 = vrot.lane.b32.xlu0 %v8417_v0, %s7653_s0 }
 0x354   :  { %2212 = vrot.lane.b32.xlu1 %v8439_v23, %s7652_s26  ;;  %2678 = vrot.lane.b32.xlu0 %v8423_v11, %s7653_s0 }
 0x358   :  { %2218 = vrot.lane.b32.xlu1 %v8445_v49, %s7652_s26  ;;  %3809 = vrot.lane.b32.xlu0 %v8324_v52, %s7657_s30 }
 0x35a   :  { %v2272_v42 = vpop.permute.xlu0 %2271  ;;  %v2254_v60 = vpop.permute.xlu1 %2253 }
 0x35b   :  { %v2286_v19 = vsel %vm94_vm0, %v2272_v42, %v2254_v60 }
 0x35c   :  { %3584 = vrot.lane.b32.xlu1 %v8347_v10, %s7656_s29  ;;  %2899 = vrot.lane.b32.xlu0 %v8417_v0, %s7654_s27  ;;  %v2289_v1 = vmul.f32 %v2286_v19, %v7830_v18 }
 0x35e   :  { %v2266_v3 = vpop.permute.xlu0 %2265  ;;  %v2260_v25 = vpop.permute.xlu1 %2259 }
 0x35f   :  { %v2283_v59 = vsel %vm94_vm0, %v2254_v60, %v2260_v25  ;;  %v2277_v56 = vsel %vm94_vm0, %v2266_v3, %v2272_v42  ;;  %v2280_v2 = vsel %vm94_vm0, %v2260_v25, %v2266_v3 }
 0x360   :  { %2666 = vrot.lane.b32.xlu1 %v8439_v23, %s7653_s0  ;;  %2917 = vrot.lane.b32.xlu0 %v8423_v11, %s7654_s27  ;;  %v2290_v9 = vmul.f32 %v2283_v59, %v7824_v16 }
 0x362   :  { %v8471_v20 = vpop.permute.xlu0 %2202  ;;  %v2256_v58 = vpop.permute.xlu1 %2255 }
 0x364   :  { %2672 = vrot.lane.b32.xlu1 %v8445_v49, %s7653_s0  ;;  %3815 = vrot.lane.b32.xlu0 %v8326_v53, %s7657_s30 }
 0x366   :  { %v8479_v61 = vpop.permute.xlu0 %2208  ;;  %v2262_v30 = vpop.permute.xlu1 %2261 }
 0x367   :  { %v2284_v31 = vsel %vm94_vm0, %v2256_v58, %v2262_v30 }
 0x368   :  { %v2294_v33 = vmul.f32 %v2284_v31, %v7824_v16  ;;  %3811 = vrot.lane.b32.xlu1 %v8340_v32, %s7657_s30  ;;  %3803 = vrot.lane.b32.xlu0 %v8315_v38, %s7657_s30 }
 0x36a   :  { %v8491_v39 = vpop.permute.xlu0 %2220  ;;  %v2274_v43 = vpop.permute.xlu1 %2273  ;;  %v7154_v45 = vpack.c.bf16 %v2294_v33, %v2290_v9  ;;  %v2292_v9 = vmul.f32 %v2277_v56, %v7821_v15  ;;  %v2291_v33 = vmul.f32 %v2280_v2, %v7827_v17 }
 0x36b   :  { %v2287_v51 = vsel %vm94_vm0, %v2274_v43, %v2256_v58 }
 0x36c   :  { %v2293_v50 = vmul.f32 %v2287_v51, %v7830_v18  ;;  %2905 = vrot.lane.b32.xlu1 %v8439_v23, %s7654_s27  ;;  %3821 = vrot.lane.b32.xlu0 %v8317_v34, %s7657_s30 }
 0x36d   :  { %7155 = vmatprep.subr.bf16.mxu0 %v7154_v45 }
 0x36e   :  { %v7156_v22 = vpack.c.bf16 %v2293_v50, %v2289_v1  ;;  %v8505_v60 = vpop.permute.xlu0 %2214  ;;  %v2268_v58 = vpop.permute.xlu1 %2267 }
 0x36f   :  { %v2278_v59 = vsel %vm94_vm0, %v2268_v58, %v2274_v43  ;;  %v2281_v31 = vsel %vm94_vm0, %v2262_v30, %v2268_v58 }
 0x370   :  { %v2295_v42 = vmul.f32 %v2281_v31, %v7827_v17  ;;  %v2296_v19 = vmul.f32 %v2278_v59, %v7821_v15  ;;  %2911 = vrot.lane.b32.xlu1 %v8445_v49, %s7654_s27  ;;  %4048 = vrot.lane.b32.xlu0 %v8324_v52, %s7658_s12 }
 0x371   :  { %7157 = vmatpush1.bf16.msra.mxu0 %v7156_v22 }
 0x372   :  { %v7160_v3 = vpack.c.bf16 %v2295_v42, %v2291_v33  ;;  %v8519_v25 = vpop.permute.xlu0 %2656  ;;  %v8521_v43 = vpop.permute.xlu1 %2204  ;;  %v7158_v30 = vpack.c.bf16 %v2296_v19, %v2292_v9 }
 0x374   :  { %3817 = vrot.lane.b32.xlu1 %v8353_v8, %s7657_s30  ;;  %7159 = vmatprep.subr.bf16.mxu1 %v7158_v30 }
 0x375   :  { %3335 = vrot.lane.b32.xlu0 %v8439_v23, %s7655_s28  ;;  %7161 = vmatpush1.bf16.msra.mxu1 %v7160_v3 }
 0x376   :  { %v8527_v45 = vpop.permute.xlu0 %2662  ;;  %v8529_v51 = vpop.permute.xlu1 %2210 }
 0x378   :  { %3805 = vrot.lane.b32.xlu1 %v8333_v27, %s7657_s30 }
 0x379   :  { %3329 = vrot.lane.b32.xlu0 %v8417_v0, %s7655_s28 }
 0x37a   :  { %v8535_v1 = vpop.permute.xlu0 %2674  ;;  %v8537_v50 = vpop.permute.xlu1 %2222 }
 0x37c   :  { %3823 = vrot.lane.b32.xlu1 %v8347_v10, %s7657_s30 }
 0x37d   :  { %4054 = vrot.lane.b32.xlu0 %v8326_v53, %s7658_s12 }
 0x37e   :  { %v8543_v56 = vpop.permute.xlu0 %2668  ;;  %v8545_v2 = vpop.permute.xlu1 %2216 }
 0x37f   :  { %v2230_v47 = vsel %vm52_vm1, %v8529_v51, %v8545_v2 }
 0x380   :  { %4050 = vrot.lane.b32.xlu1 %v8340_v32, %s7658_s12 }
 0x381   :  { %3574 = vrot.lane.b32.xlu0 %v8439_v23, %s7656_s29 }
 0x382   :  { %v8551_v22 = vpop.permute.xlu0 %2895  ;;  %v8553_v58 = vpop.permute.xlu1 %2658 }
 0x384   :  { %3341 = vrot.lane.b32.xlu1 %v8445_v49, %s7655_s28 }
 0x385   :  { %3568 = vrot.lane.b32.xlu0 %v8417_v0, %s7656_s29 }
 0x386   :  { %v8559_v59 = vpop.permute.xlu0 %2901  ;;  %v8561_v31 = vpop.permute.xlu1 %2664 }
 0x388   :  { %3347 = vrot.lane.b32.xlu1 %v8423_v11, %s7655_s28 }
 0x389   :  { %4042 = vrot.lane.b32.xlu0 %v8315_v38, %s7658_s12 }
 0x38a   :  { %v8567_v9 = vpop.permute.xlu0 %2913  ;;  %v8569_v33 = vpop.permute.xlu1 %2676 }
 0x38c   :  { %4056 = vrot.lane.b32.xlu1 %v8353_v8, %s7658_s12 }
 0x38d   :  { %3813 = vrot.lane.b32.xlu0 %v8439_v23, %s7657_s30 }
 0x38e   :  { %v8575_v42 = vpop.permute.xlu0 %2907  ;;  %v8577_v19 = vpop.permute.xlu1 %2670 }
 0x390   :  { %3580 = vrot.lane.b32.xlu1 %v8445_v49, %s7656_s29 }
 0x391   :  { %3807 = vrot.lane.b32.xlu0 %v8417_v0, %s7657_s30 }
 0x392   :  { %v8583_v3 = vpop.permute.xlu0 %3331  ;;  %v8585_v30 = vpop.permute.xlu1 %2897 }
 0x393   :  { %10569 = vst [vmem:[#allocation28_spill] sm:$0xff] %v8583_v3 }
 0x394   :  { %3586 = vrot.lane.b32.xlu1 %v8423_v11, %s7656_s29 }
 0x395   :  { %4060 = vrot.lane.b32.xlu0 %v8317_v34, %s7658_s12 }
 0x396   :  { %v8591_v21 = vpop.permute.xlu0 %3337  ;;  %v8593_v12 = vpop.permute.xlu1 %2903 }
 0x398   :  { %4044 = vrot.lane.b32.xlu1 %v8333_v27, %s7658_s12 }
 0x399   :  { %4052 = vrot.lane.b32.xlu0 %v8439_v23, %s7658_s12 }
 0x39a   :  { %v8599_v4 = vpop.permute.xlu0 %3325  ;;  %v8601_v5 = vpop.permute.xlu1 %2915 }
 0x39b   :  { %10570 = vst [vmem:[#allocation29_spill] sm:$0xff] %v8599_v4 }
 0x39c   :  { %3819 = vrot.lane.b32.xlu1 %v8445_v49, %s7657_s30 }
 0x39d   :  { %4046 = vrot.lane.b32.xlu0 %v8417_v0, %s7658_s12 }
 0x39e   :  { %v8607_v44 = vpop.permute.xlu0 %3343  ;;  %v8609_v41 = vpop.permute.xlu1 %2909 }
 0x39f   :  { %10571 = vst [vmem:[#allocation30_spill] sm:$0xff] %v8607_v44 }
 0x3a0   :  { %3825 = vrot.lane.b32.xlu1 %v8423_v11, %s7657_s30 }
 0x3a2   :  { %v8613_v14 = vpop.permute.xlu0 %3570  ;;  %v8615_v40 = vpop.permute.xlu1 %3333 }
 0x3a3   :  { %10572 = vst [vmem:[#allocation31_spill] sm:$0xff] %v8613_v14 }
 0x3a4   :  { %4062 = vrot.lane.b32.xlu1 %v8347_v10, %s7658_s12 }
 0x3a6   :  { %v8619_v13 = vpop.permute.xlu0 %3576  ;;  %v8621_v63 = vpop.permute.xlu1 %3339 }
 0x3a7   :  { %10573 = vst [vmem:[#allocation32_spill] sm:$0xff] %v8619_v13 }
 0x3a8   :  { %4058 = vrot.lane.b32.xlu1 %v8445_v49, %s7658_s12  ;;  %v2233_v49 = vsel %vm52_vm1, %v8521_v43, %v8529_v51 }
 0x3aa   :  { %v2258_v62 = vpop.permute.xlu0 %2257  ;;  %v8625_v0 = vpop.permute.xlu1 %3327 }
 0x3ab   :  { %10574 = vst [vmem:[#allocation33_spill] sm:$0xff] %v8625_v0 }
 0x3ac   :  { %4064 = vrot.lane.b32.xlu1 %v8423_v11, %s7658_s12  ;;  %v2236_v11 = vsel %vm52_vm1, %v8537_v50, %v8521_v43 }
 0x3ad   :  { %v2242_v43 = vmul.f32 %v2236_v11, %v7865_v37 }
 0x3ae   :  { %v2276_v48 = vpop.permute.xlu0 %2275  ;;  %v8629_v14 = vpop.permute.xlu1 %3345 }
 0x3af   :  { %10575 = vst [vmem:[#allocation34_spill] sm:$0xff] %v8629_v14  ;;  %v2288_v4 = vsel %vm94_vm0, %v2276_v48, %v2258_v62 }
 0x3b0   :  { %v2297_v11 = vmul.f32 %v2288_v4, %v7830_v18 }
 0x3b2   :  { %v8631_v8 = vpop.permute.xlu0 %3564  ;;  %v8633_v53 = vpop.permute.xlu1 %3572 }
 0x3b3   :  { %10576 = vst [vmem:[#allocation35_spill] sm:$0xff] %v8631_v8  ;;  %10577 = vst [vmem:[#allocation36_spill] sm:$0xff] %v8633_v53  ;;  %v2232_v8 = vsel %vm52_vm1, %v8471_v20, %v8479_v61  ;;  %v2235_v53 = vsel %vm52_vm1, %v8491_v39, %v8471_v20  ;;  %v2227_v20 = vsel %vm52_vm1, %v8545_v2, %v8537_v50 }
 0x3b4   :  { %v2239_v14 = vmul.f32 %v2232_v8, %v7848_v29  ;;  %v2238_v0 = vmul.f32 %v2235_v53, %v7865_v37  ;;  %v2226_v8 = vsel %vm52_vm1, %v8505_v60, %v8491_v39  ;;  %v2229_v53 = vsel %vm52_vm1, %v8479_v61, %v8505_v60 }
 0x3b5   :  { %v2245_v2 = vmul.f32 %v2227_v20, %v7857_v35  ;;  %v2244_v39 = vmul.f32 %v2230_v47, %v7862_v36  ;;  %v2241_v61 = vmul.f32 %v2226_v8, %v7857_v35  ;;  %v2686_v20 = vsel %vm489_vm3, %v8519_v25, %v8527_v45 }
 0x3b6   :  { %v8635_v44 = vpop.permute.xlu0 %2206  ;;  %v8637_v13 = vpop.permute.xlu1 %3578  ;;  %v7164_v50 = vpack.c.bf16 %v2242_v43, %v2238_v0  ;;  %v2690_v43 = vsel %vm489_vm3, %v8569_v33, %v8553_v58 }
 0x3b7   :  { %10578 = vst [vmem:[#allocation37_spill] sm:$0xff] %v8637_v13  ;;  %v2243_v13 = vmul.f32 %v2233_v49, %v7848_v29  ;;  %v7166_v60 = vpack.c.bf16 %v2245_v2, %v2241_v61  ;;  %v2683_v61 = vsel %vm489_vm3, %v8527_v45, %v8543_v56 }
 0x3b9   :  { %v7162_v4 = vpack.c.bf16 %v2243_v13, %v2239_v14  ;;  %v10579_v14 = vmov 0.0  }
 0x3ba   :  { %v8658_v10 = vpop.permute.xlu0 %2224  ;;  %v2264_v34 = vpop.permute.xlu1 %2263 }
 0x3bb   :  { %v2285_v23 = vsel %vm94_vm0, %v2258_v62, %v2264_v34  ;;  %v6972_v62 = vld [vmem:[%s10465_s3 + $0x18] sm:$0xff] }
 0x3bc   :  { %v2298_v49 = vmul.f32 %v2285_v23, %v7824_v16 }
 0x3be   :  { %v8686_v23 = vpop.permute.xlu0 %3582  ;;  %2319 = vmatprep.subr.mxu0 %v2298_v49  ;;  %v2270_v51 = vpop.permute.xlu1 %2269  ;;  %v6974_v49 = vld [vmem:[%s10465_s3 + $0x28] sm:$0xff] }
 0x3bf   :  { %v2279_v18 = vsel %vm94_vm0, %v2270_v51, %v2276_v48  ;;  %v2282_v16 = vsel %vm94_vm0, %v2264_v34, %v2270_v51  ;;  %2320 = vmatpush1.msra.mxu0 %v2297_v11  ;;  %v6973_v48 = vld [vmem:[%s10465_s3 + $0x20] sm:$0xff]  ;;  %v2240_v34 = vmul.f32 %v2229_v53, %v7862_v36  ;;  %v2237_v11 = vsel %vm52_vm1, %v8658_v10, %v8635_v44 }
 0x3c0   :  { %v2299_v3 = vmul.f32 %v2282_v16, %v7827_v17  ;;  %6975 = vmatmul.mubr.msk.f32.vlgmr.msra.gmra.mrb[6].mxu0 %vm2305_vm9, %v6972_v62  ;;  %7163 = vmatprep.subr.bf16.mxu0 %v7162_v4  ;;  %v2300_v13 = vmul.f32 %v2279_v18, %v7821_v15  ;;  %v2687_v16 = vsel %vm489_vm3, %v8553_v58, %v8561_v31 }
 0x3c1   :  { %7165 = vmatpush1.bf16.msra.mxu0 %v7164_v50  ;;  %2385 = vmatprep.mubr.f32.mxu0 %v10579_v14  ;;  %v7168_v18 = vpack.c.bf16 %v2244_v39, %v2240_v34  ;;  %v2689_v58 = vsel %vm489_vm3, %v8535_v1, %v8519_v25  ;;  %v2696_v53 = vmul.f32 %v2690_v43, %v7899_v54 }
 0x3c2   :  { %v8703_v0 = vpop.permute.xlu0 %2660  ;;  %v8705_v47 = vpop.permute.xlu1 %3566  ;;  %2402 = vmatprep.subr.mxu1 %v2300_v13  ;;  %v2681_v25 = vsel %vm489_vm3, %v8577_v19, %v8569_v33  ;;  %v2693_v4 = vmul.f32 %v2686_v20, %v7883_v46  ;;  %v2680_v50 = vsel %vm489_vm3, %v8543_v56, %v8535_v1  ;;  %v2692_v39 = vmul.f32 %v2689_v58, %v7899_v54  ;;  %v2250_v1 = vld [vmem:[%s10465_s3] sm:$0xff] }
 0x3c3   :  { %2403 = vmatpush1.msra.mxu1 %v2299_v3  ;;  %v2697_v3 = vmul.f32 %v2687_v16, %v7883_v46  ;;  %v2246_v33 = vmul.f32 %v2237_v11, %v7865_v37  ;;  %v2699_v13 = vmul.f32 %v2681_v25, %v7908_v57  ;;  %v2694_v20 = vmul.f32 %v2683_v61, %v7904_v55 }
 0x3c4   :  { %6976 = vmatmul.mubr.msk.f32.gmra.mrb[8].mxu0 %vm2305_vm9, %v6973_v48  ;;  %6978 = vmatmul.mubr.msk.f32.vlgmr.msra.gmra.mrb[6].mxu1 %vm2305_vm9, %v6972_v62  ;;  %v7172_v16 = vpack.c.bf16 %v2696_v53, %v2692_v39  ;;  %v2929_v53 = vsel %vm720_vm4, %v8601_v5, %v8585_v30  ;;  %v2925_v25 = vsel %vm720_vm4, %v8551_v22, %v8559_v59 }
 0x3c5   :  { %7167 = vmatprep.subr.bf16.mxu1 %v7166_v60  ;;  %2391 = vmatprep.mubr.f32.mxu0 %v10579_v14  ;;  %v2919_v61 = vsel %vm720_vm4, %v8575_v42, %v8567_v9 }
 0x3c6   :  { %7169 = vmatpush1.bf16.msra.mxu1 %v7168_v18  ;;  %v8733_v8 = vpop.permute.xlu0 %2678  ;;  %v2213_v62 = vpop.permute.xlu1 %2212  ;;  %2468 = vmatprep.mubr.f32.mxu1 %v10579_v14 }
 0x3c7   :  { %v2234_v51 = vsel %vm52_vm1, %v8635_v44, %v2213_v62  ;;  %v2684_v44 = vsel %vm489_vm3, %v8561_v31, %v8577_v19  ;;  %v7170_v19 = vpack.c.bf16 %v2697_v3, %v2693_v4 }
 0x3c8   :  { %6977 = vmatmul.mubr.msk.f32.gmra.mrb[10].mxu0 %vm2305_vm9, %v6974_v49  ;;  %v2247_v2 = vmul.f32 %v2234_v51, %v7848_v29  ;;  %6979 = vmatmul.mubr.msk.f32.gmra.mrb[8].mxu1 %vm2305_vm9, %v6973_v48  ;;  %v2695_v48 = vmul.f32 %v2680_v50, %v7908_v57  ;;  %v2698_v45 = vmul.f32 %v2684_v44, %v7904_v55  ;;  %v2252_v51 = vld [vmem:[%s10465_s3 + $0x10] sm:$0xff] }
 0x3c9   :  { %2554 = vmatprep.mubr.f32.mxu0 %v10579_v14  ;;  %2474 = vmatprep.mubr.f32.mxu1 %v10579_v14  ;;  %v2691_v50 = vsel %vm489_vm3, %v8733_v8, %v8703_v0  ;;  %v2935_v44 = vmul.f32 %v2929_v53, %v7952_v26  ;;  %v6989_v53 = vld [vmem:[%s10465_s3 + $0x40] sm:$0xff] }
 0x3ca   :  { %v8768_v34 = vpop.permute.xlu0 %3809  ;;  %2494 = vmatprep.subr.mxu0 %v2247_v2  ;;  %v2219_v31 = vpop.permute.xlu1 %2218  ;;  %v7174_v11 = vpack.c.bf16 %v2699_v13, %v2695_v48 }
 0x3cb   :  { %v2228_v60 = vsel %vm52_vm1, %v2219_v31, %v8658_v10  ;;  %v2231_v18 = vsel %vm52_vm1, %v2213_v62, %v2219_v31  ;;  %2495 = vmatpush1.msra.mxu0 %v2246_v33  ;;  %v2251_v10 = vld [vmem:[%s10465_s3 + $0x8] sm:$0xff]  ;;  %v7176_v62 = vpack.c.bf16 %v2698_v45, %v2694_v20 }
 0x3cc   :  { %v2248_v56 = vmul.f32 %v2231_v18, %v7862_v36  ;;  %6981 = vmatmul.mubr.msk.f32.vlgmr.msra.gmra.mrb[6].mxu0 %vm2305_vm9, %v2250_v1  ;;  %7171 = vmatprep.subr.bf16.mxu0 %v7170_v19  ;;  %v2249_v43 = vmul.f32 %v2228_v60, %v7857_v35  ;;  %v2922_v19 = vsel %vm720_vm4, %v8559_v59, %v8575_v42 }
 0x3cd   :  { %6980 = vmatmul.mubr.msk.f32.gmra.mrb[10].mxu1 %vm2305_vm9, %v6974_v49  ;;  %7173 = vmatpush1.bf16.msra.mxu0 %v7172_v16  ;;  %v2926_v49 = vsel %vm720_vm4, %v8585_v30, %v8593_v12  ;;  %v2928_v30 = vsel %vm720_vm4, %v8567_v9, %v8551_v22  ;;  %v2920_v22 = vsel %vm720_vm4, %v8609_v41, %v8601_v5  ;;  %v6987_v9 = vld [vmem:[%s10465_s3 + $0x30] sm:$0xff] }
 0x3ce   :  { %v8786_v58 = vpop.permute.xlu0 %2899  ;;  %2577 = vmatprep.subr.mxu1 %v2249_v43  ;;  %v8788_v3 = vpop.permute.xlu1 %3584  ;;  %2560 = vmatprep.mubr.f32.mxu0 %v10579_v14  ;;  %v2936_v4 = vmul.f32 %v2926_v49, %v7925_v6  ;;  %v2931_v31 = vmul.f32 %v2928_v30, %v7952_v26  ;;  %v2923_v5 = vsel %vm720_vm4, %v8593_v12, %v8609_v41 }
 0x3cf   :  { %2578 = vmatpush1.msra.mxu1 %v2248_v56  ;;  %2637 = vmatprep.mubr.f32.mxu1 %v10579_v14  ;;  %v2938_v48 = vmul.f32 %v2920_v22, %v7944_v24  ;;  %v2934_v60 = vmul.f32 %v2919_v61, %v7944_v24  ;;  %v2937_v59 = vmul.f32 %v2923_v5, %v7955_v28  ;;  %v10580_v5 = vld [vmem:[#allocation28_spill] sm:$0xff] }
 0x3d0   :  { %6982 = vmatmul.mubr.msk.f32.gmra.mrb[8].mxu0 %vm2305_vm9, %v2251_v10  ;;  %7175 = vmatprep.subr.bf16.mxu1 %v7174_v11  ;;  %v7180_v18 = vpack.c.bf16 %v2935_v44, %v2931_v31  ;;  %v6996_v44 = vld [vmem:[%s10465_s3 + $0x48] sm:$0xff]  ;;  %v3353_v22 = vsel %vm1142_vm5, %v8615_v40, %v8621_v63  ;;  %v7188_v31 = vpack.c.bf16 %v8333_v27, %v8315_v38  ;;  %v6997_v38 = vld [vmem:[%s10465_s3 + $0x50] sm:$0xff]  ;;  %v10582_v27 = vld [vmem:[#allocation33_spill] sm:$0xff] }
 0x3d1   :  { %6984 = vmatmul.mubr.msk.f32.vlgmr.msra.gmra.mrb[6].mxu1 %vm2305_vm9, %v2250_v1  ;;  %2566 = vmatprep.mubr.f32.mxu0 %v10579_v14  ;;  %v2932_v1 = vmul.f32 %v2925_v25, %v7925_v6  ;;  %v7182_v49 = vpack.c.bf16 %v2938_v48, %v2934_v60 }
 0x3d2   :  { %7177 = vmatpush1.bf16.msra.mxu1 %v7176_v62  ;;  %v8819_v2 = vpop.permute.xlu0 %2917  ;;  %v2667_v39 = vpop.permute.xlu1 %2666  ;;  %2643 = vmatprep.mubr.f32.mxu1 %v10579_v14 }
 0x3d3   :  { %v2688_v33 = vsel %vm489_vm3, %v8703_v0, %v2667_v39  ;;  %v2700_v0 = vmul.f32 %v2691_v50, %v7899_v54  ;;  %v7178_v12 = vpack.c.bf16 %v2936_v4, %v2932_v1  ;;  %v2930_v25 = vsel %vm720_vm4, %v8819_v2, %v8786_v58 }
 0x3d4   :  { %6983 = vmatmul.mubr.msk.f32.gmra.mrb[10].mxu0 %vm2305_vm9, %v2252_v51  ;;  %v2701_v13 = vmul.f32 %v2688_v33, %v7883_v46  ;;  %v7186_v33 = vpack.c.bf16 %v8340_v32, %v8324_v52 }
 0x3d5   :  { %6985 = vmatmul.mubr.msk.f32.gmra.mrb[8].mxu1 %vm2305_vm9, %v2251_v10  ;;  %2781 = vmatprep.mubr.f32.mxu0 %v10579_v14  ;;  %v2933_v10 = vmul.f32 %v2922_v19, %v7955_v28  ;;  %v10583_v19 = vld [vmem:[#allocation34_spill] sm:$0xff] }
 0x3d6   :  { %v8853_v16 = vpop.permute.xlu0 %3815  ;;  %2721 = vmatprep.subr.mxu0 %v2701_v13  ;;  %v2673_v41 = vpop.permute.xlu1 %2672  ;;  %2649 = vmatprep.mubr.f32.mxu1 %v10579_v14  ;;  %v3359_v48 = vsel %vm1142_vm5, %v10583_v19, %v10582_v27 }
 0x3d7   :  { %v2682_v45 = vsel %vm489_vm3, %v2673_v41, %v8733_v8  ;;  %v2685_v56 = vsel %vm489_vm3, %v2667_v39, %v2673_v41  ;;  %2722 = vmatpush1.msra.mxu0 %v2700_v0  ;;  %v6988_v8 = vld [vmem:[%s10465_s3 + $0x38] sm:$0xff]  ;;  %v7184_v62 = vpack.c.bf16 %v2937_v59, %v2933_v10  ;;  %v2939_v39 = vmul.f32 %v2930_v25, %v7952_v26  ;;  %v10584_v41 = vld [vmem:[#allocation26_spill] sm:$0xff] }
 0x3d8   :  { %v2702_v42 = vmul.f32 %v2685_v56, %v7904_v55  ;;  %6990 = vmatmul.mubr.msk.f32.vlgmr.msra.gmra.mrb[6].mxu0 %vm2305_vm9, %v6987_v9  ;;  %7179 = vmatprep.subr.bf16.mxu0 %v7178_v12  ;;  %v2703_v43 = vmul.f32 %v2682_v45, %v7908_v57  ;;  %v3352_v0 = vsel %vm1142_vm5, %v10580_v5, %v8591_v21  ;;  %v10585_v45 = vld [vmem:[#allocation20_spill] sm:$0xff]  ;;  %v10586_v56 = vld [vmem:[#allocation22_spill] sm:$0xff]  ;;  %v10589_v10 = vld [vmem:[#allocation21_spill] sm:$0xff] }
 0x3d9   :  { %6986 = vmatmul.mubr.msk.f32.gmra.mrb[10].mxu1 %vm2305_vm9, %v2252_v51  ;;  %7181 = vmatpush1.bf16.msra.mxu0 %v7180_v18  ;;  %v7190_v59 = vpack.c.bf16 %v10586_v56, %v10585_v45  ;;  %v10591_v25 = vld [vmem:[#allocation5_spill] sm:$0xff]  ;;  %v10598_v56 = vld [vmem:[#allocation36_spill] sm:$0xff] }
 0x3da   :  { %v8871_v20 = vpop.permute.xlu0 %3803  ;;  %2804 = vmatprep.subr.mxu1 %v2703_v43  ;;  %v8873_v11 = vpop.permute.xlu1 %3811  ;;  %2787 = vmatprep.mubr.f32.mxu0 %v10579_v14  ;;  %v10588_v43 = vld [vmem:[#allocation30_spill] sm:$0xff]  ;;  %v10597_v45 = vld [vmem:[#allocation37_spill] sm:$0xff] }
 0x3db   :  { %2805 = vmatpush1.msra.mxu1 %v2702_v42  ;;  %2864 = vmatprep.mubr.f32.mxu1 %v10579_v14  ;;  %v10587_v42 = vld [vmem:[#allocation29_spill] sm:$0xff] }
 0x3dc   :  { %6991 = vmatmul.mubr.msk.f32.gmra.mrb[8].mxu0 %vm2305_vm9, %v6988_v8  ;;  %7183 = vmatprep.subr.bf16.mxu1 %v7182_v49  ;;  %v10590_v49 = vld [vmem:[#allocation23_spill] sm:$0xff] }
 0x3dd   :  { %6993 = vmatmul.mubr.msk.f32.vlgmr.msra.gmra.mrb[6].mxu1 %vm2305_vm9, %v6987_v9  ;;  %2793 = vmatprep.mubr.f32.mxu0 %v10579_v14 }
 0x3de   :  { %7185 = vmatpush1.bf16.msra.mxu1 %v7184_v62  ;;  %v8887_v51 = vpop.permute.xlu0 %3821  ;;  %v2906_v30 = vpop.permute.xlu1 %2905  ;;  %2870 = vmatprep.mubr.f32.mxu1 %v10579_v14  ;;  %v7192_v62 = vpack.c.bf16 %v10590_v49, %v10589_v10  ;;  %v10600_v10 = vld [vmem:[#allocation31_spill] sm:$0xff] }
 0x3df   :  { %v2927_v4 = vsel %vm720_vm4, %v8786_v58, %v2906_v30 }
 0x3e0   :  { %6992 = vmatmul.mubr.msk.f32.gmra.mrb[10].mxu0 %vm2305_vm9, %v6989_v53  ;;  %v2940_v50 = vmul.f32 %v2927_v4, %v7925_v6 }
 0x3e1   :  { %6994 = vmatmul.mubr.msk.f32.gmra.mrb[8].mxu1 %vm2305_vm9, %v6988_v8  ;;  %3020 = vmatprep.mubr.f32.mxu0 %v10579_v14  ;;  %v3358_v8 = vsel %vm1142_vm5, %v10588_v43, %v10587_v42 }
 0x3e2   :  { %2960 = vmatprep.subr.mxu0 %v2940_v50  ;;  %v2912_v58 = vpop.permute.xlu1 %2911  ;;  %2876 = vmatprep.mubr.f32.mxu1 %v10579_v14  ;;  %v8908_v1 = vpop.permute.xlu0 %4048  ;;  %v10592_v50 = vld [vmem:[#allocation24_spill] sm:$0xff] }
 0x3e3   :  { %v2921_v61 = vsel %vm720_vm4, %v2912_v58, %v8819_v2  ;;  %v2924_v13 = vsel %vm720_vm4, %v2906_v30, %v2912_v58  ;;  %2961 = vmatpush1.msra.mxu0 %v2939_v39  ;;  %v10581_v2 = vld [vmem:[#allocation4_spill] sm:$0xff]  ;;  %v3368_v30 = vmul.f32 %v3359_v48, %v10591_v25  ;;  %v3364_v58 = vmul.f32 %v3358_v8, %v10591_v25 }
 0x3e4   :  { %v2941_v52 = vmul.f32 %v2924_v13, %v7955_v28  ;;  %6999 = vmatmul.mubr.msk.f32.vlgmr.msra.gmra.mrb[6].mxu0 %vm2305_vm9, %v6996_v44  ;;  %7187 = vmatprep.subr.bf16.mxu0 %v7186_v33  ;;  %v2942_v32 = vmul.f32 %v2921_v61, %v7944_v24  ;;  %v3366_v9 = vmul.f32 %v3353_v22, %v10581_v2  ;;  %v6998_v22 = vld [vmem:[%s10465_s3 + $0x58] sm:$0xff]  ;;  %v10594_v61 = vld [vmem:[#allocation6_spill] sm:$0xff]  ;;  %v10599_v8 = vld [vmem:[#allocation32_spill] sm:$0xff] }
 0x3e5   :  { %6995 = vmatmul.mubr.msk.f32.gmra.mrb[10].mxu1 %vm2305_vm9, %v6989_v53  ;;  %7189 = vmatpush1.bf16.msra.mxu0 %v7188_v31  ;;  %v3362_v60 = vmul.f32 %v3352_v0, %v10581_v2  ;;  %v3356_v53 = vsel %vm1142_vm5, %v10582_v27, %v8615_v40  ;;  %v3355_v40 = vsel %vm1142_vm5, %v10587_v42, %v10580_v5 }
 0x3e6   :  { %3043 = vmatprep.subr.mxu1 %v2942_v32  ;;  %3151 = vmatprep.subr.mxu0 %v10584_v41  ;;  %v8934_v12 = vpop.permute.xlu1 %3817  ;;  %v3365_v13 = vmul.f32 %v3356_v53, %v10594_v61  ;;  %v3350_v31 = vsel %vm1142_vm5, %v8621_v63, %v10583_v19  ;;  %v7198_v5 = vpack.c.bf16 %v3368_v30, %v3364_v58  ;;  %v10596_v19 = vld [vmem:[#allocation7_spill] sm:$0xff]  ;;  %v7007_v58 = vld [vmem:[%s10465_s3 + $0x70] sm:$0xff] }
 0x3e7   :  { %v8937_v18 = vpop.permute.xlu0 %3335  ;;  %3026 = vmatprep.mubr.f32.mxu0 %v10579_v14  ;;  %3044 = vmatpush1.msra.mxu1 %v2941_v52  ;;  %v7194_v4 = vpack.c.bf16 %v3366_v9, %v3362_v60  ;;  %v3361_v0 = vmul.f32 %v3355_v40, %v10594_v61  ;;  %v10595_v52 = vld [vmem:[#allocation27_spill] sm:$0xff]  ;;  %v7005_v9 = vld [vmem:[%s10465_s3 + $0x60] sm:$0xff]  ;;  %v3349_v63 = vsel %vm1142_vm5, %v8591_v21, %v10588_v43 }
 0x3e8   :  { %3103 = vmatprep.mubr.f32.mxu1 %v10579_v14  ;;  %7000 = vmatmul.mubr.msk.f32.gmra.mrb[8].mxu0 %vm2305_vm9, %v6997_v38  ;;  %v3367_v48 = vmul.f32 %v3350_v31, %v10596_v19  ;;  %v3363_v41 = vmul.f32 %v3349_v63, %v10596_v19  ;;  %v7006_v21 = vld [vmem:[%s10465_s3 + $0x68] sm:$0xff]  ;;  %v3591_v49 = vsel %vm1373_vm6, %v10600_v10, %v10599_v8 }
 0x3e9   :  { %7002 = vmatmul.mubr.msk.f32.vlgmr.msra.gmra.mrb[6].mxu1 %vm2305_vm9, %v6996_v44  ;;  %7191 = vmatprep.subr.bf16.mxu1 %v7190_v59  ;;  %v10593_v44 = vld [vmem:[#allocation25_spill] sm:$0xff]  ;;  %v3592_v59 = vsel %vm1373_vm6, %v10598_v56, %v10597_v45  ;;  %v10601_v53 = vld [vmem:[#allocation35_spill] sm:$0xff] }
 0x3ea   :  { %3152 = vmatpush1.msra.mxu0 %v10592_v50  ;;  %7193 = vmatpush1.bf16.msra.mxu1 %v7192_v62  ;;  %v8957_v39 = vpop.permute.xlu1 %3805  ;;  %v7200_v43 = vpack.c.bf16 %v3367_v48, %v3363_v41  ;;  %v3595_v62 = vsel %vm1373_vm6, %v8705_v47, %v10598_v56  ;;  %v3594_v30 = vsel %vm1373_vm6, %v10601_v53, %v10600_v10  ;;  %v10604_v41 = vld [vmem:[#allocation9_spill] sm:$0xff] }
 0x3eb   :  { %v8967_v33 = vpop.permute.xlu0 %3329  ;;  %3234 = vmatprep.subr.mxu1 %v10593_v44  ;;  %7195 = vmatprep.subr.bf16.mxu0 %v7194_v4  ;;  %v10602_v4 = vld [vmem:[#allocation8_spill] sm:$0xff]  ;;  %v3598_v44 = vsel %vm1373_vm6, %v8788_v3, %v8705_v47  ;;  %v3588_v48 = vsel %vm1373_vm6, %v10599_v8, %v8686_v23 }
 0x3ec   :  { %3032 = vmatprep.mubr.f32.mxu0 %v10579_v14  ;;  %3109 = vmatprep.mubr.f32.mxu1 %v10579_v14  ;;  %v3605_v50 = vmul.f32 %v3592_v59, %v10602_v4  ;;  %v3607_v56 = vmul.f32 %v3598_v44, %v10604_v41  ;;  %v3831_v44 = vsel %vm1604_vm7, %v8873_v11, %v8934_v12 }
 0x3ed   :  { %7001 = vmatmul.mubr.msk.f32.gmra.mrb[10].mxu0 %vm2305_vm9, %v6998_v22  ;;  %7003 = vmatmul.mubr.msk.f32.gmra.mrb[8].mxu1 %vm2305_vm9, %v6997_v38  ;;  %v7196_v38 = vpack.c.bf16 %v3365_v13, %v3361_v0  ;;  %v3597_v0 = vsel %vm1373_vm6, %v8686_v23, %v10601_v53 }
 0x3ee   :  { %3235 = vmatpush1.msra.mxu1 %v10595_v52  ;;  %v8981_v32 = vpop.permute.xlu1 %3823  ;;  %3115 = vmatprep.mubr.f32.mxu1 %v10579_v14  ;;  %v10603_v52 = vld [vmem:[#allocation10_spill] sm:$0xff] }
 0x3ef   :  { %v8991_v27 = vpop.permute.xlu0 %4054  ;;  %7199 = vmatprep.subr.bf16.mxu1 %v7198_v5  ;;  %3211 = vmatprep.mubr.f32.mxu0 %v10579_v14  ;;  %v3601_v5 = vmul.f32 %v3591_v49, %v10602_v4  ;;  %v3600_v47 = vmul.f32 %v3594_v30, %v10603_v52  ;;  %v10605_v49 = vld [vmem:[#allocation11_spill] sm:$0xff] }
 0x3f1   :  { %7004 = vmatmul.mubr.msk.f32.gmra.mrb[10].mxu1 %vm2305_vm9, %v6998_v22  ;;  %7008 = vmatmul.mubr.msk.f32.vlgmr.msra.gmra.mrb[6].mxu0 %vm2305_vm9, %v7005_v9  ;;  %v3357_v22 = vsel %vm1142_vm5, %v8967_v33, %v8937_v18 }
 0x3f2   :  { %7197 = vmatpush1.bf16.msra.mxu0 %v7196_v38  ;;  %v8998_v60 = vpop.permute.xlu1 %4050  ;;  %3217 = vmatprep.mubr.f32.mxu0 %v10579_v14  ;;  %v3369_v38 = vmul.f32 %v3357_v22, %v10594_v61  ;;  %v7015_v22 = vld [vmem:[%s10465_s3 + $0x80] sm:$0xff] }
 0x3f3   :  { %v9008_v42 = vpop.permute.xlu0 %3574  ;;  %3294 = vmatprep.mubr.f32.mxu1 %v10579_v14 }
 0x3f5   :  { %7009 = vmatmul.mubr.msk.f32.gmra.mrb[8].mxu0 %vm2305_vm9, %v7006_v21  ;;  %7011 = vmatmul.mubr.msk.f32.vlgmr.msra.gmra.mrb[6].mxu1 %vm2305_vm9, %v7005_v9  ;;  %v3604_v9 = vmul.f32 %v3595_v62, %v10603_v52 }
 0x3f6   :  { %7201 = vmatpush1.bf16.msra.mxu1 %v7200_v43  ;;  %v3342_v40 = vpop.permute.xlu1 %3341  ;;  %3223 = vmatprep.mubr.f32.mxu0 %v10579_v14  ;;  %v3603_v43 = vmul.f32 %v3597_v0, %v10604_v41  ;;  %v3834_v0 = vsel %vm1604_vm7, %v8957_v39, %v8873_v11  ;;  %v7016_v11 = vld [vmem:[%s10465_s3 + $0x88] sm:$0xff] }
 0x3f7   :  { %v9038_v13 = vpop.permute.xlu0 %3568  ;;  %v3354_v31 = vsel %vm1142_vm5, %v8937_v18, %v3342_v40  ;;  %3300 = vmatprep.mubr.f32.mxu1 %v10579_v14  ;;  %v3589_v18 = vsel %vm1373_vm6, %v10597_v45, %v8788_v3  ;;  %v7014_v3 = vld [vmem:[%s10465_s3 + $0x78] sm:$0xff]  ;;  %v7202_v45 = vpack.c.bf16 %v3605_v50, %v3601_v5  ;;  %v7204_v8 = vpack.c.bf16 %v3604_v9, %v3600_v47 }
 0x3f8   :  { %v3370_v63 = vmul.f32 %v3354_v31, %v10581_v2  ;;  %v3606_v62 = vmul.f32 %v3589_v18, %v10605_v49  ;;  %v3602_v50 = vmul.f32 %v3588_v48, %v10605_v49  ;;  %v3830_v5 = vsel %vm1604_vm7, %v8768_v34, %v8853_v16 }
 0x3f9   :  { %7010 = vmatmul.mubr.msk.f32.gmra.mrb[10].mxu0 %vm2305_vm9, %v7007_v58  ;;  %7012 = vmatmul.mubr.msk.f32.gmra.mrb[8].mxu1 %vm2305_vm9, %v7006_v21  ;;  %v3833_v9 = vsel %vm1604_vm7, %v8871_v20, %v8768_v34  ;;  %v3596_v18 = vsel %vm1373_vm6, %v9038_v13, %v9008_v42  ;;  %v3837_v34 = vsel %vm1604_vm7, %v8981_v32, %v8957_v39 }
 0x3fa   :  { %3390 = vmatprep.subr.mxu0 %v3370_v63  ;;  %v3348_v59 = vpop.permute.xlu1 %3347  ;;  %3306 = vmatprep.mubr.f32.mxu1 %v10579_v14  ;;  %v10606_v63 = vld [vmem:[#allocation12_spill] sm:$0xff]  ;;  %v3828_v39 = vsel %vm1604_vm7, %v8934_v12, %v8981_v32 }
 0x3fb   :  { %v9069_v10 = vpop.permute.xlu0 %4042  ;;  %v3351_v21 = vsel %vm1142_vm5, %v3342_v40, %v3348_v59  ;;  %v3360_v23 = vsel %vm1142_vm5, %v3348_v59, %v8967_v33  ;;  %3391 = vmatpush1.msra.mxu0 %v3369_v38  ;;  %3450 = vmatprep.mubr.f32.mxu0 %v10579_v14  ;;  %v7206_v40 = vpack.c.bf16 %v3607_v56, %v3603_v43  ;;  %v7023_v12 = vld [vmem:[%s10465_s3 + $0x90] sm:$0xff] }
 0x3fc   :  { %v3371_v53 = vmul.f32 %v3351_v21, %v10596_v19  ;;  %7203 = vmatprep.subr.bf16.mxu0 %v7202_v45  ;;  %v3372_v30 = vmul.f32 %v3360_v23, %v10591_v25  ;;  %v3844_v47 = vmul.f32 %v3831_v44, %v10606_v63  ;;  %v3840_v56 = vmul.f32 %v3830_v5, %v10606_v63 }
 0x3fd   :  { %7013 = vmatmul.mubr.msk.f32.gmra.mrb[10].mxu1 %vm2305_vm9, %v7007_v58  ;;  %7017 = vmatmul.mubr.msk.f32.vlgmr.msra.gmra.mrb[6].mxu0 %vm2305_vm9, %v7014_v3  ;;  %v7208_v58 = vpack.c.bf16 %v3606_v62, %v3602_v50  ;;  %v3836_v59 = vsel %vm1604_vm7, %v8887_v51, %v8871_v20  ;;  %v3827_v20 = vsel %vm1604_vm7, %v8853_v16, %v8887_v51 }
 0x3fe   :  { %7205 = vmatpush1.bf16.msra.mxu0 %v7204_v8  ;;  %3473 = vmatprep.subr.mxu1 %v3372_v30  ;;  %v9083_v33 = vpop.permute.xlu1 %4056  ;;  %v10608_v8 = vld [vmem:[#allocation13_spill] sm:$0xff]  ;;  %v7210_v32 = vpack.c.bf16 %v3844_v47, %v3840_v56 }
 0x3ff   :  { %v9092_v31 = vpop.permute.xlu0 %3813  ;;  %3456 = vmatprep.mubr.f32.mxu0 %v10579_v14  ;;  %3474 = vmatpush1.msra.mxu1 %v3371_v53  ;;  %v3846_v62 = vmul.f32 %v3837_v34, %v10608_v8  ;;  %v3842_v30 = vmul.f32 %v3836_v59, %v10608_v8  ;;  %v4070_v47 = vsel %vm1835_vm8, %v8998_v60, %v9083_v33 }
 0x400   :  { %3533 = vmatprep.mubr.f32.mxu1 %v10579_v14  ;;  %7207 = vmatprep.subr.bf16.mxu1 %v7206_v40 }
 0x401   :  { %7018 = vmatmul.mubr.msk.f32.gmra.mrb[8].mxu0 %vm2305_vm9, %v7015_v22  ;;  %7020 = vmatmul.mubr.msk.f32.vlgmr.msra.gmra.mrb[6].mxu1 %vm2305_vm9, %v7014_v3  ;;  %v10607_v3 = vld [vmem:[#allocation14_spill] sm:$0xff] }
 0x402   :  { %7209 = vmatpush1.bf16.msra.mxu1 %v7208_v58  ;;  %v3581_v38 = vpop.permute.xlu1 %3580  ;;  %3462 = vmatprep.mubr.f32.mxu0 %v10579_v14  ;;  %v3843_v45 = vmul.f32 %v3834_v0, %v10607_v3  ;;  %v3839_v21 = vmul.f32 %v3833_v9, %v10607_v3  ;;  %v7024_v0 = vld [vmem:[%s10465_s3 + $0x98] sm:$0xff]  ;;  %v7214_v9 = vpack.c.bf16 %v3846_v62, %v3842_v30 }
 0x403   :  { %v3593_v48 = vsel %vm1373_vm6, %v9008_v42, %v3581_v38  ;;  %3539 = vmatprep.mubr.f32.mxu1 %v10579_v14  ;;  %v3608_v42 = vmul.f32 %v3596_v18, %v10603_v52  ;;  %v9140_v23 = vpop.permute.xlu0 %3807 }
 0x404   :  { %v3609_v43 = vmul.f32 %v3593_v48, %v10602_v4  ;;  %v7212_v51 = vpack.c.bf16 %v3843_v45, %v3839_v21  ;;  %v10610_v48 = vld [vmem:[#allocation16_spill] sm:$0xff]  ;;  %v3835_v59 = vsel %vm1604_vm7, %v9140_v23, %v9092_v31 }
 0x405   :  { %7019 = vmatmul.mubr.msk.f32.gmra.mrb[10].mxu0 %vm2305_vm9, %v7016_v11  ;;  %7021 = vmatmul.mubr.msk.f32.gmra.mrb[8].mxu1 %vm2305_vm9, %v7015_v22  ;;  %v10609_v22 = vld [vmem:[#allocation15_spill] sm:$0xff]  ;;  %v4083_v56 = vmul.f32 %v4070_v47, %v10610_v48 }
 0x406   :  { %3629 = vmatprep.subr.mxu0 %v3609_v43  ;;  %v3587_v53 = vpop.permute.xlu1 %3586  ;;  %3545 = vmatprep.mubr.f32.mxu1 %v10579_v14  ;;  %v3845_v40 = vmul.f32 %v3828_v39, %v10609_v22  ;;  %v3841_v5 = vmul.f32 %v3827_v20, %v10609_v22  ;;  %v7025_v43 = vld [vmem:[%s10465_s3 + $0xa0] sm:$0xff] }
 0x407   :  { %v3590_v50 = vsel %vm1373_vm6, %v3581_v38, %v3587_v53  ;;  %v3599_v16 = vsel %vm1373_vm6, %v3587_v53, %v9038_v13  ;;  %3630 = vmatpush1.msra.mxu0 %v3608_v42  ;;  %3689 = vmatprep.mubr.f32.mxu0 %v10579_v14  ;;  %v4061_v18 = vpop.permute.xlu0 %4060  ;;  %v10611_v42 = vld [vmem:[#allocation18_spill] sm:$0xff]  ;;  %v3847_v53 = vmul.f32 %v3835_v59, %v10607_v3 }
 0x408   :  { %v3610_v44 = vmul.f32 %v3590_v50, %v10605_v49  ;;  %7211 = vmatprep.subr.bf16.mxu0 %v7210_v32  ;;  %v3611_v58 = vmul.f32 %v3599_v16, %v10604_v41  ;;  %v7216_v38 = vpack.c.bf16 %v3845_v40, %v3841_v5  ;;  %v4075_v5 = vsel %vm1835_vm8, %v4061_v18, %v9069_v10 }
 0x409   :  { %7022 = vmatmul.mubr.msk.f32.gmra.mrb[10].mxu1 %vm2305_vm9, %v7016_v11  ;;  %7026 = vmatmul.mubr.msk.f32.vlgmr.msra.gmra.mrb[6].mxu0 %vm2305_vm9, %v7023_v12  ;;  %v4069_v11 = vsel %vm1835_vm8, %v8908_v1, %v8991_v27 }
 0x40a   :  { %7213 = vmatpush1.bf16.msra.mxu0 %v7212_v51  ;;  %3712 = vmatprep.subr.mxu1 %v3611_v58  ;;  %v4045_v13 = vpop.permute.xlu1 %4044  ;;  %v4079_v39 = vmul.f32 %v4069_v11, %v10610_v48  ;;  %v4066_v58 = vsel %vm1835_vm8, %v8991_v27, %v4061_v18 }
 0x40b   :  { %3695 = vmatprep.mubr.f32.mxu0 %v10579_v14  ;;  %3713 = vmatpush1.msra.mxu1 %v3610_v44  ;;  %v4073_v34 = vsel %vm1835_vm8, %v4045_v13, %v8998_v60  ;;  %v4072_v60 = vsel %vm1835_vm8, %v9069_v10, %v8908_v1  ;;  %v10612_v10 = vld [vmem:[#allocation19_spill] sm:$0xff] }
 0x40c   :  { %3772 = vmatprep.mubr.f32.mxu1 %v10579_v14  ;;  %7215 = vmatprep.subr.bf16.mxu1 %v7214_v9  ;;  %v4082_v20 = vmul.f32 %v4073_v34, %v10611_v42  ;;  %v4078_v1 = vmul.f32 %v4072_v60, %v10611_v42  ;;  %v7218_v30 = vpack.c.bf16 %v4083_v56, %v4079_v39 }
 0x40d   :  { %7027 = vmatmul.mubr.msk.f32.gmra.mrb[8].mxu0 %vm2305_vm9, %v7024_v0  ;;  %7029 = vmatmul.mubr.msk.f32.vlgmr.msra.gmra.mrb[6].mxu1 %vm2305_vm9, %v7023_v12  ;;  %v4053_v12 = vpop.permute.xlu0 %4052  ;;  %v4080_v18 = vmul.f32 %v4066_v58, %v10612_v10 }
 0x40e   :  { %7217 = vmatpush1.bf16.msra.mxu1 %v7216_v38  ;;  %v3820_v45 = vpop.permute.xlu1 %3819  ;;  %3701 = vmatprep.mubr.f32.mxu0 %v10579_v14  ;;  %v7220_v51 = vpack.c.bf16 %v4082_v20, %v4078_v1  ;;  %v10613_v38 = vld [vmem:[#allocation17_spill] sm:$0xff] }
 0x40f   :  { %v3832_v21 = vsel %vm1604_vm7, %v9092_v31, %v3820_v45  ;;  %3778 = vmatprep.mubr.f32.mxu1 %v10579_v14  ;;  %v7032_v31 = vld [vmem:[%s10465_s3 + $0xa8] sm:$0xff]  ;;  %v4081_v11 = vmul.f32 %v4075_v5, %v10613_v38 }
 0x410   :  { %v3848_v62 = vmul.f32 %v3832_v21, %v10606_v63 }
 0x411   :  { %7028 = vmatmul.mubr.msk.f32.gmra.mrb[10].mxu0 %vm2305_vm9, %v7025_v43  ;;  %7030 = vmatmul.mubr.msk.f32.gmra.mrb[8].mxu1 %vm2305_vm9, %v7024_v0  ;;  %v7033_v0 = vld [vmem:[%s10465_s3 + $0xb0] sm:$0xff]  ;;  %v4047_v9 = vpop.permute.xlu0 %4046 }
 0x412   :  { %3868 = vmatprep.subr.mxu0 %v3848_v62  ;;  %v3826_v32 = vpop.permute.xlu1 %3825  ;;  %3784 = vmatprep.mubr.f32.mxu1 %v10579_v14  ;;  %v7041_v62 = vld [vmem:[%s10465_s3 + $0xc0] sm:$0xff] }
 0x413   :  { %v3829_v50 = vsel %vm1604_vm7, %v3820_v45, %v3826_v32  ;;  %v3838_v16 = vsel %vm1604_vm7, %v3826_v32, %v9140_v23  ;;  %3869 = vmatpush1.msra.mxu0 %v3847_v53  ;;  %3928 = vmatprep.mubr.f32.mxu0 %v10579_v14  ;;  %v7034_v45 = vld [vmem:[%s10465_s3 + $0xb8] sm:$0xff] }
 0x414   :  { %v3849_v40 = vmul.f32 %v3829_v50, %v10609_v22  ;;  %7219 = vmatprep.subr.bf16.mxu0 %v7218_v30  ;;  %v3850_v44 = vmul.f32 %v3838_v16, %v10608_v8  ;;  %v7043_v30 = vld [vmem:[%s10465_s3 + $0xd0] sm:$0xff] }
 0x415   :  { %7031 = vmatmul.mubr.msk.f32.gmra.mrb[10].mxu1 %vm2305_vm9, %v7025_v43  ;;  %7035 = vmatmul.mubr.msk.f32.vlgmr.msra.gmra.mrb[6].mxu0 %vm2305_vm9, %v7032_v31 }
 0x416   :  { %7221 = vmatpush1.bf16.msra.mxu0 %v7220_v51  ;;  %3951 = vmatprep.subr.mxu1 %v3850_v44  ;;  %v4063_v23 = vpop.permute.xlu1 %4062 }
 0x417   :  { %v4067_v27 = vsel %vm1835_vm8, %v9083_v33, %v4063_v23  ;;  %v4076_v47 = vsel %vm1835_vm8, %v4063_v23, %v4045_v13  ;;  %3934 = vmatprep.mubr.f32.mxu0 %v10579_v14  ;;  %3952 = vmatpush1.msra.mxu1 %v3849_v40  ;;  %v4074_v33 = vsel %vm1835_vm8, %v4047_v9, %v4053_v12 }
 0x418   :  { %v4084_v34 = vmul.f32 %v4067_v27, %v10612_v10  ;;  %v4085_v56 = vmul.f32 %v4076_v47, %v10613_v38  ;;  %4011 = vmatprep.mubr.f32.mxu1 %v10579_v14  ;;  %v4086_v39 = vmul.f32 %v4074_v33, %v10611_v42 }
 0x419   :  { %7036 = vmatmul.mubr.msk.f32.gmra.mrb[8].mxu0 %vm2305_vm9, %v7033_v0  ;;  %7038 = vmatmul.mubr.msk.f32.vlgmr.msra.gmra.mrb[6].mxu1 %vm2305_vm9, %v7032_v31  ;;  %v7042_v31 = vld [vmem:[%s10465_s3 + $0xc8] sm:$0xff] }
 0x41a   :  { %v7224_v13 = vpack.c.bf16 %v4084_v34, %v4080_v18  ;;  %v4059_v59 = vpop.permute.xlu1 %4058  ;;  %3940 = vmatprep.mubr.f32.mxu0 %v10579_v14  ;;  %4017 = vmatprep.mubr.f32.mxu1 %v10579_v14  ;;  %v7222_v43 = vpack.c.bf16 %v4085_v56, %v4081_v11 }
 0x41b   :  { %v4071_v60 = vsel %vm1835_vm8, %v4053_v12, %v4059_v59 }
 0x41c   :  { %7223 = vmatprep.subr.bf16.mxu1 %v7222_v43  ;;  %v4087_v21 = vmul.f32 %v4071_v60, %v10610_v48 }
 0x41d   :  { %7037 = vmatmul.mubr.msk.f32.gmra.mrb[10].mxu0 %vm2305_vm9, %v7034_v45  ;;  %7039 = vmatmul.mubr.msk.f32.gmra.mrb[8].mxu1 %vm2305_vm9, %v7033_v0 }
 0x41e   :  { %7225 = vmatpush1.bf16.msra.mxu1 %v7224_v13  ;;  %4107 = vmatprep.subr.mxu0 %v4087_v21  ;;  %v4065_v20 = vpop.permute.xlu1 %4064 }
 0x41f   :  { %v4068_v53 = vsel %vm1835_vm8, %v4059_v59, %v4065_v20  ;;  %v4077_v12 = vsel %vm1835_vm8, %v4065_v20, %v4047_v9  ;;  %4023 = vmatprep.mubr.f32.mxu1 %v10579_v14  ;;  %4108 = vmatpush1.msra.mxu0 %v4086_v39 }
 0x420   :  { %v4088_v1 = vmul.f32 %v4068_v53, %v10612_v10  ;;  %4167 = vmatprep.mubr.f32.mxu0 %v10579_v14  ;;  %v4089_v32 = vmul.f32 %v4077_v12, %v10613_v38 }
 0x421   :  { %7040 = vmatmul.mubr.msk.f32.gmra.mrb[10].mxu1 %vm2305_vm9, %v7034_v45  ;;  %7044 = vmatmul.mubr.msk.f32.vlgmr.msra.gmra.mrb[6].mxu0 %vm2305_vm9, %v7041_v62 }
 0x422   :  { %4190 = vmatprep.subr.mxu1 %v4089_v32  ;;  %4173 = vmatprep.mubr.f32.mxu0 %v10579_v14 }
 0x423   :  { %4191 = vmatpush1.msra.mxu1 %v4088_v1  ;;  %4250 = vmatprep.mubr.f32.mxu1 %v10579_v14 }
 0x425   :  { %7045 = vmatmul.mubr.msk.f32.gmra.mrb[8].mxu0 %vm2305_vm9, %v7042_v31  ;;  %7047 = vmatmul.mubr.msk.f32.vlgmr.msra.gmra.mrb[6].mxu1 %vm2305_vm9, %v7041_v62 }
 0x426   :  { %4179 = vmatprep.mubr.f32.mxu0 %v10579_v14  ;;  %4256 = vmatprep.mubr.f32.mxu1 %v10579_v14 }
 0x429   :  { %7046 = vmatmul.mubr.msk.f32.gmra.mrb[10].mxu0 %vm2305_vm9, %v7043_v30  ;;  %7048 = vmatmul.mubr.msk.f32.gmra.mrb[8].mxu1 %vm2305_vm9, %v7042_v31 }
 0x42a   :  { %4262 = vmatprep.mubr.f32.mxu1 %v10579_v14  ;;  %4606 = vmatprep.mubr.f32.mxu0 %v10579_v14 }
 0x42d   :  { %7049 = vmatmul.mubr.msk.f32.gmra.mrb[10].mxu1 %vm2305_vm9, %v7043_v30 }
 0x42e   :  { %4695 = vmatprep.mubr.f32.mxu1 %v10579_v14 }
 0x4f4   :  { %v9288_v50 = vpop.f32.mrb[6].mxu0 }
 0x4f5   :  { %v4299_v16 = vmul.f32 %v9288_v50, %v9288_v50  ;;  %v9292_v51 = vpop.f32.mrb[7].mxu0 }
 0x4f6   :  { %v4281_v40 = vadd.f32 %v9292_v51, %v9288_v50  ;;  %v4300_v44 = vmul.f32 %v9292_v51, %v9292_v51 }
 0x4f8   :  { %v4311_v58 = vadd.f32 %v4300_v44, %v4299_v16  ;;  %v9298_v5 = vpop.f32.mrb[8].mxu0  ;;  %v9300_v23 = vpop.f32.mrb[6].mxu1 }
 0x4f9   :  { %v4303_v0 = vmul.f32 %v9298_v5, %v9298_v5  ;;  %v4282_v9 = vadd.f32 %v4281_v40, %v9300_v23  ;;  %v4301_v27 = vmul.f32 %v9300_v23, %v9300_v23  ;;  %v9307_v47 = vpop.f32.mrb[9].mxu0  ;;  %v9309_v18 = vpop.f32.mrb[7].mxu1 }
 0x4fa   :  { %v4286_v11 = vadd.f32 %v9307_v47, %v9298_v5  ;;  %v4304_v34 = vmul.f32 %v9307_v47, %v9307_v47  ;;  %v4302_v56 = vmul.f32 %v9309_v18, %v9309_v18 }
 0x4fb   :  { %v4312_v33 = vadd.f32 %v4311_v58, %v4301_v27  ;;  %v4283_v13 = vadd.f32 %v4282_v9, %v9309_v18 }
 0x4fc   :  { %v4316_v59 = vadd.f32 %v4304_v34, %v4303_v0  ;;  %v9318_v45 = vpop.f32.mrb[10].mxu0  ;;  %v9320_v43 = vpop.f32.mrb[8].mxu1 }
 0x4fd   :  { %v4307_v60 = vmul.f32 %v9318_v45, %v9318_v45  ;;  %v4287_v21 = vadd.f32 %v4286_v11, %v9320_v43  ;;  %v4305_v39 = vmul.f32 %v9320_v43, %v9320_v43  ;;  %v9327_v20 = vpop.f32.mrb[11].mxu0  ;;  %4284 = vadd.xlane.f32.xlu0 %v4283_v13  ;;  %v9329_v62 = vpop.f32.mrb[9].mxu1  ;;  %v4313_v53 = vadd.f32 %v4312_v33, %v4302_v56 }
 0x4fe   :  { %v4291_v12 = vadd.f32 %v9327_v20, %v9318_v45  ;;  %v4308_v1 = vmul.f32 %v9327_v20, %v9327_v20  ;;  %v4306_v32 = vmul.f32 %v9329_v62, %v9329_v62 }
 0x4ff   :  { %v4317_v31 = vadd.f32 %v4316_v59, %v4305_v39  ;;  %v4288_v30 = vadd.f32 %v4287_v21, %v9329_v62 }
 0x500   :  { %v4321_v16 = vadd.f32 %v4308_v1, %v4307_v60  ;;  %v9338_v40 = vpop.f32.mrb[10].mxu1 }
 0x501   :  { %v4292_v44 = vadd.f32 %v4291_v12, %v9338_v40  ;;  %v4309_v58 = vmul.f32 %v9338_v40, %v9338_v40  ;;  %4314 = vadd.xlane.f32.xlu0 %v4313_v53  ;;  %4289 = vadd.xlane.f32.xlu1 %v4288_v30  ;;  %v9343_v0 = vpop.f32.mrb[11].mxu1  ;;  %v4318_v9 = vadd.f32 %v4317_v31, %v4306_v32 }
 0x502   :  { %v4310_v27 = vmul.f32 %v9343_v0, %v9343_v0 }
 0x503   :  { %v4322_v11 = vadd.f32 %v4321_v16, %v4309_v58  ;;  %v4293_v34 = vadd.f32 %v4292_v44, %v9343_v0 }
 0x505   :  { %4319 = vadd.xlane.f32.xlu0 %v4318_v9  ;;  %4294 = vadd.xlane.f32.xlu1 %v4293_v34  ;;  %v4323_v56 = vadd.f32 %v4322_v11, %v4310_v27 }
 0x509   :  { %4324 = vadd.xlane.f32.xlu0 %v4323_v56 }
 0x58a   :  { %v4285_v33 = vpop.xlane.xlu0 %4284 }
 0x58b   :  { %v4296_v13 = vmul.f32 0.001953125, %v4285_v33 }
 0x58d   :  { %v4329_v21 = vmul.f32 %v4296_v13, %v4296_v13 }
 0x58e   :  { %v4315_v59 = vpop.xlane.xlu0 %4314  ;;  %v4290_v60 = vpop.xlane.xlu1 %4289 }
 0x58f   :  { %v4326_v39 = vmul.f32 0.001953125, %v4315_v59  ;;  %v4297_v53 = vmul.f32 0.001953125, %v4290_v60  ;;  %v4338_v60 = vld [vmem:[%s10466_s7] sm:$0xff] }
 0x591   :  { %v4332_v12 = vsub.f32 %v4326_v39, %v4329_v21  ;;  %v4330_v30 = vmul.f32 %v4297_v53, %v4297_v53 }
 0x592   :  { %v4320_v1 = vpop.xlane.xlu0 %4319  ;;  %v4295_v32 = vpop.xlane.xlu1 %4294 }
 0x593   :  { %v4335_v31 = vmax.f32 %v4332_v12, 0.0  ;;  %v4327_v38 = vmul.f32 0.001953125, %v4320_v1  ;;  %v4298_v16 = vmul.f32 0.001953125, %v4295_v32  ;;  %v4350_v12 = vld [vmem:[%s10467_s8] sm:$0xff] }
 0x595   :  { %v4341_v58 = vadd.f32 1e-05, %v4335_v31  ;;  %v4333_v44 = vsub.f32 %v4327_v38, %v4330_v30  ;;  %v4331_v11 = vmul.f32 %v4298_v16, %v4298_v16  ;;  %v4339_v38 = vld [vmem:[%s10466_s7 + $0x8] sm:$0xff] }
 0x596   :  { %v4325_v9 = vpop.xlane.xlu0 %4324  ;;  %v4351_v30 = vld [vmem:[%s10467_s8 + $0x8] sm:$0xff] }
 0x597   :  { %7636 = vrsqrt.f32 %v4341_v58  ;;  %v4336_v27 = vmax.f32 %v4333_v44, 0.0  ;;  %v4328_v34 = vmul.f32 0.001953125, %v4325_v9  ;;  %v4340_v58 = vld [vmem:[%s10466_s7 + $0x10] sm:$0xff] }
 0x599   :  { %v4342_v56 = vadd.f32 1e-05, %v4336_v27  ;;  %v4334_v33 = vsub.f32 %v4328_v34, %v4331_v11 }
 0x59b   :  { %7638 = vrsqrt.f32 %v4342_v56  ;;  %v4337_v10 = vmax.f32 %v4334_v33, 0.0 }
 0x59d   :  { %v4343_v59 = vadd.f32 1e-05, %v4337_v10 }
 0x59f   :  { %7640 = vrsqrt.f32 %v4343_v59 }
 0x5a1   :  { %v7637_v21 = vpop.eup %7636 }
 0x5a2   :  { %v4347_v39 = vmul.f32 %v7637_v21, %v4338_v60 }
 0x5a4   :  { %4361 = vperm.xlu1 %7628, %v4347_v39   ;;  %v4353_v1 = vmul.f32 %v4347_v39, %v4296_v13  ;;  %v4352_v13 = vld [vmem:[%s10467_s8 + $0x10] sm:$0xff] }
 0x5a5   :  { %v7639_v32 = vpop.eup %7638 }
 0x5a6   :  { %v4348_v31 = vmul.f32 %v7639_v32, %v4339_v38  ;;  %v4356_v10 = vsub.f32 %v4350_v12, %v4353_v1 }
 0x5a8   :  { %4366 = vperm.xlu0 %7629, %v4348_v31   ;;  %4388 = vperm.xlu1 %7628, %v4356_v10   ;;  %v4354_v44 = vmul.f32 %v4348_v31, %v4297_v53 }
 0x5a9   :  { %v7641_v9 = vpop.eup %7640 }
 0x5aa   :  { %v4357_v27 = vsub.f32 %v4351_v30, %v4354_v44  ;;  %v4349_v11 = vmul.f32 %v7641_v9, %v4340_v58 }
 0x5ac   :  { %4393 = vperm.xlu1 %7628, %v4357_v27   ;;  %4371 = vperm.xlu0 %7629, %v4349_v11   ;;  %v4355_v34 = vmul.f32 %v4349_v11, %v4298_v16 }
 0x5ae   :  { %v4358_v56 = vsub.f32 %v4352_v13, %v4355_v34 }
 0x5b0   :  { %4398 = vperm.xlu1 %7628, %v4358_v56  }
 0x623   :  { %v4362_v33 = vpop.permute.xlu1 %4361 }
 0x624   :  { %v4374_v59 = vmul.f32 %v4362_v33, %v9288_v50  ;;  %v4375_v39 = vmul.f32 %v4362_v33, %v9292_v51  ;;  %v4377_v31 = vmul.f32 %v4362_v33, %v9309_v18 }
 0x627   :  { %v4389_v60 = vpop.permute.xlu1 %4388  ;;  %v4367_v21 = vpop.permute.xlu0 %4366 }
 0x628   :  { %v4401_v53 = vadd.f32 %v4389_v60, %v4374_v59  ;;  %v4378_v38 = vmul.f32 %v4367_v21, %v9298_v5  ;;  %v4402_v12 = vadd.f32 %v4389_v60, %v4375_v39  ;;  %v4379_v16 = vmul.f32 %v4367_v21, %v9307_v47 }
 0x629   :  { %v4404_v50 = vadd.f32 %v4389_v60, %v4377_v31  ;;  %v4376_v5 = vmul.f32 %v4362_v33, %v9300_v23  ;;  %v4381_v44 = vmul.f32 %v4367_v21, %v9329_v62  ;;  %v4380_v11 = vmul.f32 %v4367_v21, %v9320_v43 }
 0x62a   :  { %v9369_v1 = vmax.f32 %v4401_v53, 0.0  ;;  %v9375_v30 = vmax.f32 %v4402_v12, 0.0 }
 0x62b   :  { %v4394_v32 = vpop.permute.xlu1 %4393  ;;  %v4403_v47 = vadd.f32 %v4389_v60, %v4376_v5  ;;  %v9385_v18 = vmax.f32 %v4404_v50, 0.0  ;;  %v4372_v43 = vpop.permute.xlu0 %4371 }
 0x62c   :  { %v4405_v10 = vadd.f32 %v4394_v32, %v4378_v38  ;;  %4477 = vrot.lane.b32.xlu0 %v9369_v1, %s7651_s21  ;;  %v4406_v58 = vadd.f32 %v4394_v32, %v4379_v16  ;;  %v4408_v9 = vadd.f32 %v4394_v32, %v4381_v44  ;;  %v4407_v62 = vadd.f32 %v4394_v32, %v4380_v11  ;;  %v10614_v44 = vld [vmem:[#allocation2_spill] sm:$0xff] }
 0x62d   :  { %v9394_v23 = vmax.f32 %v4403_v47, 0.0  ;;  %v4382_v33 = vmul.f32 %v4372_v43, %v9318_v45  ;;  %v4383_v60 = vmul.f32 %v4372_v43, %v9327_v20  ;;  %v4385_v21 = vmul.f32 %v4372_v43, %v9343_v0 }
 0x62e   :  { %v9377_v51 = vmax.f32 %v4405_v10, 0.0  ;;  %v9387_v27 = vmax.f32 %v4406_v58, 0.0  ;;  %v9396_v13 = vmax.f32 %v4408_v9, 0.0  ;;  %v9402_v34 = vmax.f32 %v4407_v62, 0.0 }
 0x62f   :  { %v4399_v56 = vpop.permute.xlu1 %4398  ;;  %v4384_v38 = vmul.f32 %v4372_v43, %v9338_v40 }
 0x630   :  { %4483 = vrot.lane.b32.xlu0 %v9375_v30, %s7651_s21  ;;  %4479 = vrot.lane.b32.xlu1 %v9377_v51, %s7651_s21  ;;  %v4409_v59 = vadd.f32 %v4399_v56, %v4382_v33  ;;  %v4410_v39 = vadd.f32 %v4399_v56, %v4383_v60  ;;  %v4412_v53 = vadd.f32 %v4399_v56, %v4385_v21 }
 0x631   :  { %v4411_v20 = vadd.f32 %v4399_v56, %v4384_v38 }
 0x632   :  { %v9447_v45 = vmax.f32 %v4409_v59, 0.0  ;;  %v9454_v0 = vmax.f32 %v4410_v39, 0.0  ;;  %v9456_v12 = vmax.f32 %v4412_v53, 0.0  ;;  %v10615_v59 = vld [vmem:[#allocation3_spill] sm:$0xff] }
 0x633   :  { %v9462_v32 = vmax.f32 %v4411_v20, 0.0 }
 0x634   :  { %4495 = vrot.lane.b32.xlu0 %v9385_v18, %s7651_s21  ;;  %4485 = vrot.lane.b32.xlu1 %v9387_v27, %s7651_s21 }
 0x638   :  { %4489 = vrot.lane.b32.xlu0 %v9394_v23, %s7651_s21  ;;  %4497 = vrot.lane.b32.xlu1 %v9396_v13, %s7651_s21 }
 0x63c   :  { %4425 = vrot.lane.b32.xlu0 %v9369_v1, %s7652_s26  ;;  %4491 = vrot.lane.b32.xlu1 %v9402_v34, %s7651_s21 }
 0x640   :  { %4431 = vrot.lane.b32.xlu0 %v9375_v30, %s7652_s26  ;;  %4427 = vrot.lane.b32.xlu1 %v9377_v51, %s7652_s26 }
 0x644   :  { %4443 = vrot.lane.b32.xlu0 %v9385_v18, %s7652_s26  ;;  %4433 = vrot.lane.b32.xlu1 %v9387_v27, %s7652_s26 }
 0x648   :  { %4437 = vrot.lane.b32.xlu0 %v9394_v23, %s7652_s26  ;;  %4445 = vrot.lane.b32.xlu1 %v9396_v13, %s7652_s26 }
 0x64c   :  { %4910 = vrot.lane.b32.xlu0 %v9369_v1, %s7653_s0  ;;  %4439 = vrot.lane.b32.xlu1 %v9402_v34, %s7652_s26 }
 0x650   :  { %4916 = vrot.lane.b32.xlu0 %v9375_v30, %s7653_s0  ;;  %4912 = vrot.lane.b32.xlu1 %v9377_v51, %s7653_s0 }
 0x654   :  { %4928 = vrot.lane.b32.xlu0 %v9385_v18, %s7653_s0  ;;  %4918 = vrot.lane.b32.xlu1 %v9387_v27, %s7653_s0 }
 0x658   :  { %4922 = vrot.lane.b32.xlu0 %v9394_v23, %s7653_s0  ;;  %4930 = vrot.lane.b32.xlu1 %v9396_v13, %s7653_s0 }
 0x65c   :  { %5169 = vrot.lane.b32.xlu0 %v9369_v1, %s7654_s27  ;;  %4924 = vrot.lane.b32.xlu1 %v9402_v34, %s7653_s0 }
 0x660   :  { %5175 = vrot.lane.b32.xlu0 %v9375_v30, %s7654_s27  ;;  %5171 = vrot.lane.b32.xlu1 %v9377_v51, %s7654_s27 }
 0x664   :  { %5177 = vrot.lane.b32.xlu1 %v9387_v27, %s7654_s27  ;;  %4481 = vrot.lane.b32.xlu0 %v9447_v45, %s7651_s21 }
 0x668   :  { %4487 = vrot.lane.b32.xlu1 %v9454_v0, %s7651_s21  ;;  %4499 = vrot.lane.b32.xlu0 %v9456_v12, %s7651_s21 }
 0x66c   :  { %4493 = vrot.lane.b32.xlu1 %v9462_v32, %s7651_s21  ;;  %5187 = vrot.lane.b32.xlu0 %v9385_v18, %s7654_s27 }
 0x670   :  { %5189 = vrot.lane.b32.xlu1 %v9396_v13, %s7654_s27  ;;  %5181 = vrot.lane.b32.xlu0 %v9394_v23, %s7654_s27 }
 0x674   :  { %5183 = vrot.lane.b32.xlu1 %v9402_v34, %s7654_s27  ;;  %4429 = vrot.lane.b32.xlu0 %v9447_v45, %s7652_s26 }
 0x678   :  { %4435 = vrot.lane.b32.xlu1 %v9454_v0, %s7652_s26  ;;  %4447 = vrot.lane.b32.xlu0 %v9456_v12, %s7652_s26 }
 0x67c   :  { %4441 = vrot.lane.b32.xlu1 %v9462_v32, %s7652_s26  ;;  %5645 = vrot.lane.b32.xlu0 %v9375_v30, %s7655_s28 }
 0x680   :  { %5647 = vrot.lane.b32.xlu1 %v9387_v27, %s7655_s28  ;;  %5651 = vrot.lane.b32.xlu0 %v9394_v23, %s7655_s28 }
 0x684   :  { %5653 = vrot.lane.b32.xlu1 %v9402_v34, %s7655_s28  ;;  %4914 = vrot.lane.b32.xlu0 %v9447_v45, %s7653_s0 }
 0x688   :  { %4920 = vrot.lane.b32.xlu1 %v9454_v0, %s7653_s0  ;;  %4932 = vrot.lane.b32.xlu0 %v9456_v12, %s7653_s0 }
 0x68c   :  { %4926 = vrot.lane.b32.xlu1 %v9462_v32, %s7653_s0  ;;  %5639 = vrot.lane.b32.xlu0 %v9369_v1, %s7655_s28 }
 0x690   :  { %5641 = vrot.lane.b32.xlu1 %v9377_v51, %s7655_s28  ;;  %5657 = vrot.lane.b32.xlu0 %v9385_v18, %s7655_s28 }
 0x694   :  { %5659 = vrot.lane.b32.xlu1 %v9396_v13, %s7655_s28  ;;  %5173 = vrot.lane.b32.xlu0 %v9447_v45, %s7654_s27 }
 0x698   :  { %5179 = vrot.lane.b32.xlu1 %v9454_v0, %s7654_s27  ;;  %5191 = vrot.lane.b32.xlu0 %v9456_v12, %s7654_s27 }
 0x69c   :  { %5185 = vrot.lane.b32.xlu1 %v9462_v32, %s7654_s27  ;;  %5904 = vrot.lane.b32.xlu0 %v9375_v30, %s7656_s29 }
 0x69e   :  { %v4478_v40 = vpop.permute.xlu0 %4477 }
 0x6a0   :  { %5906 = vrot.lane.b32.xlu1 %v9387_v27, %s7656_s29  ;;  %5910 = vrot.lane.b32.xlu0 %v9394_v23, %s7656_s29 }
 0x6a2   :  { %v4484_v31 = vpop.permute.xlu0 %4483  ;;  %v4480_v16 = vpop.permute.xlu1 %4479 }
 0x6a3   :  { %v4507_v10 = vsel %vm94_vm0, %v4478_v40, %v4484_v31 }
 0x6a4   :  { %5912 = vrot.lane.b32.xlu1 %v9402_v34, %s7656_s29  ;;  %5898 = vrot.lane.b32.xlu0 %v9369_v1, %s7656_s29  ;;  %v4514_v47 = vmul.f32 %v4507_v10, %v10614_v44 }
 0x6a6   :  { %v4496_v50 = vpop.permute.xlu0 %4495  ;;  %v4486_v58 = vpop.permute.xlu1 %4485 }
 0x6a7   :  { %v4508_v5 = vsel %vm94_vm0, %v4480_v16, %v4486_v58  ;;  %v4510_v11 = vsel %vm94_vm0, %v4496_v50, %v4478_v40 }
 0x6a8   :  { %v4518_v9 = vmul.f32 %v4508_v5, %v10614_v44  ;;  %5900 = vrot.lane.b32.xlu1 %v9377_v51, %s7656_s29  ;;  %5916 = vrot.lane.b32.xlu0 %v9385_v18, %s7656_s29  ;;  %v4513_v60 = vmul.f32 %v4510_v11, %v10615_v59 }
 0x6aa   :  { %v4490_v62 = vpop.permute.xlu0 %4489  ;;  %v4498_v43 = vpop.permute.xlu1 %4497  ;;  %v7226_v56 = vpack.c.bf16 %v4518_v9, %v4514_v47 }
 0x6ab   :  { %v4511_v33 = vsel %vm94_vm0, %v4498_v43, %v4480_v16  ;;  %v4504_v21 = vsel %vm94_vm0, %v4484_v31, %v4490_v62  ;;  %v4501_v53 = vsel %vm94_vm0, %v4490_v62, %v4496_v50 }
 0x6ac   :  { %v4517_v39 = vmul.f32 %v4511_v33, %v10615_v59  ;;  %5918 = vrot.lane.b32.xlu1 %v9396_v13, %s7656_s29  ;;  %6163 = vrot.lane.b32.xlu0 %v9375_v30, %s7657_s30  ;;  %v4515_v16 = vmul.f32 %v4504_v21, %v7827_v17  ;;  %v4516_v5 = vmul.f32 %v4501_v53, %v7821_v15 }
 0x6ad   :  { %7227 = vmatprep.subr.bf16.mxu0 %v7226_v56 }
 0x6ae   :  { %v7228_v38 = vpack.c.bf16 %v4517_v39, %v4513_v60  ;;  %v4426_v20 = vpop.permute.xlu0 %4425  ;;  %v4492_v40 = vpop.permute.xlu1 %4491 }
 0x6af   :  { %v4502_v31 = vsel %vm94_vm0, %v4492_v40, %v4498_v43  ;;  %v4505_v10 = vsel %vm94_vm0, %v4486_v58, %v4492_v40 }
 0x6b0   :  { %v4519_v47 = vmul.f32 %v4505_v10, %v7827_v17  ;;  %v4520_v9 = vmul.f32 %v4502_v31, %v7821_v15  ;;  %6165 = vrot.lane.b32.xlu1 %v9387_v27, %s7657_s30  ;;  %6169 = vrot.lane.b32.xlu0 %v9394_v23, %s7657_s30 }
 0x6b1   :  { %7229 = vmatpush1.bf16.msra.mxu0 %v7228_v38 }
 0x6b2   :  { %v7232_v50 = vpack.c.bf16 %v4519_v47, %v4515_v16  ;;  %v9560_v11 = vpop.permute.xlu0 %4431  ;;  %v4428_v62 = vpop.permute.xlu1 %4427  ;;  %v7230_v43 = vpack.c.bf16 %v4520_v9, %v4516_v5 }
 0x6b3   :  { %v4455_v8 = vsel %vm52_vm1, %v4426_v20, %v9560_v11 }
 0x6b4   :  { %6171 = vrot.lane.b32.xlu1 %v9402_v34, %s7657_s30  ;;  %5649 = vrot.lane.b32.xlu0 %v9454_v0, %s7655_s28  ;;  %v4462_v19 = vmul.f32 %v4455_v8, %v7848_v29 }
 0x6b5   :  { %7231 = vmatprep.subr.bf16.mxu1 %v7230_v43 }
 0x6b6   :  { %7233 = vmatpush1.bf16.msra.mxu1 %v7232_v50  ;;  %v4444_v58 = vpop.permute.xlu0 %4443  ;;  %v4434_v56 = vpop.permute.xlu1 %4433 }
 0x6b7   :  { %v4456_v48 = vsel %vm52_vm1, %v4428_v62, %v4434_v56  ;;  %v4458_v3 = vsel %vm52_vm1, %v4444_v58, %v4426_v20 }
 0x6b8   :  { %5655 = vrot.lane.b32.xlu1 %v9462_v32, %s7655_s28  ;;  %5643 = vrot.lane.b32.xlu0 %v9447_v45, %s7655_s28  ;;  %v4466_v63 = vmul.f32 %v4456_v48, %v7848_v29 }
 0x6ba   :  { %v4438_v33 = vpop.permute.xlu0 %4437  ;;  %v4446_v60 = vpop.permute.xlu1 %4445 }
 0x6bb   :  { %v4459_v22 = vsel %vm52_vm1, %v4446_v60, %v4428_v62  ;;  %v4449_v20 = vsel %vm52_vm1, %v4438_v33, %v4444_v58 }
 0x6bc   :  { %5661 = vrot.lane.b32.xlu1 %v9456_v12, %s7655_s28  ;;  %6157 = vrot.lane.b32.xlu0 %v9369_v1, %s7657_s30  ;;  %v4465_v52 = vmul.f32 %v4459_v22, %v7865_v37  ;;  %v4461_v22 = vmul.f32 %v4458_v3, %v7865_v37  ;;  %v4452_v3 = vsel %vm52_vm1, %v9560_v11, %v4438_v33 }
 0x6be   :  { %v9574_v21 = vpop.permute.xlu0 %4910  ;;  %v4440_v39 = vpop.permute.xlu1 %4439 }
 0x6bf   :  { %v4450_v48 = vsel %vm52_vm1, %v4440_v39, %v4446_v60  ;;  %v4453_v8 = vsel %vm52_vm1, %v4434_v56, %v4440_v39  ;;  %v7236_v60 = vpack.c.bf16 %v4465_v52, %v4461_v22  ;;  %v4464_v52 = vmul.f32 %v4449_v20, %v7857_v35  ;;  %v7052_v22 = vld [vmem:[%s10468_s4 + $0x30] sm:$0xff] }
 0x6c0   :  { %6159 = vrot.lane.b32.xlu1 %v9377_v51, %s7657_s30  ;;  %6175 = vrot.lane.b32.xlu0 %v9385_v18, %s7657_s30 }
 0x6c2   :  { %v9580_v53 = vpop.permute.xlu0 %4916  ;;  %v9582_v38 = vpop.permute.xlu1 %4912 }
 0x6c3   :  { %v4940_v20 = vsel %vm489_vm3, %v9574_v21, %v9580_v53 }
 0x6c4   :  { %6177 = vrot.lane.b32.xlu1 %v9396_v13, %s7657_s30  ;;  %5908 = vrot.lane.b32.xlu0 %v9454_v0, %s7656_s29 }
 0x6c6   :  { %v9588_v40 = vpop.permute.xlu0 %4928  ;;  %v9590_v16 = vpop.permute.xlu1 %4918 }
 0x6c8   :  { %5914 = vrot.lane.b32.xlu1 %v9462_v32, %s7656_s29  ;;  %5902 = vrot.lane.b32.xlu0 %v9447_v45, %s7656_s29 }
 0x6ca   :  { %v9596_v31 = vpop.permute.xlu0 %4922  ;;  %v9598_v10 = vpop.permute.xlu1 %4930 }
 0x6cc   :  { %5920 = vrot.lane.b32.xlu1 %v9456_v12, %s7656_s29  ;;  %6422 = vrot.lane.b32.xlu0 %v9375_v30, %s7658_s12 }
 0x6ce   :  { %v9604_v5 = vpop.permute.xlu0 %5169  ;;  %v9606_v47 = vpop.permute.xlu1 %4924 }
 0x6d0   :  { %6424 = vrot.lane.b32.xlu1 %v9387_v27, %s7658_s12  ;;  %6428 = vrot.lane.b32.xlu0 %v9394_v23, %s7658_s12 }
 0x6d2   :  { %v9612_v9 = vpop.permute.xlu0 %5175  ;;  %v9614_v50 = vpop.permute.xlu1 %5171 }
 0x6d4   :  { %6430 = vrot.lane.b32.xlu1 %v9402_v34, %s7658_s12  ;;  %6167 = vrot.lane.b32.xlu0 %v9454_v0, %s7657_s30 }
 0x6d6   :  { %v4482_v43 = vpop.permute.xlu0 %4481  ;;  %v9620_v42 = vpop.permute.xlu1 %5177 }
 0x6d8   :  { %6173 = vrot.lane.b32.xlu1 %v9462_v32, %s7657_s30  ;;  %6161 = vrot.lane.b32.xlu0 %v9447_v45, %s7657_s30 }
 0x6da   :  { %v4500_v49 = vpop.permute.xlu0 %4499  ;;  %v4488_v41 = vpop.permute.xlu1 %4487 }
 0x6db   :  { %v4512_v62 = vsel %vm94_vm0, %v4500_v49, %v4482_v43  ;;  %v4509_v4 = vsel %vm94_vm0, %v4482_v43, %v4488_v41  ;;  %v7234_v43 = vpack.c.bf16 %v4466_v63, %v4462_v19  ;;  %v4467_v19 = vmul.f32 %v4453_v8, %v7862_v36 }
 0x6dc   :  { %v4521_v61 = vmul.f32 %v4512_v62, %v10615_v59  ;;  %v4522_v25 = vmul.f32 %v4509_v4, %v10614_v44  ;;  %6179 = vrot.lane.b32.xlu1 %v9456_v12, %s7657_s30  ;;  %6416 = vrot.lane.b32.xlu0 %v9369_v1, %s7658_s12  ;;  %v7050_v44 = vld [vmem:[%s10468_s4 + $0x20] sm:$0xff]  ;;  %v4944_v8 = vsel %vm489_vm3, %v9598_v10, %v9582_v38 }
 0x6de   :  { %v9655_v59 = vpop.permute.xlu0 %5187  ;;  %4546 = vmatprep.subr.mxu0 %v4522_v25  ;;  %v4494_v4 = vpop.permute.xlu1 %4493  ;;  %v4468_v25 = vmul.f32 %v4450_v48, %v7857_v35  ;;  %v4941_v48 = vsel %vm489_vm3, %v9582_v38, %v9590_v16  ;;  %v7053_v38 = vld [vmem:[%s10468_s4 + $0x38] sm:$0xff] }
 0x6df   :  { %v4503_v58 = vsel %vm94_vm0, %v4494_v4, %v4500_v49  ;;  %v4506_v56 = vsel %vm94_vm0, %v4488_v41, %v4494_v4  ;;  %4547 = vmatpush1.msra.mxu0 %v4521_v61  ;;  %v4463_v41 = vmul.f32 %v4452_v3, %v7862_v36  ;;  %v4943_v4 = vsel %vm489_vm3, %v9588_v40, %v9574_v21 }
 0x6e0   :  { %v4523_v39 = vmul.f32 %v4506_v56, %v7827_v17  ;;  %v4524_v62 = vmul.f32 %v4503_v58, %v7821_v15  ;;  %6418 = vrot.lane.b32.xlu1 %v9377_v51, %s7658_s12  ;;  %6434 = vrot.lane.b32.xlu0 %v9385_v18, %s7658_s12  ;;  %v7051_v15 = vld [vmem:[%s10468_s4 + $0x28] sm:$0xff]  ;;  %v7238_v49 = vpack.c.bf16 %v4468_v25, %v4464_v52 }
 0x6e1   :  { %7054 = vmatmul.mubr.msk.f32.vlgmr.msra.gmra.mrb[12].mxu0 %vm2305_vm9, %v7050_v44  ;;  %7235 = vmatprep.subr.bf16.mxu0 %v7234_v43  ;;  %v7240_v63 = vpack.c.bf16 %v4467_v19, %v4463_v41  ;;  %v4935_v58 = vsel %vm489_vm3, %v9606_v47, %v9598_v10  ;;  %v4934_v25 = vsel %vm489_vm3, %v9596_v31, %v9588_v40 }
 0x6e2   :  { %7237 = vmatpush1.bf16.msra.mxu0 %v7236_v60  ;;  %v9677_v61 = vpop.permute.xlu0 %5181  ;;  %4635 = vmatprep.subr.mxu1 %v4524_v62  ;;  %v9679_v17 = vpop.permute.xlu1 %5189  ;;  %v4947_v60 = vmul.f32 %v4940_v20, %v7883_v46  ;;  %v4946_v10 = vmul.f32 %v4943_v4, %v7899_v54  ;;  %v4938_v52 = vsel %vm489_vm3, %v9590_v16, %v9606_v47  ;;  %v4473_v16 = vld [vmem:[%s10468_s4] sm:$0xff]  ;;  %v4474_v4 = vld [vmem:[%s10468_s4 + $0x8] sm:$0xff] }
 0x6e3   :  { %4612 = vmatprep.mubr.f32.mxu0 %v10579_v14  ;;  %4636 = vmatpush1.msra.mxu1 %v4523_v39  ;;  %v4950_v39 = vmul.f32 %v4944_v8, %v7899_v54  ;;  %v4949_v41 = vmul.f32 %v4934_v25, %v7908_v57 }
 0x6e4   :  { %6436 = vrot.lane.b32.xlu1 %v9396_v13, %s7658_s12  ;;  %6426 = vrot.lane.b32.xlu0 %v9454_v0, %s7658_s12 }
 0x6e5   :  { %7055 = vmatmul.mubr.msk.f32.gmra.mrb[14].mxu0 %vm2305_vm9, %v7051_v15  ;;  %7058 = vmatmul.mubr.msk.f32.vlgmr.msra.gmra.mrb[12].mxu1 %vm2305_vm9, %v7050_v44  ;;  %v4951_v44 = vmul.f32 %v4941_v48, %v7883_v46 }
 0x6e6   :  { %7239 = vmatprep.subr.bf16.mxu1 %v7238_v49  ;;  %v4430_v11 = vpop.permute.xlu0 %4429  ;;  %v9692_v33 = vpop.permute.xlu1 %5183  ;;  %4618 = vmatprep.mubr.f32.mxu0 %v10579_v14 }
 0x6e7   :  { %7241 = vmatpush1.bf16.msra.mxu1 %v7240_v63  ;;  %4701 = vmatprep.mubr.f32.mxu1 %v10579_v14  ;;  %v7242_v47 = vpack.c.bf16 %v4951_v44, %v4947_v60  ;;  %v4952_v63 = vmul.f32 %v4938_v52, %v7904_v55  ;;  %v5200_v44 = vsel %vm720_vm4, %v9614_v50, %v9620_v42 }
 0x6e8   :  { %6432 = vrot.lane.b32.xlu1 %v9462_v32, %s7658_s12  ;;  %6420 = vrot.lane.b32.xlu0 %v9447_v45, %s7658_s12  ;;  %v5199_v60 = vsel %vm720_vm4, %v9604_v5, %v9612_v9 }
 0x6e9   :  { %7056 = vmatmul.mubr.msk.f32.gmra.mrb[16].mxu0 %vm2305_vm9, %v7052_v22  ;;  %7059 = vmatmul.mubr.msk.f32.gmra.mrb[14].mxu1 %vm2305_vm9, %v7051_v15 }
 0x6ea   :  { %v4448_v43 = vpop.permute.xlu0 %4447  ;;  %v4436_v3 = vpop.permute.xlu1 %4435  ;;  %4624 = vmatprep.mubr.f32.mxu0 %v10579_v14  ;;  %4707 = vmatprep.mubr.f32.mxu1 %v10579_v14 }
 0x6eb   :  { %v4460_v21 = vsel %vm52_vm1, %v4448_v43, %v4430_v11  ;;  %v4457_v56 = vsel %vm52_vm1, %v4430_v11, %v4436_v3 }
 0x6ec   :  { %v4469_v62 = vmul.f32 %v4460_v21, %v7865_v37  ;;  %v4470_v19 = vmul.f32 %v4457_v56, %v7848_v29  ;;  %6438 = vrot.lane.b32.xlu1 %v9456_v12, %s7658_s12  ;;  %v4937_v37 = vsel %vm489_vm3, %v9580_v53, %v9596_v31  ;;  %v4953_v29 = vmul.f32 %v4935_v58, %v7908_v57 }
 0x6ed   :  { %7057 = vmatmul.mubr.msk.f32.gmra.mrb[18].mxu0 %vm2305_vm9, %v7053_v38  ;;  %7060 = vmatmul.mubr.msk.f32.gmra.mrb[16].mxu1 %vm2305_vm9, %v7052_v22  ;;  %v7244_v31 = vpack.c.bf16 %v4950_v39, %v4946_v10  ;;  %v4948_v48 = vmul.f32 %v4937_v37, %v7904_v55  ;;  %v5210_v58 = vmul.f32 %v5200_v44, %v7925_v6  ;;  %v7072_v44 = vld [vmem:[%s10468_s4 + $0x50] sm:$0xff] }
 0x6ee   :  { %v9757_v40 = vpop.permute.xlu0 %5645  ;;  %4736 = vmatprep.subr.mxu0 %v4470_v19  ;;  %v4442_v15 = vpop.permute.xlu1 %4441  ;;  %4713 = vmatprep.mubr.f32.mxu1 %v10579_v14  ;;  %v5203_v21 = vsel %vm720_vm4, %v9679_v17, %v9614_v50  ;;  %v5206_v56 = vmul.f32 %v5199_v60, %v7925_v6  ;;  %v5202_v50 = vsel %vm720_vm4, %v9655_v59, %v9604_v5  ;;  %v7073_v60 = vld [vmem:[%s10468_s4 + $0x58] sm:$0xff] }
 0x6ef   :  { %v4451_v49 = vsel %vm52_vm1, %v4442_v15, %v4448_v43  ;;  %v4454_v53 = vsel %vm52_vm1, %v4436_v3, %v4442_v15  ;;  %4737 = vmatpush1.msra.mxu0 %v4469_v62  ;;  %4796 = vmatprep.mubr.f32.mxu0 %v10579_v14  ;;  %v4476_v62 = vld [vmem:[%s10468_s4 + $0x18] sm:$0xff]  ;;  %v5194_v19 = vsel %vm720_vm4, %v9692_v33, %v9679_v17 }
 0x6f0   :  { %v4471_v11 = vmul.f32 %v4454_v53, %v7862_v36  ;;  %v4472_v22 = vmul.f32 %v4451_v49, %v7857_v35  ;;  %7243 = vmatprep.subr.bf16.mxu0 %v7242_v47  ;;  %v7246_v36 = vpack.c.bf16 %v4953_v29, %v4949_v41  ;;  %v7248_v35 = vpack.c.bf16 %v4952_v63, %v4948_v48 }
 0x6f1   :  { %7061 = vmatmul.mubr.msk.f32.gmra.mrb[18].mxu1 %vm2305_vm9, %v7053_v38  ;;  %7062 = vmatmul.mubr.msk.f32.vlgmr.msra.gmra.mrb[12].mxu0 %vm2305_vm9, %v4473_v16  ;;  %v4475_v38 = vld [vmem:[%s10468_s4 + $0x10] sm:$0xff]  ;;  %v5193_v37 = vsel %vm720_vm4, %v9677_v61, %v9655_v59  ;;  %v5209_v29 = vmul.f32 %v5203_v21, %v7952_v26  ;;  %v5197_v17 = vsel %vm720_vm4, %v9620_v42, %v9692_v33  ;;  %v7070_v42 = vld [vmem:[%s10468_s4 + $0x40] sm:$0xff] }
 0x6f2   :  { %7245 = vmatpush1.bf16.msra.mxu0 %v7244_v31  ;;  %v9775_v20 = vpop.permute.xlu0 %5651  ;;  %4825 = vmatprep.subr.mxu1 %v4472_v22  ;;  %v9777_v8 = vpop.permute.xlu1 %5647  ;;  %v5205_v47 = vmul.f32 %v5202_v50, %v7952_v26  ;;  %v5196_v59 = vsel %vm720_vm4, %v9612_v9, %v9677_v61  ;;  %v5208_v33 = vmul.f32 %v5193_v37, %v7944_v24 }
 0x6f3   :  { %4802 = vmatprep.mubr.f32.mxu0 %v10579_v14  ;;  %4826 = vmatpush1.msra.mxu1 %v4471_v11  ;;  %v5211_v53 = vmul.f32 %v5197_v17, %v7955_v28  ;;  %v5207_v11 = vmul.f32 %v5196_v59, %v7955_v28 }
 0x6f4   :  { %4885 = vmatprep.mubr.f32.mxu1 %v10579_v14  ;;  %7247 = vmatprep.subr.bf16.mxu1 %v7246_v36  ;;  %v7252_v61 = vpack.c.bf16 %v5209_v29, %v5205_v47  ;;  %v10616_v47 = vld [vmem:[#allocation5_spill] sm:$0xff] }
 0x6f5   :  { %7063 = vmatmul.mubr.msk.f32.gmra.mrb[14].mxu0 %vm2305_vm9, %v4474_v4  ;;  %7066 = vmatmul.mubr.msk.f32.vlgmr.msra.gmra.mrb[12].mxu1 %vm2305_vm9, %v4473_v16  ;;  %v7250_v16 = vpack.c.bf16 %v5210_v58, %v5206_v56 }
 0x6f6   :  { %7249 = vmatpush1.bf16.msra.mxu1 %v7248_v35  ;;  %v4915_v43 = vpop.permute.xlu0 %4914  ;;  %v9790_v3 = vpop.permute.xlu1 %5653  ;;  %4808 = vmatprep.mubr.f32.mxu0 %v10579_v14 }
 0x6f7   :  { %4891 = vmatprep.mubr.f32.mxu1 %v10579_v14 }
 0x6f9   :  { %7064 = vmatmul.mubr.msk.f32.gmra.mrb[16].mxu0 %vm2305_vm9, %v4475_v38  ;;  %7067 = vmatmul.mubr.msk.f32.gmra.mrb[14].mxu1 %vm2305_vm9, %v4474_v4  ;;  %v7071_v4 = vld [vmem:[%s10468_s4 + $0x48] sm:$0xff] }
 0x6fa   :  { %v4933_v25 = vpop.permute.xlu0 %4932  ;;  %v4921_v39 = vpop.permute.xlu1 %4920  ;;  %4814 = vmatprep.mubr.f32.mxu0 %v10579_v14  ;;  %4897 = vmatprep.mubr.f32.mxu1 %v10579_v14 }
 0x6fb   :  { %v4945_v10 = vsel %vm489_vm3, %v4933_v25, %v4915_v43  ;;  %v4942_v52 = vsel %vm489_vm3, %v4915_v43, %v4921_v39 }
 0x6fc   :  { %v4954_v5 = vmul.f32 %v4945_v10, %v7899_v54  ;;  %v4955_v15 = vmul.f32 %v4942_v52, %v7883_v46  ;;  %v5212_v54 = vmul.f32 %v5194_v19, %v7944_v24  ;;  %v5666_v52 = vsel %vm1142_vm5, %v9757_v40, %v9775_v20 }
 0x6fd   :  { %7065 = vmatmul.mubr.msk.f32.gmra.mrb[18].mxu0 %vm2305_vm9, %v4476_v62  ;;  %7068 = vmatmul.mubr.msk.f32.gmra.mrb[16].mxu1 %vm2305_vm9, %v4475_v38 }
 0x6fe   :  { %v9845_v46 = vpop.permute.xlu0 %5639  ;;  %4979 = vmatprep.subr.mxu0 %v4955_v15  ;;  %v4927_v41 = vpop.permute.xlu1 %4926  ;;  %4903 = vmatprep.mubr.f32.mxu1 %v10579_v14 }
 0x6ff   :  { %v4936_v49 = vsel %vm489_vm3, %v4927_v41, %v4933_v25  ;;  %v4939_v9 = vsel %vm489_vm3, %v4921_v39, %v4927_v41  ;;  %4980 = vmatpush1.msra.mxu0 %v4954_v5  ;;  %5039 = vmatprep.mubr.f32.mxu0 %v10579_v14  ;;  %v5667_v39 = vsel %vm1142_vm5, %v9777_v8, %v9790_v3 }
 0x700   :  { %v4956_v31 = vmul.f32 %v4939_v9, %v7904_v55  ;;  %v4957_v63 = vmul.f32 %v4936_v49, %v7908_v57  ;;  %7251 = vmatprep.subr.bf16.mxu0 %v7250_v16  ;;  %v7254_v55 = vpack.c.bf16 %v5212_v54, %v5208_v33  ;;  %v7256_v57 = vpack.c.bf16 %v5211_v53, %v5207_v11  ;;  %v10617_v33 = vld [vmem:[#allocation6_spill] sm:$0xff] }
 0x701   :  { %7069 = vmatmul.mubr.msk.f32.gmra.mrb[18].mxu1 %vm2305_vm9, %v4476_v62  ;;  %7074 = vmatmul.mubr.msk.f32.vlgmr.msra.gmra.mrb[12].mxu0 %vm2305_vm9, %v7070_v42 }
 0x702   :  { %7253 = vmatpush1.bf16.msra.mxu0 %v7252_v61  ;;  %v9863_v22 = vpop.permute.xlu0 %5657  ;;  %5068 = vmatprep.subr.mxu1 %v4957_v63  ;;  %v9865_v48 = vpop.permute.xlu1 %5641 }
 0x703   :  { %5045 = vmatprep.mubr.f32.mxu0 %v10579_v14  ;;  %5069 = vmatpush1.msra.mxu1 %v4956_v31  ;;  %v5672_v17 = vsel %vm1142_vm5, %v9863_v22, %v9845_v46 }
 0x704   :  { %5128 = vmatprep.mubr.f32.mxu1 %v10579_v14  ;;  %7255 = vmatprep.subr.bf16.mxu1 %v7254_v55  ;;  %v5678_v41 = vmul.f32 %v5672_v17, %v10616_v47 }
 0x705   :  { %7075 = vmatmul.mubr.msk.f32.gmra.mrb[14].mxu0 %vm2305_vm9, %v7071_v4  ;;  %7078 = vmatmul.mubr.msk.f32.vlgmr.msra.gmra.mrb[12].mxu1 %vm2305_vm9, %v7070_v42 }
 0x706   :  { %7257 = vmatpush1.bf16.msra.mxu1 %v7256_v57  ;;  %v5174_v36 = vpop.permute.xlu0 %5173  ;;  %v9874_v35 = vpop.permute.xlu1 %5659  ;;  %5051 = vmatprep.mubr.f32.mxu0 %v10579_v14 }
 0x707   :  { %5134 = vmatprep.mubr.f32.mxu1 %v10579_v14  ;;  %v5664_v61 = vsel %vm1142_vm5, %v9790_v3, %v9874_v35  ;;  %v10618_v3 = vld [vmem:[#allocation7_spill] sm:$0xff] }
 0x708   :  { %v5681_v63 = vmul.f32 %v5664_v61, %v10618_v3  ;;  %v10623_v61 = vld [vmem:[#allocation12_spill] sm:$0xff] }
 0x709   :  { %7076 = vmatmul.mubr.msk.f32.gmra.mrb[16].mxu0 %vm2305_vm9, %v7072_v44  ;;  %7079 = vmatmul.mubr.msk.f32.gmra.mrb[14].mxu1 %vm2305_vm9, %v7071_v4  ;;  %v7095_v4 = vld [vmem:[%s10468_s4 + $0x88] sm:$0xff] }
 0x70a   :  { %v5192_v43 = vpop.permute.xlu0 %5191  ;;  %v5180_v38 = vpop.permute.xlu1 %5179  ;;  %5057 = vmatprep.mubr.f32.mxu0 %v10579_v14  ;;  %5140 = vmatprep.mubr.f32.mxu1 %v10579_v14 }
 0x70b   :  { %v5204_v58 = vsel %vm720_vm4, %v5192_v43, %v5174_v36  ;;  %v5201_v21 = vsel %vm720_vm4, %v5174_v36, %v5180_v38 }
 0x70c   :  { %v5213_v56 = vmul.f32 %v5204_v58, %v7952_v26  ;;  %v5214_v25 = vmul.f32 %v5201_v21, %v7925_v6  ;;  %v7082_v26 = vld [vmem:[%s10468_s4 + $0x60] sm:$0xff]  ;;  %v7258_v6 = vpack.c.bf16 %v9387_v27, %v9375_v30  ;;  %v7260_v30 = vpack.c.bf16 %v9377_v51, %v9369_v1 }
 0x70d   :  { %7077 = vmatmul.mubr.msk.f32.gmra.mrb[18].mxu0 %vm2305_vm9, %v7073_v60  ;;  %7080 = vmatmul.mubr.msk.f32.gmra.mrb[16].mxu1 %vm2305_vm9, %v7072_v44  ;;  %v5680_v27 = vmul.f32 %v5667_v39, %v10581_v2  ;;  %v5673_v1 = vsel %vm1142_vm5, %v9874_v35, %v9865_v48  ;;  %v7262_v51 = vpack.c.bf16 %v9396_v13, %v9385_v18  ;;  %v7084_v13 = vld [vmem:[%s10468_s4 + $0x70] sm:$0xff] }
 0x70e   :  { %v9900_v62 = vpop.permute.xlu0 %5904  ;;  %5238 = vmatprep.subr.mxu0 %v5214_v25  ;;  %v5186_v50 = vpop.permute.xlu1 %5185  ;;  %5146 = vmatprep.mubr.f32.mxu1 %v10579_v14  ;;  %v5682_v59 = vmul.f32 %v5673_v1, %v10616_v47  ;;  %v7096_v35 = vld [vmem:[%s10468_s4 + $0x90] sm:$0xff]  ;;  %v7097_v25 = vld [vmem:[%s10468_s4 + $0x98] sm:$0xff] }
 0x70f   :  { %v5195_v19 = vsel %vm720_vm4, %v5186_v50, %v5192_v43  ;;  %v5198_v10 = vsel %vm720_vm4, %v5180_v38, %v5186_v50  ;;  %5239 = vmatpush1.msra.mxu0 %v5213_v56  ;;  %5298 = vmatprep.mubr.f32.mxu0 %v10579_v14  ;;  %v10619_v43 = vld [vmem:[#allocation8_spill] sm:$0xff]  ;;  %v10621_v1 = vld [vmem:[#allocation9_spill] sm:$0xff] }
 0x710   :  { %v5215_v37 = vmul.f32 %v5198_v10, %v7955_v28  ;;  %v5216_v29 = vmul.f32 %v5195_v19, %v7944_v24  ;;  %7259 = vmatprep.subr.bf16.mxu0 %v7258_v6  ;;  %v7083_v24 = vld [vmem:[%s10468_s4 + $0x68] sm:$0xff]  ;;  %v5676_v28 = vmul.f32 %v5666_v52, %v10581_v2 }
 0x711   :  { %7081 = vmatmul.mubr.msk.f32.gmra.mrb[18].mxu1 %vm2305_vm9, %v7073_v60  ;;  %7086 = vmatmul.mubr.msk.f32.vlgmr.msra.gmra.mrb[12].mxu0 %vm2305_vm9, %v7082_v26 }
 0x712   :  { %7261 = vmatpush1.bf16.msra.mxu0 %v7260_v30  ;;  %v9924_v5 = vpop.permute.xlu0 %5910  ;;  %5327 = vmatprep.subr.mxu1 %v5216_v29  ;;  %v9926_v15 = vpop.permute.xlu1 %5906  ;;  %v7266_v16 = vpack.c.bf16 %v5680_v27, %v5676_v28  ;;  %v7106_v28 = vld [vmem:[%s10468_s4 + $0xa0] sm:$0xff] }
 0x713   :  { %5449 = vmatprep.subr.mxu0 %v9454_v0  ;;  %5304 = vmatprep.mubr.f32.mxu0 %v10579_v14  ;;  %v7264_v0 = vpack.c.bf16 %v9402_v34, %v9394_v23  ;;  %v5670_v23 = vsel %vm1142_vm5, %v9865_v48, %v9777_v8  ;;  %v5669_v8 = vsel %vm1142_vm5, %v9845_v46, %v9757_v40 }
 0x714   :  { %5328 = vmatpush1.msra.mxu1 %v5215_v37  ;;  %5387 = vmatprep.mubr.f32.mxu1 %v10579_v14  ;;  %v5679_v49 = vmul.f32 %v5670_v23, %v10617_v33  ;;  %v5675_v9 = vmul.f32 %v5669_v8, %v10617_v33  ;;  %v5663_v46 = vsel %vm1142_vm5, %v9775_v20, %v9863_v22 }
 0x715   :  { %7087 = vmatmul.mubr.msk.f32.gmra.mrb[14].mxu0 %vm2305_vm9, %v7083_v24  ;;  %7090 = vmatmul.mubr.msk.f32.vlgmr.msra.gmra.mrb[12].mxu1 %vm2305_vm9, %v7082_v26  ;;  %v5677_v55 = vmul.f32 %v5663_v46, %v10618_v3  ;;  %v5925_v44 = vsel %vm1373_vm6, %v9900_v62, %v9924_v5 }
 0x716   :  { %7263 = vmatprep.subr.bf16.mxu1 %v7262_v51  ;;  %5450 = vmatpush1.msra.mxu0 %v9447_v45  ;;  %v9951_v54 = vpop.permute.xlu0 %5898  ;;  %v9953_v18 = vpop.permute.xlu1 %5912  ;;  %v7270_v45 = vpack.c.bf16 %v5682_v59, %v5678_v41  ;;  %v7268_v31 = vpack.c.bf16 %v5679_v49, %v5675_v9  ;;  %v5935_v39 = vmul.f32 %v5925_v44, %v10619_v43  ;;  %v7108_v49 = vld [vmem:[%s10468_s4 + $0xb0] sm:$0xff] }
 0x717   :  { %7265 = vmatpush1.bf16.msra.mxu1 %v7264_v0  ;;  %7267 = vmatprep.subr.bf16.mxu0 %v7266_v16  ;;  %v7272_v20 = vpack.c.bf16 %v5681_v63, %v5677_v55  ;;  %v5926_v22 = vsel %vm1373_vm6, %v9926_v15, %v9953_v18  ;;  %v5928_v58 = vsel %vm1373_vm6, %v9951_v54, %v9900_v62  ;;  %v10620_v62 = vld [vmem:[#allocation10_spill] sm:$0xff]  ;;  %v7109_v63 = vld [vmem:[%s10468_s4 + $0xb8] sm:$0xff] }
 0x718   :  { %5538 = vmatprep.subr.mxu1 %v9456_v12  ;;  %5310 = vmatprep.mubr.f32.mxu0 %v10579_v14  ;;  %v7085_v12 = vld [vmem:[%s10468_s4 + $0x78] sm:$0xff]  ;;  %v5939_v38 = vmul.f32 %v5926_v22, %v10619_v43  ;;  %v5934_v37 = vmul.f32 %v5928_v58, %v10620_v62 }
 0x719   :  { %5393 = vmatprep.mubr.f32.mxu1 %v10579_v14  ;;  %7088 = vmatmul.mubr.msk.f32.gmra.mrb[16].mxu0 %vm2305_vm9, %v7084_v13 }
 0x71a   :  { %7091 = vmatmul.mubr.msk.f32.gmra.mrb[14].mxu1 %vm2305_vm9, %v7083_v24  ;;  %v9968_v34 = vpop.permute.xlu0 %5916  ;;  %v5901_v42 = vpop.permute.xlu1 %5900  ;;  %5316 = vmatprep.mubr.f32.mxu0 %v10579_v14  ;;  %v7274_v29 = vpack.c.bf16 %v5939_v38, %v5935_v39  ;;  %v10625_v39 = vld [vmem:[#allocation13_spill] sm:$0xff] }
 0x71b   :  { %5539 = vmatpush1.msra.mxu1 %v9462_v32  ;;  %5399 = vmatprep.mubr.f32.mxu1 %v10579_v14  ;;  %v7094_v32 = vld [vmem:[%s10468_s4 + $0x80] sm:$0xff]  ;;  %v5929_v60 = vsel %vm1373_vm6, %v5901_v42, %v9926_v15  ;;  %v5922_v30 = vsel %vm1373_vm6, %v9924_v5, %v9968_v34  ;;  %v5931_v27 = vsel %vm1373_vm6, %v9968_v34, %v9951_v54  ;;  %v7107_v34 = vld [vmem:[%s10468_s4 + $0xa8] sm:$0xff] }
 0x71c   :  { %7271 = vmatprep.subr.bf16.mxu1 %v7270_v45  ;;  %v5938_v6 = vmul.f32 %v5929_v60, %v10620_v62  ;;  %v5937_v54 = vmul.f32 %v5931_v27, %v10621_v1 }
 0x71d   :  { %7089 = vmatmul.mubr.msk.f32.gmra.mrb[18].mxu0 %vm2305_vm9, %v7085_v12 }
 0x71e   :  { %7092 = vmatmul.mubr.msk.f32.gmra.mrb[16].mxu1 %vm2305_vm9, %v7084_v13  ;;  %v9988_v53 = vpop.permute.xlu0 %6163  ;;  %v5919_v40 = vpop.permute.xlu1 %5918  ;;  %5509 = vmatprep.mubr.f32.mxu0 %v10579_v14  ;;  %v7276_v0 = vpack.c.bf16 %v5938_v6, %v5934_v37 }
 0x71f   :  { %5405 = vmatprep.mubr.f32.mxu1 %v10579_v14  ;;  %v5932_v19 = vsel %vm1373_vm6, %v5919_v40, %v5901_v42  ;;  %v5923_v15 = vsel %vm1373_vm6, %v9953_v18, %v5919_v40  ;;  %v10622_v18 = vld [vmem:[#allocation11_spill] sm:$0xff] }
 0x720   :  { %v5941_v5 = vmul.f32 %v5932_v19, %v10621_v1  ;;  %v5940_v13 = vmul.f32 %v5923_v15, %v10622_v18 }
 0x721   :  { %7098 = vmatmul.mubr.msk.f32.vlgmr.msra.gmra.mrb[12].mxu0 %vm2305_vm9, %v7094_v32 }
 0x722   :  { %7093 = vmatmul.mubr.msk.f32.gmra.mrb[18].mxu1 %vm2305_vm9, %v7085_v12  ;;  %7269 = vmatpush1.bf16.msra.mxu0 %v7268_v31  ;;  %v10002_v11 = vpop.permute.xlu0 %6169  ;;  %v10004_v48 = vpop.permute.xlu1 %6165  ;;  %v7278_v45 = vpack.c.bf16 %v5941_v5, %v5937_v54  ;;  %v7121_v54 = vld [vmem:[%s10468_s4 + $0xd8] sm:$0xff] }
 0x723   :  { %5515 = vmatprep.mubr.f32.mxu0 %v10579_v14  ;;  %5598 = vmatprep.mubr.f32.mxu1 %v10579_v14  ;;  %v6184_v9 = vsel %vm1604_vm7, %v9988_v53, %v10002_v11 }
 0x725   :  { %7099 = vmatmul.mubr.msk.f32.gmra.mrb[14].mxu0 %vm2305_vm9, %v7095_v4 }
 0x726   :  { %7102 = vmatmul.mubr.msk.f32.vlgmr.msra.gmra.mrb[12].mxu1 %vm2305_vm9, %v7094_v32  ;;  %v5650_v57 = vpop.permute.xlu0 %5649  ;;  %v10018_v36 = vpop.permute.xlu1 %6171  ;;  %5521 = vmatprep.mubr.f32.mxu0 %v10579_v14 }
 0x727   :  { %7273 = vmatpush1.bf16.msra.mxu1 %v7272_v20  ;;  %5604 = vmatprep.mubr.f32.mxu1 %v10579_v14  ;;  %v6185_v12 = vsel %vm1604_vm7, %v10004_v48, %v10018_v36 }
 0x728   :  { %v6198_v40 = vmul.f32 %v6185_v12, %v10623_v61 }
 0x729   :  { %7100 = vmatmul.mubr.msk.f32.gmra.mrb[16].mxu0 %vm2305_vm9, %v7096_v35 }
 0x72a   :  { %7103 = vmatmul.mubr.msk.f32.gmra.mrb[14].mxu1 %vm2305_vm9, %v7095_v4  ;;  %v5644_v21 = vpop.permute.xlu0 %5643  ;;  %v5656_v56 = vpop.permute.xlu1 %5655  ;;  %5527 = vmatprep.mubr.f32.mxu0 %v10579_v14  ;;  %v6194_v4 = vmul.f32 %v6184_v9, %v10623_v61 }
 0x72b   :  { %v5671_v50 = vsel %vm1142_vm5, %v5644_v21, %v5650_v57  ;;  %v5668_v26 = vsel %vm1142_vm5, %v5650_v57, %v5656_v56  ;;  %5610 = vmatprep.mubr.f32.mxu1 %v10579_v14 }
 0x72c   :  { %v5683_v10 = vmul.f32 %v5671_v50, %v10617_v33  ;;  %v5684_v52 = vmul.f32 %v5668_v26, %v10581_v2  ;;  %v7282_v38 = vpack.c.bf16 %v6198_v40, %v6194_v4 }
 0x72d   :  { %7101 = vmatmul.mubr.msk.f32.gmra.mrb[18].mxu0 %vm2305_vm9, %v7097_v25 }
 0x72e   :  { %7104 = vmatmul.mubr.msk.f32.gmra.mrb[16].mxu1 %vm2305_vm9, %v7096_v35  ;;  %v6158_v2 = vpop.permute.xlu0 %6157  ;;  %5708 = vmatprep.subr.mxu0 %v5684_v52  ;;  %v5662_v24 = vpop.permute.xlu1 %5661 }
 0x72f   :  { %v5665_v51 = vsel %vm1142_vm5, %v5656_v56, %v5662_v24  ;;  %v5674_v17 = vsel %vm1142_vm5, %v5662_v24, %v5644_v21  ;;  %5616 = vmatprep.mubr.f32.mxu1 %v10579_v14  ;;  %5709 = vmatpush1.msra.mxu0 %v5683_v10  ;;  %v6187_v46 = vsel %vm1604_vm7, %v6158_v2, %v9988_v53  ;;  %v10624_v53 = vld [vmem:[#allocation14_spill] sm:$0xff]  ;;  %v10626_v10 = vld [vmem:[#allocation15_spill] sm:$0xff] }
 0x730   :  { %v5685_v16 = vmul.f32 %v5665_v51, %v10618_v3  ;;  %v5686_v59 = vmul.f32 %v5674_v17, %v10616_v47  ;;  %5768 = vmatprep.mubr.f32.mxu0 %v10579_v14  ;;  %7275 = vmatprep.subr.bf16.mxu0 %v7274_v29  ;;  %v5936_v47 = vmul.f32 %v5922_v30, %v10622_v18  ;;  %v7119_v30 = vld [vmem:[%s10468_s4 + $0xc8] sm:$0xff]  ;;  %v10627_v17 = vld [vmem:[#allocation16_spill] sm:$0xff] }
 0x731   :  { %7110 = vmatmul.mubr.msk.f32.vlgmr.msra.gmra.mrb[12].mxu0 %vm2305_vm9, %v7106_v28  ;;  %v6193_v44 = vmul.f32 %v6187_v46, %v10624_v53  ;;  %v7131_v46 = vld [vmem:[%s10468_s4 + $0xe8] sm:$0xff] }
 0x732   :  { %7105 = vmatmul.mubr.msk.f32.gmra.mrb[18].mxu1 %vm2305_vm9, %v7097_v25  ;;  %7277 = vmatpush1.bf16.msra.mxu0 %v7276_v0  ;;  %v6176_v41 = vpop.permute.xlu0 %6175  ;;  %v6160_v23 = vpop.permute.xlu1 %6159  ;;  %v7280_v42 = vpack.c.bf16 %v5940_v13, %v5936_v47  ;;  %v7118_v25 = vld [vmem:[%s10468_s4 + $0xc0] sm:$0xff] }
 0x733   :  { %5797 = vmatprep.subr.mxu1 %v5686_v59  ;;  %5774 = vmatprep.mubr.f32.mxu0 %v10579_v14  ;;  %v6188_v32 = vsel %vm1604_vm7, %v6160_v23, %v10004_v48  ;;  %v6181_v60 = vsel %vm1604_vm7, %v10002_v11, %v6176_v41  ;;  %v6190_v58 = vsel %vm1604_vm7, %v6176_v41, %v6158_v2 }
 0x734   :  { %5798 = vmatpush1.msra.mxu1 %v5685_v16  ;;  %5857 = vmatprep.mubr.f32.mxu1 %v10579_v14  ;;  %v6197_v20 = vmul.f32 %v6188_v32, %v10624_v53  ;;  %v6196_v19 = vmul.f32 %v6190_v58, %v10625_v39  ;;  %v6195_v27 = vmul.f32 %v6181_v60, %v10626_v10  ;;  %v10630_v58 = vld [vmem:[#allocation17_spill] sm:$0xff] }
 0x735   :  { %7111 = vmatmul.mubr.msk.f32.gmra.mrb[14].mxu0 %vm2305_vm9, %v7107_v34  ;;  %7279 = vmatprep.subr.bf16.mxu1 %v7278_v45 }
 0x736   :  { %7114 = vmatmul.mubr.msk.f32.vlgmr.msra.gmra.mrb[12].mxu1 %vm2305_vm9, %v7106_v28  ;;  %v5909_v8 = vpop.permute.xlu0 %5908  ;;  %v6178_v33 = vpop.permute.xlu1 %6177  ;;  %5780 = vmatprep.mubr.f32.mxu0 %v10579_v14 }
 0x737   :  { %7281 = vmatpush1.bf16.msra.mxu1 %v7280_v42  ;;  %5863 = vmatprep.mubr.f32.mxu1 %v10579_v14  ;;  %v6191_v22 = vsel %vm1604_vm7, %v6178_v33, %v6160_v23  ;;  %v6182_v21 = vsel %vm1604_vm7, %v10018_v36, %v6178_v33  ;;  %v7284_v36 = vpack.c.bf16 %v6197_v20, %v6193_v44  ;;  %v7130_v42 = vld [vmem:[%s10468_s4 + $0xe0] sm:$0xff] }
 0x738   :  { %v6200_v50 = vmul.f32 %v6191_v22, %v10625_v39  ;;  %v6199_v52 = vmul.f32 %v6182_v21, %v10626_v10 }
 0x739   :  { %7112 = vmatmul.mubr.msk.f32.gmra.mrb[16].mxu0 %vm2305_vm9, %v7108_v49 }
 0x73a   :  { %7115 = vmatmul.mubr.msk.f32.gmra.mrb[14].mxu1 %vm2305_vm9, %v7107_v34  ;;  %v5903_v31 = vpop.permute.xlu0 %5902  ;;  %v5915_v3 = vpop.permute.xlu1 %5914  ;;  %5786 = vmatprep.mubr.f32.mxu0 %v10579_v14  ;;  %v7286_v15 = vpack.c.bf16 %v6200_v50, %v6196_v19  ;;  %v7288_v2 = vpack.c.bf16 %v6199_v52, %v6195_v27  ;;  %v7142_v52 = vld [vmem:[%s10468_s4 + $0x100] sm:$0xff] }
 0x73b   :  { %v5930_v48 = vsel %vm1373_vm6, %v5903_v31, %v5909_v8  ;;  %v5927_v55 = vsel %vm1373_vm6, %v5909_v8, %v5915_v3  ;;  %5869 = vmatprep.mubr.f32.mxu1 %v10579_v14 }
 0x73c   :  { %v5942_v57 = vmul.f32 %v5930_v48, %v10620_v62  ;;  %v5943_v35 = vmul.f32 %v5927_v55, %v10619_v43 }
 0x73d   :  { %7113 = vmatmul.mubr.msk.f32.gmra.mrb[18].mxu0 %vm2305_vm9, %v7109_v63 }
 0x73e   :  { %7116 = vmatmul.mubr.msk.f32.gmra.mrb[16].mxu1 %vm2305_vm9, %v7108_v49  ;;  %v10140_v56 = vpop.permute.xlu0 %6422  ;;  %5967 = vmatprep.subr.mxu0 %v5943_v35  ;;  %v5921_v43 = vpop.permute.xlu1 %5920 }
 0x73f   :  { %v5924_v11 = vsel %vm1373_vm6, %v5915_v3, %v5921_v43  ;;  %v5933_v26 = vsel %vm1373_vm6, %v5921_v43, %v5903_v31  ;;  %5875 = vmatprep.mubr.f32.mxu1 %v10579_v14  ;;  %5968 = vmatpush1.msra.mxu0 %v5942_v57  ;;  %v10628_v3 = vld [vmem:[#allocation18_spill] sm:$0xff]  ;;  %v7132_v57 = vld [vmem:[%s10468_s4 + $0xf0] sm:$0xff] }
 0x740   :  { %v5944_v62 = vmul.f32 %v5924_v11, %v10622_v18  ;;  %v5945_v6 = vmul.f32 %v5933_v26, %v10621_v1  ;;  %6027 = vmatprep.mubr.f32.mxu0 %v10579_v14  ;;  %7283 = vmatprep.subr.bf16.mxu0 %v7282_v38  ;;  %v7120_v1 = vld [vmem:[%s10468_s4 + $0xd0] sm:$0xff]  ;;  %v10629_v38 = vld [vmem:[#allocation19_spill] sm:$0xff]  ;;  %v7133_v11 = vld [vmem:[%s10468_s4 + $0xf8] sm:$0xff] }
 0x741   :  { %7122 = vmatmul.mubr.msk.f32.vlgmr.msra.gmra.mrb[12].mxu0 %vm2305_vm9, %v7118_v25 }
 0x742   :  { %7117 = vmatmul.mubr.msk.f32.gmra.mrb[18].mxu1 %vm2305_vm9, %v7109_v63  ;;  %7285 = vmatpush1.bf16.msra.mxu0 %v7284_v36  ;;  %v10158_v37 = vpop.permute.xlu0 %6428  ;;  %v6425_v29 = vpop.permute.xlu1 %6424 }
 0x743   :  { %6056 = vmatprep.subr.mxu1 %v5945_v6  ;;  %6033 = vmatprep.mubr.f32.mxu0 %v10579_v14  ;;  %v6443_v51 = vsel %vm1835_vm8, %v10140_v56, %v10158_v37 }
 0x744   :  { %6057 = vmatpush1.msra.mxu1 %v5944_v62  ;;  %6116 = vmatprep.mubr.f32.mxu1 %v10579_v14  ;;  %v6453_v41 = vmul.f32 %v6443_v51, %v10627_v17 }
 0x745   :  { %7123 = vmatmul.mubr.msk.f32.gmra.mrb[14].mxu0 %vm2305_vm9, %v7119_v30  ;;  %7287 = vmatprep.subr.bf16.mxu1 %v7286_v15  ;;  %v7143_v15 = vld [vmem:[%s10468_s4 + $0x108] sm:$0xff] }
 0x746   :  { %7126 = vmatmul.mubr.msk.f32.vlgmr.msra.gmra.mrb[12].mxu1 %vm2305_vm9, %v7118_v25  ;;  %v6168_v24 = vpop.permute.xlu0 %6167  ;;  %v6431_v28 = vpop.permute.xlu1 %6430  ;;  %6039 = vmatprep.mubr.f32.mxu0 %v10579_v14 }
 0x747   :  { %7289 = vmatpush1.bf16.msra.mxu1 %v7288_v2  ;;  %v6444_v5 = vsel %vm1835_vm8, %v6425_v29, %v6431_v28  ;;  %6122 = vmatprep.mubr.f32.mxu1 %v10579_v14  ;;  %v7145_v2 = vld [vmem:[%s10468_s4 + $0x118] sm:$0xff] }
 0x748   :  { %v6457_v0 = vmul.f32 %v6444_v5, %v10627_v17 }
 0x749   :  { %7124 = vmatmul.mubr.msk.f32.gmra.mrb[16].mxu0 %vm2305_vm9, %v7120_v1 }
 0x74a   :  { %7127 = vmatmul.mubr.msk.f32.gmra.mrb[14].mxu1 %vm2305_vm9, %v7119_v30  ;;  %v6162_v16 = vpop.permute.xlu0 %6161  ;;  %v6174_v59 = vpop.permute.xlu1 %6173  ;;  %6045 = vmatprep.mubr.f32.mxu0 %v10579_v14  ;;  %v7290_v12 = vpack.c.bf16 %v6457_v0, %v6453_v41 }
 0x74b   :  { %v6189_v18 = vsel %vm1604_vm7, %v6162_v16, %v6168_v24  ;;  %v6186_v13 = vsel %vm1604_vm7, %v6168_v24, %v6174_v59  ;;  %6128 = vmatprep.mubr.f32.mxu1 %v10579_v14 }
 0x74c   :  { %v6201_v23 = vmul.f32 %v6189_v18, %v10624_v53  ;;  %v6202_v34 = vmul.f32 %v6186_v13, %v10623_v61 }
 0x74d   :  { %7125 = vmatmul.mubr.msk.f32.gmra.mrb[18].mxu0 %vm2305_vm9, %v7121_v54 }
 0x74e   :  { %7128 = vmatmul.mubr.msk.f32.gmra.mrb[16].mxu1 %vm2305_vm9, %v7120_v1  ;;  %v6417_v47 = vpop.permute.xlu0 %6416  ;;  %6226 = vmatprep.subr.mxu0 %v6202_v34  ;;  %v6180_v45 = vpop.permute.xlu1 %6179 }
 0x74f   :  { %v6183_v8 = vsel %vm1604_vm7, %v6174_v59, %v6180_v45  ;;  %v6192_v33 = vsel %vm1604_vm7, %v6180_v45, %v6162_v16  ;;  %6134 = vmatprep.mubr.f32.mxu1 %v10579_v14  ;;  %6227 = vmatpush1.msra.mxu0 %v6201_v23  ;;  %v6446_v61 = vsel %vm1835_vm8, %v6417_v47, %v10140_v56 }
 0x750   :  { %v6203_v49 = vmul.f32 %v6183_v8, %v10626_v10  ;;  %v6204_v9 = vmul.f32 %v6192_v33, %v10625_v39  ;;  %6286 = vmatprep.mubr.f32.mxu0 %v10579_v14  ;;  %7291 = vmatprep.subr.bf16.mxu0 %v7290_v12  ;;  %v6452_v63 = vmul.f32 %v6446_v61, %v10628_v3 }
 0x751   :  { %7134 = vmatmul.mubr.msk.f32.vlgmr.msra.gmra.mrb[12].mxu0 %vm2305_vm9, %v7130_v42 }
 0x752   :  { %7129 = vmatmul.mubr.msk.f32.gmra.mrb[18].mxu1 %vm2305_vm9, %v7121_v54  ;;  %v6435_v40 = vpop.permute.xlu0 %6434  ;;  %6315 = vmatprep.subr.mxu1 %v6204_v9  ;;  %v6419_v32 = vpop.permute.xlu1 %6418 }
 0x753   :  { %v6447_v31 = vsel %vm1835_vm8, %v6419_v32, %v6425_v29  ;;  %6292 = vmatprep.mubr.f32.mxu0 %v10579_v14  ;;  %6316 = vmatpush1.msra.mxu1 %v6203_v49  ;;  %v6440_v48 = vsel %vm1835_vm8, %v10158_v37, %v6435_v40  ;;  %v6449_v55 = vsel %vm1835_vm8, %v6435_v40, %v6417_v47 }
 0x754   :  { %v6456_v4 = vmul.f32 %v6447_v31, %v10628_v3  ;;  %6375 = vmatprep.mubr.f32.mxu1 %v10579_v14  ;;  %v6454_v60 = vmul.f32 %v6440_v48, %v10629_v38  ;;  %v6455_v21 = vmul.f32 %v6449_v55, %v10630_v58 }
 0x755   :  { %7135 = vmatmul.mubr.msk.f32.gmra.mrb[14].mxu0 %vm2305_vm9, %v7131_v46 }
 0x756   :  { %v7292_v53 = vpack.c.bf16 %v6456_v4, %v6452_v63  ;;  %7138 = vmatmul.mubr.msk.f32.vlgmr.msra.gmra.mrb[12].mxu1 %vm2305_vm9, %v7130_v42  ;;  %v6427_v20 = vpop.permute.xlu0 %6426  ;;  %v6437_v22 = vpop.permute.xlu1 %6436  ;;  %6298 = vmatprep.mubr.f32.mxu0 %v10579_v14 }
 0x757   :  { %v6441_v35 = vsel %vm1835_vm8, %v6431_v28, %v6437_v22  ;;  %v6450_v44 = vsel %vm1835_vm8, %v6437_v22, %v6419_v32  ;;  %6381 = vmatprep.mubr.f32.mxu1 %v10579_v14 }
 0x758   :  { %v6458_v56 = vmul.f32 %v6441_v35, %v10629_v38  ;;  %v6459_v43 = vmul.f32 %v6450_v44, %v10630_v58  ;;  %7293 = vmatpush1.bf16.msra.mxu0 %v7292_v53 }
 0x759   :  { %7136 = vmatmul.mubr.msk.f32.gmra.mrb[16].mxu0 %vm2305_vm9, %v7132_v57 }
 0x75a   :  { %v7296_v25 = vpack.c.bf16 %v6458_v56, %v6454_v60  ;;  %7139 = vmatmul.mubr.msk.f32.gmra.mrb[14].mxu1 %vm2305_vm9, %v7131_v46  ;;  %v6421_v39 = vpop.permute.xlu0 %6420  ;;  %v6433_v50 = vpop.permute.xlu1 %6432  ;;  %6304 = vmatprep.mubr.f32.mxu0 %v10579_v14  ;;  %v7294_v26 = vpack.c.bf16 %v6459_v43, %v6455_v21 }
 0x75b   :  { %v6448_v36 = vsel %vm1835_vm8, %v6421_v39, %v6427_v20  ;;  %v6445_v62 = vsel %vm1835_vm8, %v6427_v20, %v6433_v50  ;;  %6387 = vmatprep.mubr.f32.mxu1 %v10579_v14 }
 0x75c   :  { %v6460_v6 = vmul.f32 %v6448_v36, %v10628_v3  ;;  %v6461_v19 = vmul.f32 %v6445_v62, %v10627_v17  ;;  %7295 = vmatprep.subr.bf16.mxu1 %v7294_v26 }
 0x75d   :  { %7137 = vmatmul.mubr.msk.f32.gmra.mrb[18].mxu0 %vm2305_vm9, %v7133_v11  ;;  %7297 = vmatpush1.bf16.msra.mxu1 %v7296_v25 }
 0x75e   :  { %7140 = vmatmul.mubr.msk.f32.gmra.mrb[16].mxu1 %vm2305_vm9, %v7132_v57  ;;  %6485 = vmatprep.subr.mxu0 %v6461_v19  ;;  %v6439_v10 = vpop.permute.xlu1 %6438 }
 0x75f   :  { %v6442_v37 = vsel %vm1835_vm8, %v6433_v50, %v6439_v10  ;;  %v6451_v29 = vsel %vm1835_vm8, %v6439_v10, %v6421_v39  ;;  %6393 = vmatprep.mubr.f32.mxu1 %v10579_v14  ;;  %6486 = vmatpush1.msra.mxu0 %v6460_v6 }
 0x760   :  { %v6462_v30 = vmul.f32 %v6442_v37, %v10629_v38  ;;  %v6463_v27 = vmul.f32 %v6451_v29, %v10630_v58  ;;  %6545 = vmatprep.mubr.f32.mxu0 %v10579_v14 }
 0x761   :  { %7146 = vmatmul.mubr.msk.f32.vlgmr.msra.gmra.mrb[12].mxu0 %vm2305_vm9, %v7142_v52 }
 0x762   :  { %7141 = vmatmul.mubr.msk.f32.gmra.mrb[18].mxu1 %vm2305_vm9, %v7133_v11  ;;  %6574 = vmatprep.subr.mxu1 %v6463_v27 }
 0x763   :  { %6551 = vmatprep.mubr.f32.mxu0 %v10579_v14  ;;  %6575 = vmatpush1.msra.mxu1 %v6462_v30 }
 0x764   :  { %6634 = vmatprep.mubr.f32.mxu1 %v10579_v14 }
 0x765   :  { %7147 = vmatmul.mubr.msk.f32.gmra.mrb[14].mxu0 %vm2305_vm9, %v7143_v15 }
 0x766   :  { %7150 = vmatmul.mubr.msk.f32.vlgmr.msra.gmra.mrb[12].mxu1 %vm2305_vm9, %v7142_v52  ;;  %6557 = vmatprep.mubr.f32.mxu0 %v10579_v14 }
 0x767   :  { %6640 = vmatprep.mubr.f32.mxu1 %v10579_v14 }
 0x769   :  { %7148 = vmatmul.mubr.msk.f32.gmra.mrb[16].mxu0 %vm2305_vm9, %v7144_v7 }
 0x76a   :  { %7151 = vmatmul.mubr.msk.f32.gmra.mrb[14].mxu1 %vm2305_vm9, %v7143_v15  ;;  %6563 = vmatprep.mubr.f32.mxu0 %v10579_v14 }
 0x76b   :  { %6646 = vmatprep.mubr.f32.mxu1 %v10579_v14 }
 0x76d   :  { %7149 = vmatmul.mubr.msk.f32.gmra.mrb[18].mxu0 %vm2305_vm9, %v7145_v2 }
 0x76e   :  { %7152 = vmatmul.mubr.msk.f32.gmra.mrb[16].mxu1 %vm2305_vm9, %v7144_v7 }
 0x76f   :  { %6652 = vmatprep.mubr.f32.mxu1 %v10579_v14 }
 0x772   :  { %7153 = vmatmul.mubr.msk.f32.gmra.mrb[18].mxu1 %vm2305_vm9, %v7145_v2 }
 0x834   :  { %v10292_v24 = vpop.f32.mrb[12].mxu0 }
 0x835   :  { %v6699_v28 = vmul.f32 %v10292_v24, %v10292_v24  ;;  %v10296_v1 = vpop.f32.mrb[13].mxu0 }
 0x836   :  { %v6675_v5 = vadd.f32 %v10296_v1, %v10292_v24  ;;  %v6700_v51 = vmul.f32 %v10296_v1, %v10296_v1 }
 0x838   :  { %v6715_v17 = vadd.f32 %v6700_v51, %v6699_v28  ;;  %v10302_v0 = vpop.f32.mrb[14].mxu0 }
 0x839   :  { %v6703_v14 = vmul.f32 %v10302_v0, %v10302_v0  ;;  %v10306_v16 = vpop.f32.mrb[12].mxu1  ;;  %v10308_v59 = vpop.f32.mrb[15].mxu0 }
 0x83a   :  { %v6676_v54 = vadd.f32 %v6675_v5, %v10306_v16  ;;  %v6701_v18 = vmul.f32 %v10306_v16, %v10306_v16  ;;  %v6680_v13 = vadd.f32 %v10308_v59, %v10302_v0  ;;  %v6704_v41 = vmul.f32 %v10308_v59, %v10308_v59  ;;  %v10317_v23 = vpop.f32.mrb[13].mxu1 }
 0x83b   :  { %v6702_v34 = vmul.f32 %v10317_v23, %v10317_v23 }
 0x83c   :  { %v6716_v47 = vadd.f32 %v6715_v17, %v6701_v18  ;;  %v6720_v45 = vadd.f32 %v6704_v41, %v6703_v14  ;;  %v6677_v42 = vadd.f32 %v6676_v54, %v10317_v23  ;;  %v10322_v12 = vpop.f32.mrb[16].mxu0 }
 0x83d   :  { %v6707_v8 = vmul.f32 %v10322_v12, %v10322_v12  ;;  %v10326_v33 = vpop.f32.mrb[14].mxu1  ;;  %v10328_v49 = vpop.f32.mrb[17].mxu0 }
 0x83e   :  { %v6681_v9 = vadd.f32 %v6680_v13, %v10326_v33  ;;  %v6705_v61 = vmul.f32 %v10326_v33, %v10326_v33  ;;  %v6685_v40 = vadd.f32 %v10328_v49, %v10322_v12  ;;  %v6708_v32 = vmul.f32 %v10328_v49, %v10328_v49  ;;  %6678 = vadd.xlane.f32.xlu0 %v6677_v42  ;;  %v10337_v46 = vpop.f32.mrb[15].mxu1 }
 0x83f   :  { %v6706_v31 = vmul.f32 %v10337_v46, %v10337_v46  ;;  %v6717_v3 = vadd.f32 %v6716_v47, %v6702_v34 }
 0x840   :  { %v6721_v63 = vadd.f32 %v6720_v45, %v6705_v61  ;;  %v6725_v4 = vadd.f32 %v6708_v32, %v6707_v8  ;;  %v6682_v48 = vadd.f32 %v6681_v9, %v10337_v46  ;;  %v10342_v55 = vpop.f32.mrb[18].mxu0 }
 0x841   :  { %6718 = vadd.xlane.f32.xlu1 %v6717_v3  ;;  %v6711_v53 = vmul.f32 %v10342_v55, %v10342_v55  ;;  %v10346_v20 = vpop.f32.mrb[16].mxu1  ;;  %v10348_v22 = vpop.f32.mrb[19].mxu0 }
 0x842   :  { %v6686_v57 = vadd.f32 %v6685_v40, %v10346_v20  ;;  %v6709_v35 = vmul.f32 %v10346_v20, %v10346_v20  ;;  %v6690_v44 = vadd.f32 %v10348_v22, %v10342_v55  ;;  %v6712_v38 = vmul.f32 %v10348_v22, %v10348_v22  ;;  %v10357_v60 = vpop.f32.mrb[17].mxu1 }
 0x843   :  { %v6710_v58 = vmul.f32 %v10357_v60, %v10357_v60  ;;  %v6722_v21 = vadd.f32 %v6721_v63, %v6706_v31 }
 0x844   :  { %v6726_v56 = vadd.f32 %v6725_v4, %v6709_v35  ;;  %v6730_v43 = vadd.f32 %v6712_v38, %v6711_v53  ;;  %v6687_v25 = vadd.f32 %v6686_v57, %v10357_v60  ;;  %v6751_v4 = vld [vmem:[%s10469_s9] sm:$0xff] }
 0x845   :  { %6723 = vadd.xlane.f32.xlu0 %v6722_v21  ;;  %6683 = vadd.xlane.f32.xlu1 %v6682_v48  ;;  %v10362_v39 = vpop.f32.mrb[18].mxu1 }
 0x846   :  { %v6691_v50 = vadd.f32 %v6690_v44, %v10362_v39  ;;  %v6713_v11 = vmul.f32 %v10362_v39, %v10362_v39  ;;  %v10367_v26 = vpop.f32.mrb[19].mxu1  ;;  %v6727_v36 = vadd.f32 %v6726_v56, %v6710_v58  ;;  %v6752_v44 = vld [vmem:[%s10469_s9 + $0x8] sm:$0xff] }
 0x847   :  { %v6714_v62 = vmul.f32 %v10367_v26, %v10367_v26 }
 0x848   :  { %v6731_v6 = vadd.f32 %v6730_v43, %v6713_v11  ;;  %v6692_v19 = vadd.f32 %v6691_v50, %v10367_v26  ;;  %v6753_v43 = vld [vmem:[%s10469_s9 + $0x10] sm:$0xff] }
 0x849   :  { %6728 = vadd.xlane.f32.xlu1 %v6727_v36  ;;  %6688 = vadd.xlane.f32.xlu0 %v6687_v25  ;;  %v6767_v25 = vld [vmem:[%s10470_s10] sm:$0xff] }
 0x84a   :  { %v6732_v10 = vadd.f32 %v6731_v6, %v6714_v62  ;;  %v6768_v6 = vld [vmem:[%s10470_s10 + $0x8] sm:$0xff] }
 0x84d   :  { %6693 = vadd.xlane.f32.xlu0 %v6692_v19  ;;  %v6769_v19 = vld [vmem:[%s10470_s10 + $0x10] sm:$0xff] }
 0x851   :  { %6733 = vadd.xlane.f32.xlu0 %v6732_v10 }
 0x8cb   :  { %v6679_v52 = vpop.xlane.xlu0 %6678 }
 0x8cc   :  { %v6695_v37 = vmul.f32 0.001953125, %v6679_v52  ;;  %v6754_v52 = vld [vmem:[%s10469_s9 + $0x18] sm:$0xff] }
 0x8ce   :  { %v6739_v29 = vmul.f32 %v6695_v37, %v6695_v37  ;;  %v6719_v30 = vpop.xlane.xlu1 %6718 }
 0x8cf   :  { %v6735_v27 = vmul.f32 0.001953125, %v6719_v30 }
 0x8d1   :  { %v6743_v15 = vsub.f32 %v6735_v27, %v6739_v29 }
 0x8d2   :  { %v6724_v7 = vpop.xlane.xlu0 %6723  ;;  %v6684_v2 = vpop.xlane.xlu1 %6683 }
 0x8d3   :  { %v6747_v28 = vmax.f32 %v6743_v15, 0.0  ;;  %v6696_v5 = vmul.f32 0.001953125, %v6684_v2  ;;  %v6736_v17 = vmul.f32 0.001953125, %v6724_v7  ;;  %v6770_v7 = vld [vmem:[%s10470_s10 + $0x18] sm:$0xff] }
 0x8d5   :  { %v6755_v51 = vadd.f32 1e-05, %v6747_v28  ;;  %v6740_v14 = vmul.f32 %v6696_v5, %v6696_v5 }
 0x8d6   :  { %v6729_v54 = vpop.xlane.xlu1 %6728  ;;  %v6689_v18 = vpop.xlane.xlu0 %6688 }
 0x8d7   :  { %7642 = vrsqrt.f32 %v6755_v51  ;;  %v6744_v13 = vsub.f32 %v6736_v17, %v6740_v14  ;;  %v6697_v41 = vmul.f32 0.001953125, %v6689_v18  ;;  %v6737_v47 = vmul.f32 0.001953125, %v6729_v54 }
 0x8d9   :  { %v6748_v34 = vmax.f32 %v6744_v13, 0.0  ;;  %v6741_v45 = vmul.f32 %v6697_v41, %v6697_v41 }
 0x8da   :  { %v6694_v42 = vpop.xlane.xlu0 %6693 }
 0x8db   :  { %v6756_v8 = vadd.f32 1e-05, %v6748_v34  ;;  %v6745_v9 = vsub.f32 %v6737_v47, %v6741_v45  ;;  %v6698_v61 = vmul.f32 0.001953125, %v6694_v42 }
 0x8dd   :  { %7644 = vrsqrt.f32 %v6756_v8  ;;  %v6749_v40 = vmax.f32 %v6745_v9, 0.0  ;;  %v6742_v3 = vmul.f32 %v6698_v61, %v6698_v61 }
 0x8de   :  { %v6734_v32 = vpop.xlane.xlu0 %6733 }
 0x8df   :  { %v6757_v31 = vadd.f32 1e-05, %v6749_v40  ;;  %v6738_v63 = vmul.f32 0.001953125, %v6734_v32 }
 0x8e1   :  { %v7643_v48 = vpop.eup %7642  ;;  %7646 = vrsqrt.f32 %v6757_v31  ;;  %v6746_v53 = vsub.f32 %v6738_v63, %v6742_v3 }
 0x8e2   :  { %v6763_v57 = vmul.f32 %v7643_v48, %v6751_v4 }
 0x8e3   :  { %v6750_v35 = vmax.f32 %v6746_v53, 0.0 }
 0x8e4   :  { %6781 = vperm.xlu1 %7628, %v6763_v57   ;;  %v6771_v56 = vmul.f32 %v6763_v57, %v6695_v37 }
 0x8e5   :  { %v6758_v38 = vadd.f32 1e-05, %v6750_v35 }
 0x8e6   :  { %v6775_v62 = vsub.f32 %v6767_v25, %v6771_v56 }
 0x8e7   :  { %v7645_v58 = vpop.eup %7644  ;;  %7648 = vrsqrt.f32 %v6758_v38 }
 0x8e8   :  { %v6764_v21 = vmul.f32 %v7645_v58, %v6752_v44 }
 0x8ea   :  { %6786 = vperm.xlu0 %7629, %v6764_v21   ;;  %v6772_v11 = vmul.f32 %v6764_v21, %v6696_v5 }
 0x8eb   :  { %v7647_v50 = vpop.eup %7646 }
 0x8ec   :  { %v6765_v36 = vmul.f32 %v7647_v50, %v6753_v43  ;;  %v6776_v37 = vsub.f32 %v6768_v6, %v6772_v11 }
 0x8ee   :  { %v6773_v10 = vmul.f32 %v6765_v36, %v6697_v41  ;;  %6791 = vperm.xlu1 %7628, %v6765_v36   ;;  %6817 = vperm.xlu0 %7629, %v6775_v62  }
 0x8f0   :  { %v6777_v29 = vsub.f32 %v6769_v19, %v6773_v10 }
 0x8f1   :  { %v7649_v30 = vpop.eup %7648 }
 0x8f2   :  { %6822 = vperm.xlu1 %7628, %v6776_v37   ;;  %6827 = vperm.xlu0 %7629, %v6777_v29   ;;  %v6766_v27 = vmul.f32 %v7649_v30, %v6754_v52 }
 0x8f4   :  { %v6774_v15 = vmul.f32 %v6766_v27, %v6698_v61 }
 0x8f6   :  { %6796 = vperm.xlu1 %7628, %v6766_v27   ;;  %v6778_v2 = vsub.f32 %v6770_v7, %v6774_v15 }
 0x8fa   :  { %6832 = vperm.xlu1 %7628, %v6778_v2  }
 0x963   :  { %v6782_v28 = vpop.permute.xlu1 %6781 }
 0x964   :  { %v6799_v51 = vmul.f32 %v6782_v28, %v10292_v24  ;;  %v6800_v17 = vmul.f32 %v6782_v28, %v10296_v1  ;;  %v6801_v14 = vmul.f32 %v6782_v28, %v10306_v16  ;;  %v6802_v54 = vmul.f32 %v6782_v28, %v10317_v23 }
 0x969   :  { %v6787_v5 = vpop.permute.xlu0 %6786 }
 0x96a   :  { %v6803_v42 = vmul.f32 %v6787_v5, %v10302_v0  ;;  %v6804_v8 = vmul.f32 %v6787_v5, %v10308_v59  ;;  %v6805_v9 = vmul.f32 %v6787_v5, %v10326_v33  ;;  %v6806_v24 = vmul.f32 %v6787_v5, %v10337_v46 }
 0x96d   :  { %v6792_v18 = vpop.permute.xlu1 %6791  ;;  %v6818_v13 = vpop.permute.xlu0 %6817 }
 0x96e   :  { %v6835_v41 = vadd.f32 %v6818_v13, %v6799_v51  ;;  %v6836_v34 = vadd.f32 %v6818_v13, %v6800_v17  ;;  %v6837_v47 = vadd.f32 %v6818_v13, %v6801_v14  ;;  %v6838_v45 = vadd.f32 %v6818_v13, %v6802_v54 }
 0x96f   :  { %v6807_v23 = vmul.f32 %v6792_v18, %v10322_v12  ;;  %v6808_v31 = vmul.f32 %v6792_v18, %v10328_v49  ;;  %v6809_v3 = vmul.f32 %v6792_v18, %v10346_v20  ;;  %v6810_v63 = vmul.f32 %v6792_v18, %v10357_v60 }
 0x970   :  { %v6851_v61 = vmax.f32 %v6835_v41, 0.0  ;;  %v6852_v1 = vmax.f32 %v6836_v34, 0.0  ;;  %v6853_v40 = vmax.f32 %v6837_v47, 0.0  ;;  %v6854_v16 = vmax.f32 %v6838_v45, 0.0 }
 0x971   :  { %v6823_v32 = vpop.permute.xlu1 %6822  ;;  %v6828_v0 = vpop.permute.xlu0 %6827 }
 0x972   :  { %6867 = vst [vmem:[%s10471_s11] sm:$0xff] %v6851_v61  ;;  %6868 = vst [vmem:[%s10471_s11 + $0x8] sm:$0xff] %v6852_v1  ;;  %v6839_v59 = vadd.f32 %v6823_v32, %v6803_v42  ;;  %v6840_v12 = vadd.f32 %v6823_v32, %v6804_v8  ;;  %v6841_v33 = vadd.f32 %v6823_v32, %v6805_v9 }
 0x973   :  { %6869 = vst [vmem:[%s10471_s11 + $0x10] sm:$0xff] %v6853_v40  ;;  %6870 = vst [vmem:[%s10471_s11 + $0x18] sm:$0xff] %v6854_v16  ;;  %v6842_v49 = vadd.f32 %v6823_v32, %v6806_v24  ;;  %v6843_v46 = vadd.f32 %v6828_v0, %v6807_v23  ;;  %v6844_v20 = vadd.f32 %v6828_v0, %v6808_v31 }
 0x974   :  { %v6845_v60 = vadd.f32 %v6828_v0, %v6809_v3  ;;  %v6846_v4 = vadd.f32 %v6828_v0, %v6810_v63  ;;  %v6855_v48 = vmax.f32 %v6839_v59, 0.0  ;;  %v6856_v53 = vmax.f32 %v6840_v12, 0.0 }
 0x975   :  { %v6857_v57 = vmax.f32 %v6841_v33, 0.0  ;;  %v6858_v35 = vmax.f32 %v6842_v49, 0.0  ;;  %v6859_v44 = vmax.f32 %v6843_v46, 0.0  ;;  %v6860_v38 = vmax.f32 %v6844_v20, 0.0  ;;  %v6797_v56 = vpop.permute.xlu1 %6796 }
 0x976   :  { %v6861_v58 = vmax.f32 %v6845_v60, 0.0  ;;  %v6862_v21 = vmax.f32 %v6846_v4, 0.0  ;;  %6871 = vst [vmem:[%s10471_s11 + $0x20] sm:$0xff] %v6855_v48  ;;  %6872 = vst [vmem:[%s10471_s11 + $0x28] sm:$0xff] %v6856_v53  ;;  %v6811_v43 = vmul.f32 %v6797_v56, %v10342_v55  ;;  %v6812_v25 = vmul.f32 %v6797_v56, %v10348_v22 }
 0x977   :  { %6873 = vst [vmem:[%s10471_s11 + $0x30] sm:$0xff] %v6857_v57  ;;  %6874 = vst [vmem:[%s10471_s11 + $0x38] sm:$0xff] %v6858_v35  ;;  %v6813_v50 = vmul.f32 %v6797_v56, %v10362_v39  ;;  %v6814_v11 = vmul.f32 %v6797_v56, %v10367_v26 }
 0x978   :  { %6875 = vst [vmem:[%s10471_s11 + $0x40] sm:$0xff] %v6859_v44  ;;  %6876 = vst [vmem:[%s10471_s11 + $0x48] sm:$0xff] %v6860_v38 }
 0x979   :  { %6877 = vst [vmem:[%s10471_s11 + $0x50] sm:$0xff] %v6861_v58  ;;  %6878 = vst [vmem:[%s10471_s11 + $0x58] sm:$0xff] %v6862_v21  ;;  %v6833_v36 = vpop.permute.xlu1 %6832 }
 0x97a   :  { %v6847_v62 = vadd.f32 %v6833_v36, %v6811_v43  ;;  %v6848_v6 = vadd.f32 %v6833_v36, %v6812_v25  ;;  %v6849_v19 = vadd.f32 %v6833_v36, %v6813_v50  ;;  %v6850_v10 = vadd.f32 %v6833_v36, %v6814_v11 }
 0x97c   :  { %v6863_v52 = vmax.f32 %v6847_v62, 0.0  ;;  %v6864_v37 = vmax.f32 %v6848_v6, 0.0  ;;  %v6865_v29 = vmax.f32 %v6849_v19, 0.0  ;;  %v6866_v30 = vmax.f32 %v6850_v10, 0.0 }
 0x97e   :  { %6879 = vst [vmem:[%s10471_s11 + $0x60] sm:$0xff] %v6863_v52  ;;  %6880 = vst [vmem:[%s10471_s11 + $0x68] sm:$0xff] %v6864_v37 }
 0x97f   :  { %6881 = vst [vmem:[%s10471_s11 + $0x70] sm:$0xff] %v6865_v29  ;;  %6882 = vst [vmem:[%s10471_s11 + $0x78] sm:$0xff] %v6866_v30 }

</bundles_post_ra>
